<compile_context>
chip_gen: v7x
topology: tpu7x:2x2x1
jax: 0.10.0
libtpu: 0.0.40
codegen_flags: <defaults>
</compile_context>

<pallas_src>
import jax
import jax.numpy as jnp
from jax import lax
from jax.experimental import pallas as pl
from jax.experimental.pallas import tpu as pltpu


def _round_up(x, m):
    return ((x + m - 1) // m) * m


def _largest_divisor_leq(n, cap):
    cap = max(1, min(n, cap))
    for c in range(cap, 0, -1):
        if n % c == 0:
            return c
    return 1


def _make_gru_kernel(n_layers, s_chunk, b_blk, d_pad, h_pad, o_pad, p_sub, unroll):
    """Multi-layer GRU over one (batch-block, sequence-chunk) tile + Linear + sigmoid."""
    G = 3 * h_pad
    n_sub = s_chunk // p_sub

    def kernel(*refs):
        # refs: x_ref, [w_ih, w_hh, b_ih, b_hn] * n_layers, w_out, b_out,
        #       out_ref, h_ref (VMEM), gi_ref (VMEM), seq_ref (VMEM)
        x_ref = refs[0]
        layer_refs = refs[1:1 + 4 * n_layers]
        w_out_ref = refs[1 + 4 * n_layers]
        b_out_ref = refs[2 + 4 * n_layers]
        out_ref = refs[3 + 4 * n_layers]
        h_ref = refs[4 + 4 * n_layers]      # (n_layers, B, H_pad) f32, carried over chunks
        gi_ref = refs[5 + 4 * n_layers]     # (S_CHUNK, B, 3H_pad) f32
        seq_ref = refs[6 + 4 * n_layers]    # (S_CHUNK, B, H_pad) bf16

        s_idx = pl.program_id(1)

        @pl.when(s_idx == 0)
        def _init():
            h_ref[...] = jnp.zeros_like(h_ref)

        for layer in range(n_layers):
            w_ih = layer_refs[4 * layer + 0][...]   # (Din_pad, 3H_pad) bf16
            w_hh = layer_refs[4 * layer + 1][...]   # (H_pad,   3H_pad) bf16
            b_ih = layer_refs[4 * layer + 2][...]   # (1, 3H_pad) f32, b_hh r/z folded in
            b_hn = layer_refs[4 * layer + 3][...]   # (1, H_pad)  f32, b_hh n gate only

            src_is_x = (layer == 0)
            din = d_pad if src_is_x else h_pad

            # Hoisted input projection for this S chunk, in bounded row sub-chunks
            # written straight into gi_ref (limits the f32 transient, overlaps
            # store of sub-chunk k with MXU work of k+1).
            def do_proj(t0, w_ih=w_ih, b_ih=b_ih, src_is_x=src_is_x, din=din):
                if src_is_x:
                    xs = x_ref[pl.ds(t0, p_sub)]            # (p_sub, B, D_pad) bf16
                else:
                    xs = seq_ref[pl.ds(t0, p_sub)]          # (p_sub, B, H_pad) bf16
                xs = xs.reshape(p_sub * b_blk, din)
                gi = jnp.dot(xs, w_ih, preferred_element_type=jnp.float32) + b_ih
                gi_ref[pl.ds(t0, p_sub)] = gi.reshape(p_sub, b_blk, G)

            if n_sub == 1:
                do_proj(0)
            else:
                def proj_body(p, carry, do_proj=do_proj):
                    do_proj(pl.multiple_of(p * p_sub, p_sub))
                    return carry
                lax.fori_loop(0, n_sub, proj_body, 0)

            # Hoisted: n-gate recurrent bias, broadcast once per layer (not per step).
            b_hn_b = jnp.broadcast_to(b_hn, (b_blk, h_pad))
            write_seq = layer < n_layers - 1   # last layer's sequence is never read

            def step(t, h, w_hh=w_hh, b_hn_b=b_hn_b, write_seq=write_seq):
                gi = gi_ref[t]                                          # (B, 3H_pad) f32
                gh = jnp.dot(h.astype(jnp.bfloat16), w_hh,
                             preferred_element_type=jnp.float32)
                # PyTorch gate order [r, z, n]; gate blocks are lane-aligned.
                r = jax.nn.sigmoid(gi[:, 0:h_pad] + gh[:, 0:h_pad])
                z = jax.nn.sigmoid(gi[:, h_pad:2 * h_pad] + gh[:, h_pad:2 * h_pad])
                n = jnp.tanh(gi[:, 2 * h_pad:3 * h_pad]
                             + r * (gh[:, 2 * h_pad:3 * h_pad] + b_hn_b))
                h_new = (1.0 - z) * n + z * h
                if write_seq:
                    seq_ref[t] = h_new.astype(jnp.bfloat16)
                return h_new

            h_last = lax.fori_loop(0, s_chunk, step, h_ref[layer], unroll=unroll)
            h_ref[layer] = h_last

        # hidden[-1] -> dropout (identity at inference) -> Linear -> sigmoid
        @pl.when(s_idx == pl.num_programs(1) - 1)
        def _final():
            h = h_ref[n_layers - 1].astype(jnp.bfloat16)
            logits = jnp.dot(h, w_out_ref[...],
                             preferred_element_type=jnp.float32) + b_out_ref[...]
            out_ref[...] = jax.nn.sigmoid(logits)

    return kernel


def init_params(key, vocab_size, bert_dim, hidden_dim, output_dim, n_layers):
    """Deterministic synthetic parameters matching nn.GRU / nn.Linear layouts."""
    params = {}
    k_emb, key = jax.random.split(key)
    params["emb"] = 0.05 * jax.random.normal(
        k_emb, (vocab_size, bert_dim), jnp.float32)
    for layer in range(n_layers):
        d_in = bert_dim if layer == 0 else hidden_dim
        k1, k2, k3, k4, key = jax.random.split(key, 5)
        # PyTorch layout: weight_ih_l{k}: (3H, d_in), weight_hh_l{k}: (3H, H)
        params[f"w_ih_{layer}"] = 0.1 * jax.random.normal(
            k1, (3 * hidden_dim, d_in), jnp.float32)
        params[f"w_hh_{layer}"] = 0.1 * jax.random.normal(
            k2, (3 * hidden_dim, hidden_dim), jnp.float32)
        params[f"b_ih_{layer}"] = 0.1 * jax.random.normal(
            k3, (3 * hidden_dim,), jnp.float32)
        params[f"b_hh_{layer}"] = 0.1 * jax.random.normal(
            k4, (3 * hidden_dim,), jnp.float32)
    k5, k6, _ = jax.random.split(key, 3)
    params["w_out"] = 0.1 * jax.random.normal(
        k5, (output_dim, hidden_dim), jnp.float32)   # nn.Linear weight: (O, H)
    params["b_out"] = 0.1 * jax.random.normal(k6, (output_dim,), jnp.float32)
    return params


def bert_gru_sentiment(text, params, *, n_layers, hidden_dim, output_dim):
    # "BERT" stand-in: embedding-table lookup (plain-JAX glue; gather).
    embedded = params["emb"][text].astype(jnp.float32)     # (B, S, bert_dim)
    B, S, D = embedded.shape
    H, O = hidden_dim, output_dim

    # ---- tiling ----
    D_pad = _round_up(D, 128)
    H_pad = _round_up(H, 128)
    O_pad = _round_up(O, 128)
    G = 3 * H_pad

    # Batch tile: up to 128 rows (MXU occupancy), multiple of 16 (bf16 sublane
    # packing); split into >=2 blocks when the batch is big enough so the
    # "parallel" axis can shard across v7x's 2 TensorCores.
    b16 = _round_up(B, 16)
    if b16 > 256:
        B_BLK = 128
    elif b16 >= 32:
        B_BLK = _round_up(-(-b16 // 2), 16)
    else:
        B_BLK = b16
    B_pad = _round_up(B, B_BLK)

    # Sequence chunk: sized so the f32 gi scratch stays ~12 MiB; must divide S
    # exactly (padded timesteps would corrupt the recurrence).
    gi_row_bytes = B_BLK * G * 4
    s_target = max(1, (12 << 20) // gi_row_bytes)
    S_CHUNK = _largest_divisor_leq(S, min(256, s_target))
    # Input-projection sub-chunk: ~<=512 matmul rows per call.
    P_SUB = _largest_divisor_leq(S_CHUNK, max(1, 512 // B_BLK))
    UNROLL = min(8, S_CHUNK)        # partial unroll of the recurrence

    # Time-major, batch/lane padded, bf16 matmul input (MXU-native on v6e/v7x).
    x = jnp.transpose(embedded, (1, 0, 2))                  # (S, B, D)
    x = jnp.pad(x, ((0, 0), (0, B_pad - B), (0, D_pad - D))).astype(jnp.bfloat16)

    def pack_w(w, din, din_pad):
        # w: (3H, din), PyTorch gate order [r, z, n] -> (din_pad, 3*H_pad), each
        # gate in its own lane-aligned H_pad block, bf16.
        parts = []
        for g in range(3):
            wg = w[g * H:(g + 1) * H, :].T                  # (din, H)
            parts.append(jnp.pad(wg, ((0, din_pad - din), (0, H_pad - H))))
        return jnp.concatenate(parts, axis=1).astype(jnp.bfloat16)

    def pack_b_ih(b_ih, b_hh):
        # Fold b_hh's r/z blocks into b_ih (purely additive); n gate keeps b_ih only.
        merged = [b_ih[0:H] + b_hh[0:H],
                  b_ih[H:2 * H] + b_hh[H:2 * H],
                  b_ih[2 * H:3 * H]]
        parts = [jnp.pad(m, (0, H_pad - H)) for m in merged]
        return jnp.concatenate(parts).reshape(1, G).astype(jnp.float32)

    def pack_b_hn(b_hh):
        return jnp.pad(b_hh[2 * H:3 * H], (0, H_pad - H)).reshape(1, H_pad) \
                  .astype(jnp.float32)

    args = [x]
    in_specs = [pl.BlockSpec((S_CHUNK, B_BLK, D_pad), lambda b, s: (s, b, 0))]
    for layer in range(n_layers):
        din = D if layer == 0 else H
        din_pad = D_pad if layer == 0 else H_pad
        w_ih = pack_w(params[f"w_ih_{layer}"], din, din_pad)
        w_hh = pack_w(params[f"w_hh_{layer}"], H, H_pad)
        b_ih = pack_b_ih(params[f"b_ih_{layer}"], params[f"b_hh_{layer}"])
        b_hn = pack_b_hn(params[f"b_hh_{layer}"])
        args += [w_ih, w_hh, b_ih, b_hn]
        in_specs += [
            pl.BlockSpec(w_ih.shape, lambda b, s: (0, 0)),
            pl.BlockSpec(w_hh.shape, lambda b, s: (0, 0)),
            pl.BlockSpec(b_ih.shape, lambda b, s: (0, 0)),
            pl.BlockSpec(b_hn.shape, lambda b, s: (0, 0)),
        ]
    w_out = jnp.pad(params["w_out"].T,
                    ((0, H_pad - H), (0, O_pad - O))).astype(jnp.bfloat16)
    b_out = jnp.pad(params["b_out"], (0, O_pad - O)).reshape(1, O_pad)
    b_out = b_out.astype(jnp.float32)
    args += [w_out, b_out]
    in_specs += [pl.BlockSpec(w_out.shape, lambda b, s: (0, 0)),
                 pl.BlockSpec(b_out.shape, lambda b, s: (0, 0))]

    kernel = _make_gru_kernel(n_layers, S_CHUNK, B_BLK, D_pad, H_pad, O_pad,
                              P_SUB, UNROLL)

    scratch_shapes = [
        pltpu.VMEM((n_layers, B_BLK, H_pad), jnp.float32),   # per-layer carried h
        pltpu.VMEM((S_CHUNK, B_BLK, G), jnp.float32),        # hoisted GI (chunk)
        pltpu.VMEM((S_CHUNK, B_BLK, H_pad), jnp.bfloat16),   # layer seq out (chunk)
    ]

    # Advisory cost estimate (whole computation).
    flops = 0
    for layer in range(n_layers):
        din_pad = D_pad if layer == 0 else H_pad
        flops += 2 * S * B_pad * din_pad * G        # hoisted input projection
        flops += 2 * S * B_pad * H_pad * G          # recurrent projection
        flops += 12 * S * B_pad * H_pad             # gate elementwise
    flops += 2 * B_pad * H_pad * O_pad
    transcendentals = 3 * S * B_pad * H_pad * n_layers + B_pad * O_pad
    bytes_accessed = sum(int(a.size) * a.dtype.itemsize for a in args) \
        + B_pad * O_pad * 4

    # VMEM budget from actual per-block buffers (x block + weights double-buffered,
    # out block, scratch, projection transient) with a per-generation cap.
    param_bytes = sum(int(a.size) * a.dtype.itemsize for a in args[1:])
    x_blk_bytes = S_CHUNK * B_BLK * D_pad * 2
    out_blk_bytes = B_BLK * O_pad * 4
    scratch_bytes = (n_layers * B_BLK * H_pad * 4
                     + S_CHUNK * B_BLK * G * 4
                     + S_CHUNK * B_BLK * H_pad * 2)
    transient_bytes = 2 * P_SUB * B_BLK * G * 4
    needed = (2 * x_blk_bytes + 2 * param_bytes + 2 * out_blk_bytes
              + scratch_bytes + transient_bytes + (8 << 20))
    try:
        cap = int(0.78 * pltpu.get_tpu_info().vmem_capacity_bytes)
    except Exception:  # pragma: no cover - conservative fallback
        cap = 48 << 20
    vmem_bytes = int(min(max(needed, 16 << 20), max(cap, 32 << 20)))

    out = pl.pallas_call(
        kernel,
        out_shape=jax.ShapeDtypeStruct((B_pad, O_pad), jnp.float32),
        grid=(B_pad // B_BLK, S // S_CHUNK),
        in_specs=in_specs,
        out_specs=pl.BlockSpec((B_BLK, O_pad), lambda b, s: (b, 0)),
        scratch_shapes=scratch_shapes,
        compiler_params=pltpu.CompilerParams(
            dimension_semantics=("parallel", "arbitrary"),
            vmem_limit_bytes=vmem_bytes),
        cost_estimate=pl.CostEstimate(flops=int(flops),
                                      transcendentals=int(transcendentals),
                                      bytes_accessed=int(bytes_accessed)),
    )(*args)
    return out[:B, :O]


def reference_forward(text, params, *, n_layers, hidden_dim, output_dim):
    """Pure-JAX f32 reference matching PyTorch nn.GRU + Linear + sigmoid."""
    emb = params["emb"][text].astype(jnp.float32)            # (B, S, D)
    B, S, _ = emb.shape
    H = hidden_dim
    x = emb
    h_last = None
    for layer in range(n_layers):
        w_ih = params[f"w_ih_{layer}"]
        w_hh = params[f"w_hh_{layer}"]
        b_ih = params[f"b_ih_{layer}"]
        b_hh = params[f"b_hh_{layer}"]

        def step(h, x_t):
            gi = x_t @ w_ih.T + b_ih
            gh = h @ w_hh.T + b_hh
            r = jax.nn.sigmoid(gi[:, :H] + gh[:, :H])
            z = jax.nn.sigmoid(gi[:, H:2 * H] + gh[:, H:2 * H])
            n = jnp.tanh(gi[:, 2 * H:] + r * gh[:, 2 * H:])
            h_new = (1.0 - z) * n + z * h
            return h_new, h_new

        h0 = jnp.zeros((B, H), jnp.float32)
        h_last, seq = lax.scan(step, h0, jnp.transpose(x, (1, 0, 2)))
        x = jnp.transpose(seq, (1, 0, 2))
    logits = h_last @ params["w_out"].T + params["b_out"]
    return jax.nn.sigmoid(logits)


if __name__ == "__main__":
    # Small shapes consistent with the module's forward.
    B, S = 2, 8                  # batch, sequence length (token indices)
    VOCAB = 50
    BERT_DIM = 64                # stand-in for bert hidden_size
    HIDDEN_DIM = 32
    OUTPUT_DIM = 1
    N_LAYERS = 2                 # dropout=0.25 unused at inference

    key = jax.random.PRNGKey(0)
    k_text, k_params = jax.random.split(key)
    text = jax.random.randint(k_text, (B, S), 0, VOCAB, dtype=jnp.int32)
    params = init_params(k_params, VOCAB, BERT_DIM, HIDDEN_DIM,
                         OUTPUT_DIM, N_LAYERS)

    out = bert_gru_sentiment(text, params, n_layers=N_LAYERS,
                             hidden_dim=HIDDEN_DIM, output_dim=OUTPUT_DIM)
    out = jax.block_until_ready(out)

    ref = reference_forward(text, params, n_layers=N_LAYERS,
                            hidden_dim=HIDDEN_DIM, output_dim=OUTPUT_DIM)

    assert out.shape == (B, OUTPUT_DIM)
    assert bool(jnp.all(jnp.isfinite(out)))
    assert bool(jnp.all((out > 0.0) & (out < 1.0)))          # sigmoid range
    max_err = float(jnp.max(jnp.abs(out - ref)))
    assert max_err < 2e-2, f"mismatch vs reference: {max_err}"
    print("KERNEL_OK")
</pallas_src>

<mosaic_0001>
module attributes {stable_mosaic.version = 11 : i64} {
  func.func @kernel(%arg0: i32, %arg1: i32, %arg2: memref<8x16x128xbf16, #tpu.memory_space<vmem>>, %arg3: memref<128x384xbf16, #tpu.memory_space<vmem>>, %arg4: memref<128x384xbf16, #tpu.memory_space<vmem>>, %arg5: memref<1x384xf32, #tpu.memory_space<vmem>>, %arg6: memref<1x128xf32, #tpu.memory_space<vmem>>, %arg7: memref<128x384xbf16, #tpu.memory_space<vmem>>, %arg8: memref<128x384xbf16, #tpu.memory_space<vmem>>, %arg9: memref<1x384xf32, #tpu.memory_space<vmem>>, %arg10: memref<1x128xf32, #tpu.memory_space<vmem>>, %arg11: memref<128x128xbf16, #tpu.memory_space<vmem>>, %arg12: memref<1x128xf32, #tpu.memory_space<vmem>>, %arg13: memref<16x128xf32, #tpu.memory_space<vmem>>, %arg14: memref<2x16x128xf32, #tpu.memory_space<vmem>>, %arg15: memref<8x16x384xf32, #tpu.memory_space<vmem>>, %arg16: memref<8x16x128xbf16, #tpu.memory_space<vmem>>) attributes {dimension_semantics = [#tpu.dimension_semantics<parallel>, #tpu.dimension_semantics<arbitrary>], iteration_bounds = array<i64: 1, 1>, scalar_prefetch = 0 : i64, scratch_operands = 3 : i64, tpu.core_type = #tpu.core_type<tc>, window_params = [{transform_indices = @transform_0, window_bounds = array<i64: 8, 16, 128>}, {pipeline_mode = #tpu.pipeline_mode<synchronous>, transform_indices = @transform_1, window_bounds = array<i64: 128, 384>}, {pipeline_mode = #tpu.pipeline_mode<synchronous>, transform_indices = @transform_2, window_bounds = array<i64: 128, 384>}, {pipeline_mode = #tpu.pipeline_mode<synchronous>, transform_indices = @transform_3, window_bounds = array<i64: 1, 384>}, {pipeline_mode = #tpu.pipeline_mode<synchronous>, transform_indices = @transform_4, window_bounds = array<i64: 1, 128>}, {pipeline_mode = #tpu.pipeline_mode<synchronous>, transform_indices = @transform_5, window_bounds = array<i64: 128, 384>}, {pipeline_mode = #tpu.pipeline_mode<synchronous>, transform_indices = @transform_6, window_bounds = array<i64: 128, 384>}, {pipeline_mode = #tpu.pipeline_mode<synchronous>, transform_indices = @transform_7, window_bounds = array<i64: 1, 384>}, {pipeline_mode = #tpu.pipeline_mode<synchronous>, transform_indices = @transform_8, window_bounds = array<i64: 1, 128>}, {pipeline_mode = #tpu.pipeline_mode<synchronous>, transform_indices = @transform_9, window_bounds = array<i64: 128, 128>}, {pipeline_mode = #tpu.pipeline_mode<synchronous>, transform_indices = @transform_10, window_bounds = array<i64: 1, 128>}, {transform_indices = @transform_11, window_bounds = array<i64: 16, 128>}]} {
    %c0_i32 = arith.constant 0 : i32
    %0 = arith.cmpi eq, %arg1, %c0_i32 : i32
    %1 = arith.extui %0 : i1 to i32
    %c0_i32_0 = arith.constant 0 : i32
    %2 = arith.cmpi ne, %1, %c0_i32_0 : i32
    scf.if %2 {
      %cst_164 = arith.constant 0.000000e+00 : f32
      %594 = vector.broadcast %cst_164 : f32 to vector<2x16x128xf32>
      %c0_165 = arith.constant 0 : index
      %c0_166 = arith.constant 0 : index
      %c0_167 = arith.constant 0 : index
      %595 = vector.load %arg14[%c0_165, %c0_166, %c0_167] : memref<2x16x128xf32, #tpu.memory_space<vmem>>, vector<2x16x128xf32>
      tpu.vector_store %arg14[%c0_165, %c0_166, %c0_167], %594 {strides = array<i32>} : memref<2x16x128xf32, #tpu.memory_space<vmem>>, vector<2x16x128xf32>,
    } else {
    }
    %c0 = arith.constant 0 : index
    %c0_1 = arith.constant 0 : index
    %3 = vector.load %arg3[%c0, %c0_1] : memref<128x384xbf16, #tpu.memory_space<vmem>>, vector<128x384xbf16>
    %c0_2 = arith.constant 0 : index
    %c0_3 = arith.constant 0 : index
    %4 = vector.load %arg4[%c0_2, %c0_3] : memref<128x384xbf16, #tpu.memory_space<vmem>>, vector<128x384xbf16>
    %c0_4 = arith.constant 0 : index
    %c0_5 = arith.constant 0 : index
    %5 = vector.load %arg5[%c0_4, %c0_5] : memref<1x384xf32, #tpu.memory_space<vmem>>, vector<1x384xf32>
    %c0_6 = arith.constant 0 : index
    %c0_7 = arith.constant 0 : index
    %6 = vector.load %arg6[%c0_6, %c0_7] : memref<1x128xf32, #tpu.memory_space<vmem>>, vector<1x128xf32>
    %c0_8 = arith.constant 0 : index
    %c0_9 = arith.constant 0 : index
    %c0_10 = arith.constant 0 : index
    %7 = vector.load %arg2[%c0_8, %c0_9, %c0_10] : memref<8x16x128xbf16, #tpu.memory_space<vmem>>, vector<8x16x128xbf16>
    %8 = vector.shape_cast %7 : vector<8x16x128xbf16> to vector<128x128xbf16>
    %cst = arith.constant dense<0.000000e+00> : vector<128x384xf32>
    %9 = tpu.matmul %8, %3, %cst {dimension_numbers = #tpu.dot_dimension_numbers<[1], [0], [0], [1], [0, 0, 1, 1], [], []>} : vector<128x128xbf16>, vector<128x384xbf16>, vector<128x384xf32> -> vector<128x384xf32>
    %10 = vector.broadcast %5 : vector<1x384xf32> to vector<128x384xf32>
    %11 = arith.addf %9, %10 : vector<128x384xf32>
    %12 = vector.shape_cast %11 : vector<128x384xf32> to vector<8x16x384xf32>
    %c0_11 = arith.constant 0 : index
    %c0_12 = arith.constant 0 : index
    %c0_13 = arith.constant 0 : index
    %13 = vector.load %arg15[%c0_11, %c0_12, %c0_13] : memref<8x16x384xf32, #tpu.memory_space<vmem>>, vector<8x16x384xf32>
    tpu.vector_store %arg15[%c0_11, %c0_12, %c0_13], %12 {strides = array<i32>} : memref<8x16x384xf32, #tpu.memory_space<vmem>>, vector<8x16x384xf32>,
    %14 = vector.shape_cast %6 : vector<1x128xf32> to vector<1x128xf32>
    %15 = vector.broadcast %14 : vector<1x128xf32> to vector<16x128xf32>
    %c0_14 = arith.constant 0 : index
    %c0_15 = arith.constant 0 : index
    %c0_16 = arith.constant 0 : index
    %16 = vector.load %arg14[%c0_14, %c0_15, %c0_16] : memref<2x16x128xf32, #tpu.memory_space<vmem>>, vector<1x16x128xf32>
    %17 = vector.shape_cast %16 : vector<1x16x128xf32> to vector<16x128xf32>
    %c0_i32_17 = arith.constant 0 : i32
    %18 = arith.index_cast %c0_i32_17 : i32 to index
    %c0_18 = arith.constant 0 : index
    %c0_19 = arith.constant 0 : index
    %19 = vector.load %arg15[%18, %c0_18, %c0_19] : memref<8x16x384xf32, #tpu.memory_space<vmem>>, vector<1x16x384xf32>
    %20 = vector.shape_cast %19 : vector<1x16x384xf32> to vector<16x384xf32>
    %21 = arith.truncf %17 : vector<16x128xf32> to vector<16x128xbf16>
    %cst_20 = arith.constant dense<0.000000e+00> : vector<16x384xf32>
    %22 = tpu.matmul %21, %4, %cst_20 {dimension_numbers = #tpu.dot_dimension_numbers<[1], [0], [0], [1], [0, 0, 1, 1], [], []>} : vector<16x128xbf16>, vector<128x384xbf16>, vector<16x384xf32> -> vector<16x384xf32>
    %23 = vector.extract_strided_slice %20 {offsets = [0, 0], sizes = [16, 128], strides = [1, 1]} : vector<16x384xf32> to vector<16x128xf32>
    %24 = vector.extract_strided_slice %22 {offsets = [0, 0], sizes = [16, 128], strides = [1, 1]} : vector<16x384xf32> to vector<16x128xf32>
    %25 = arith.addf %23, %24 : vector<16x128xf32>
    %26 = arith.negf %25 : vector<16x128xf32>
    %27 = math.exp %26 : vector<16x128xf32>
    %cst_21 = arith.constant 1.000000e+00 : f32
    %28 = vector.broadcast %cst_21 : f32 to vector<16x128xf32>
    %29 = arith.addf %28, %27 : vector<16x128xf32>
    %30 = arith.divf %28, %29 : vector<16x128xf32>
    %31 = vector.extract_strided_slice %20 {offsets = [0, 128], sizes = [16, 128], strides = [1, 1]} : vector<16x384xf32> to vector<16x128xf32>
    %32 = vector.extract_strided_slice %22 {offsets = [0, 128], sizes = [16, 128], strides = [1, 1]} : vector<16x384xf32> to vector<16x128xf32>
    %33 = arith.addf %31, %32 : vector<16x128xf32>
    %34 = arith.negf %33 : vector<16x128xf32>
    %35 = math.exp %34 : vector<16x128xf32>
    %cst_22 = arith.constant 1.000000e+00 : f32
    %36 = vector.broadcast %cst_22 : f32 to vector<16x128xf32>
    %37 = arith.addf %36, %35 : vector<16x128xf32>
    %38 = arith.divf %36, %37 : vector<16x128xf32>
    %39 = vector.extract_strided_slice %20 {offsets = [0, 256], sizes = [16, 128], strides = [1, 1]} : vector<16x384xf32> to vector<16x128xf32>
    %40 = vector.extract_strided_slice %22 {offsets = [0, 256], sizes = [16, 128], strides = [1, 1]} : vector<16x384xf32> to vector<16x128xf32>
    %41 = arith.addf %40, %15 : vector<16x128xf32>
    %42 = arith.mulf %30, %41 : vector<16x128xf32>
    %43 = arith.addf %39, %42 : vector<16x128xf32>
    %44 = math.tanh %43 : vector<16x128xf32>
    %cst_23 = arith.constant 1.000000e+00 : f32
    %45 = vector.broadcast %cst_23 : f32 to vector<16x128xf32>
    %46 = arith.subf %45, %38 : vector<16x128xf32>
    %47 = arith.mulf %46, %44 : vector<16x128xf32>
    %48 = arith.mulf %38, %17 : vector<16x128xf32>
    %49 = arith.addf %47, %48 : vector<16x128xf32>
    %50 = arith.truncf %49 : vector<16x128xf32> to vector<16x128xbf16>
    %51 = arith.index_cast %c0_i32_17 : i32 to index
    %c0_24 = arith.constant 0 : index
    %c0_25 = arith.constant 0 : index
    %52 = vector.load %arg16[%51, %c0_24, %c0_25] : memref<8x16x128xbf16, #tpu.memory_space<vmem>>, vector<1x16x128xbf16>
    %53 = vector.shape_cast %52 : vector<1x16x128xbf16> to vector<16x128xbf16>
    %54 = vector.shape_cast %50 : vector<16x128xbf16> to vector<1x16x128xbf16>
    tpu.vector_store %arg16[%51, %c0_24, %c0_25], %54 {strides = array<i32>} : memref<8x16x128xbf16, #tpu.memory_space<vmem>>, vector<1x16x128xbf16>,
    %c1_i32 = arith.constant 1 : i32
    %55 = arith.index_cast %c1_i32 : i32 to index
    %c0_26 = arith.constant 0 : index
    %c0_27 = arith.constant 0 : index
    %56 = vector.load %arg15[%55, %c0_26, %c0_27] : memref<8x16x384xf32, #tpu.memory_space<vmem>>, vector<1x16x384xf32>
    %57 = vector.shape_cast %56 : vector<1x16x384xf32> to vector<16x384xf32>
    %58 = arith.truncf %49 : vector<16x128xf32> to vector<16x128xbf16>
    %cst_28 = arith.constant dense<0.000000e+00> : vector<16x384xf32>
    %59 = tpu.matmul %58, %4, %cst_28 {dimension_numbers = #tpu.dot_dimension_numbers<[1], [0], [0], [1], [0, 0, 1, 1], [], []>} : vector<16x128xbf16>, vector<128x384xbf16>, vector<16x384xf32> -> vector<16x384xf32>
    %60 = vector.extract_strided_slice %57 {offsets = [0, 0], sizes = [16, 128], strides = [1, 1]} : vector<16x384xf32> to vector<16x128xf32>
    %61 = vector.extract_strided_slice %59 {offsets = [0, 0], sizes = [16, 128], strides = [1, 1]} : vector<16x384xf32> to vector<16x128xf32>
    %62 = arith.addf %60, %61 : vector<16x128xf32>
    %63 = arith.negf %62 : vector<16x128xf32>
    %64 = math.exp %63 : vector<16x128xf32>
    %cst_29 = arith.constant 1.000000e+00 : f32
    %65 = vector.broadcast %cst_29 : f32 to vector<16x128xf32>
    %66 = arith.addf %65, %64 : vector<16x128xf32>
    %67 = arith.divf %65, %66 : vector<16x128xf32>
    %68 = vector.extract_strided_slice %57 {offsets = [0, 128], sizes = [16, 128], strides = [1, 1]} : vector<16x384xf32> to vector<16x128xf32>
    %69 = vector.extract_strided_slice %59 {offsets = [0, 128], sizes = [16, 128], strides = [1, 1]} : vector<16x384xf32> to vector<16x128xf32>
    %70 = arith.addf %68, %69 : vector<16x128xf32>
    %71 = arith.negf %70 : vector<16x128xf32>
    %72 = math.exp %71 : vector<16x128xf32>
    %cst_30 = arith.constant 1.000000e+00 : f32
    %73 = vector.broadcast %cst_30 : f32 to vector<16x128xf32>
    %74 = arith.addf %73, %72 : vector<16x128xf32>
    %75 = arith.divf %73, %74 : vector<16x128xf32>
    %76 = vector.extract_strided_slice %57 {offsets = [0, 256], sizes = [16, 128], strides = [1, 1]} : vector<16x384xf32> to vector<16x128xf32>
    %77 = vector.extract_strided_slice %59 {offsets = [0, 256], sizes = [16, 128], strides = [1, 1]} : vector<16x384xf32> to vector<16x128xf32>
    %78 = arith.addf %77, %15 : vector<16x128xf32>
    %79 = arith.mulf %67, %78 : vector<16x128xf32>
    %80 = arith.addf %76, %79 : vector<16x128xf32>
    %81 = math.tanh %80 : vector<16x128xf32>
    %cst_31 = arith.constant 1.000000e+00 : f32
    %82 = vector.broadcast %cst_31 : f32 to vector<16x128xf32>
    %83 = arith.subf %82, %75 : vector<16x128xf32>
    %84 = arith.mulf %83, %81 : vector<16x128xf32>
    %85 = arith.mulf %75, %49 : vector<16x128xf32>
    %86 = arith.addf %84, %85 : vector<16x128xf32>
    %87 = arith.truncf %86 : vector<16x128xf32> to vector<16x128xbf16>
    %88 = arith.index_cast %c1_i32 : i32 to index
    %c0_32 = arith.constant 0 : index
    %c0_33 = arith.constant 0 : index
    %89 = vector.load %arg16[%88, %c0_32, %c0_33] : memref<8x16x128xbf16, #tpu.memory_space<vmem>>, vector<1x16x128xbf16>
    %90 = vector.shape_cast %89 : vector<1x16x128xbf16> to vector<16x128xbf16>
    %91 = vector.shape_cast %87 : vector<16x128xbf16> to vector<1x16x128xbf16>
    tpu.vector_store %arg16[%88, %c0_32, %c0_33], %91 {strides = array<i32>} : memref<8x16x128xbf16, #tpu.memory_space<vmem>>, vector<1x16x128xbf16>,
    %c2_i32 = arith.constant 2 : i32
    %92 = arith.index_cast %c2_i32 : i32 to index
    %c0_34 = arith.constant 0 : index
    %c0_35 = arith.constant 0 : index
    %93 = vector.load %arg15[%92, %c0_34, %c0_35] : memref<8x16x384xf32, #tpu.memory_space<vmem>>, vector<1x16x384xf32>
    %94 = vector.shape_cast %93 : vector<1x16x384xf32> to vector<16x384xf32>
    %95 = arith.truncf %86 : vector<16x128xf32> to vector<16x128xbf16>
    %cst_36 = arith.constant dense<0.000000e+00> : vector<16x384xf32>
    %96 = tpu.matmul %95, %4, %cst_36 {dimension_numbers = #tpu.dot_dimension_numbers<[1], [0], [0], [1], [0, 0, 1, 1], [], []>} : vector<16x128xbf16>, vector<128x384xbf16>, vector<16x384xf32> -> vector<16x384xf32>
    %97 = vector.extract_strided_slice %94 {offsets = [0, 0], sizes = [16, 128], strides = [1, 1]} : vector<16x384xf32> to vector<16x128xf32>
    %98 = vector.extract_strided_slice %96 {offsets = [0, 0], sizes = [16, 128], strides = [1, 1]} : vector<16x384xf32> to vector<16x128xf32>
    %99 = arith.addf %97, %98 : vector<16x128xf32>
    %100 = arith.negf %99 : vector<16x128xf32>
    %101 = math.exp %100 : vector<16x128xf32>
    %cst_37 = arith.constant 1.000000e+00 : f32
    %102 = vector.broadcast %cst_37 : f32 to vector<16x128xf32>
    %103 = arith.addf %102, %101 : vector<16x128xf32>
    %104 = arith.divf %102, %103 : vector<16x128xf32>
    %105 = vector.extract_strided_slice %94 {offsets = [0, 128], sizes = [16, 128], strides = [1, 1]} : vector<16x384xf32> to vector<16x128xf32>
    %106 = vector.extract_strided_slice %96 {offsets = [0, 128], sizes = [16, 128], strides = [1, 1]} : vector<16x384xf32> to vector<16x128xf32>
    %107 = arith.addf %105, %106 : vector<16x128xf32>
    %108 = arith.negf %107 : vector<16x128xf32>
    %109 = math.exp %108 : vector<16x128xf32>
    %cst_38 = arith.constant 1.000000e+00 : f32
    %110 = vector.broadcast %cst_38 : f32 to vector<16x128xf32>
    %111 = arith.addf %110, %109 : vector<16x128xf32>
    %112 = arith.divf %110, %111 : vector<16x128xf32>
    %113 = vector.extract_strided_slice %94 {offsets = [0, 256], sizes = [16, 128], strides = [1, 1]} : vector<16x384xf32> to vector<16x128xf32>
    %114 = vector.extract_strided_slice %96 {offsets = [0, 256], sizes = [16, 128], strides = [1, 1]} : vector<16x384xf32> to vector<16x128xf32>
    %115 = arith.addf %114, %15 : vector<16x128xf32>
    %116 = arith.mulf %104, %115 : vector<16x128xf32>
    %117 = arith.addf %113, %116 : vector<16x128xf32>
    %118 = math.tanh %117 : vector<16x128xf32>
    %cst_39 = arith.constant 1.000000e+00 : f32
    %119 = vector.broadcast %cst_39 : f32 to vector<16x128xf32>
    %120 = arith.subf %119, %112 : vector<16x128xf32>
    %121 = arith.mulf %120, %118 : vector<16x128xf32>
    %122 = arith.mulf %112, %86 : vector<16x128xf32>
    %123 = arith.addf %121, %122 : vector<16x128xf32>
    %124 = arith.truncf %123 : vector<16x128xf32> to vector<16x128xbf16>
    %125 = arith.index_cast %c2_i32 : i32 to index
    %c0_40 = arith.constant 0 : index
    %c0_41 = arith.constant 0 : index
    %126 = vector.load %arg16[%125, %c0_40, %c0_41] : memref<8x16x128xbf16, #tpu.memory_space<vmem>>, vector<1x16x128xbf16>
    %127 = vector.shape_cast %126 : vector<1x16x128xbf16> to vector<16x128xbf16>
    %128 = vector.shape_cast %124 : vector<16x128xbf16> to vector<1x16x128xbf16>
    tpu.vector_store %arg16[%125, %c0_40, %c0_41], %128 {strides = array<i32>} : memref<8x16x128xbf16, #tpu.memory_space<vmem>>, vector<1x16x128xbf16>,
    %c3_i32 = arith.constant 3 : i32
    %129 = arith.index_cast %c3_i32 : i32 to index
    %c0_42 = arith.constant 0 : index
    %c0_43 = arith.constant 0 : index
    %130 = vector.load %arg15[%129, %c0_42, %c0_43] : memref<8x16x384xf32, #tpu.memory_space<vmem>>, vector<1x16x384xf32>
    %131 = vector.shape_cast %130 : vector<1x16x384xf32> to vector<16x384xf32>
    %132 = arith.truncf %123 : vector<16x128xf32> to vector<16x128xbf16>
    %cst_44 = arith.constant dense<0.000000e+00> : vector<16x384xf32>
    %133 = tpu.matmul %132, %4, %cst_44 {dimension_numbers = #tpu.dot_dimension_numbers<[1], [0], [0], [1], [0, 0, 1, 1], [], []>} : vector<16x128xbf16>, vector<128x384xbf16>, vector<16x384xf32> -> vector<16x384xf32>
    %134 = vector.extract_strided_slice %131 {offsets = [0, 0], sizes = [16, 128], strides = [1, 1]} : vector<16x384xf32> to vector<16x128xf32>
    %135 = vector.extract_strided_slice %133 {offsets = [0, 0], sizes = [16, 128], strides = [1, 1]} : vector<16x384xf32> to vector<16x128xf32>
    %136 = arith.addf %134, %135 : vector<16x128xf32>
    %137 = arith.negf %136 : vector<16x128xf32>
    %138 = math.exp %137 : vector<16x128xf32>
    %cst_45 = arith.constant 1.000000e+00 : f32
    %139 = vector.broadcast %cst_45 : f32 to vector<16x128xf32>
    %140 = arith.addf %139, %138 : vector<16x128xf32>
    %141 = arith.divf %139, %140 : vector<16x128xf32>
    %142 = vector.extract_strided_slice %131 {offsets = [0, 128], sizes = [16, 128], strides = [1, 1]} : vector<16x384xf32> to vector<16x128xf32>
    %143 = vector.extract_strided_slice %133 {offsets = [0, 128], sizes = [16, 128], strides = [1, 1]} : vector<16x384xf32> to vector<16x128xf32>
    %144 = arith.addf %142, %143 : vector<16x128xf32>
    %145 = arith.negf %144 : vector<16x128xf32>
    %146 = math.exp %145 : vector<16x128xf32>
    %cst_46 = arith.constant 1.000000e+00 : f32
    %147 = vector.broadcast %cst_46 : f32 to vector<16x128xf32>
    %148 = arith.addf %147, %146 : vector<16x128xf32>
    %149 = arith.divf %147, %148 : vector<16x128xf32>
    %150 = vector.extract_strided_slice %131 {offsets = [0, 256], sizes = [16, 128], strides = [1, 1]} : vector<16x384xf32> to vector<16x128xf32>
    %151 = vector.extract_strided_slice %133 {offsets = [0, 256], sizes = [16, 128], strides = [1, 1]} : vector<16x384xf32> to vector<16x128xf32>
    %152 = arith.addf %151, %15 : vector<16x128xf32>
    %153 = arith.mulf %141, %152 : vector<16x128xf32>
    %154 = arith.addf %150, %153 : vector<16x128xf32>
    %155 = math.tanh %154 : vector<16x128xf32>
    %cst_47 = arith.constant 1.000000e+00 : f32
    %156 = vector.broadcast %cst_47 : f32 to vector<16x128xf32>
    %157 = arith.subf %156, %149 : vector<16x128xf32>
    %158 = arith.mulf %157, %155 : vector<16x128xf32>
    %159 = arith.mulf %149, %123 : vector<16x128xf32>
    %160 = arith.addf %158, %159 : vector<16x128xf32>
    %161 = arith.truncf %160 : vector<16x128xf32> to vector<16x128xbf16>
    %162 = arith.index_cast %c3_i32 : i32 to index
    %c0_48 = arith.constant 0 : index
    %c0_49 = arith.constant 0 : index
    %163 = vector.load %arg16[%162, %c0_48, %c0_49] : memref<8x16x128xbf16, #tpu.memory_space<vmem>>, vector<1x16x128xbf16>
    %164 = vector.shape_cast %163 : vector<1x16x128xbf16> to vector<16x128xbf16>
    %165 = vector.shape_cast %161 : vector<16x128xbf16> to vector<1x16x128xbf16>
    tpu.vector_store %arg16[%162, %c0_48, %c0_49], %165 {strides = array<i32>} : memref<8x16x128xbf16, #tpu.memory_space<vmem>>, vector<1x16x128xbf16>,
    %c4_i32 = arith.constant 4 : i32
    %166 = arith.index_cast %c4_i32 : i32 to index
    %c0_50 = arith.constant 0 : index
    %c0_51 = arith.constant 0 : index
    %167 = vector.load %arg15[%166, %c0_50, %c0_51] : memref<8x16x384xf32, #tpu.memory_space<vmem>>, vector<1x16x384xf32>
    %168 = vector.shape_cast %167 : vector<1x16x384xf32> to vector<16x384xf32>
    %169 = arith.truncf %160 : vector<16x128xf32> to vector<16x128xbf16>
    %cst_52 = arith.constant dense<0.000000e+00> : vector<16x384xf32>
    %170 = tpu.matmul %169, %4, %cst_52 {dimension_numbers = #tpu.dot_dimension_numbers<[1], [0], [0], [1], [0, 0, 1, 1], [], []>} : vector<16x128xbf16>, vector<128x384xbf16>, vector<16x384xf32> -> vector<16x384xf32>
    %171 = vector.extract_strided_slice %168 {offsets = [0, 0], sizes = [16, 128], strides = [1, 1]} : vector<16x384xf32> to vector<16x128xf32>
    %172 = vector.extract_strided_slice %170 {offsets = [0, 0], sizes = [16, 128], strides = [1, 1]} : vector<16x384xf32> to vector<16x128xf32>
    %173 = arith.addf %171, %172 : vector<16x128xf32>
    %174 = arith.negf %173 : vector<16x128xf32>
    %175 = math.exp %174 : vector<16x128xf32>
    %cst_53 = arith.constant 1.000000e+00 : f32
    %176 = vector.broadcast %cst_53 : f32 to vector<16x128xf32>
    %177 = arith.addf %176, %175 : vector<16x128xf32>
    %178 = arith.divf %176, %177 : vector<16x128xf32>
    %179 = vector.extract_strided_slice %168 {offsets = [0, 128], sizes = [16, 128], strides = [1, 1]} : vector<16x384xf32> to vector<16x128xf32>
    %180 = vector.extract_strided_slice %170 {offsets = [0, 128], sizes = [16, 128], strides = [1, 1]} : vector<16x384xf32> to vector<16x128xf32>
    %181 = arith.addf %179, %180 : vector<16x128xf32>
    %182 = arith.negf %181 : vector<16x128xf32>
    %183 = math.exp %182 : vector<16x128xf32>
    %cst_54 = arith.constant 1.000000e+00 : f32
    %184 = vector.broadcast %cst_54 : f32 to vector<16x128xf32>
    %185 = arith.addf %184, %183 : vector<16x128xf32>
    %186 = arith.divf %184, %185 : vector<16x128xf32>
    %187 = vector.extract_strided_slice %168 {offsets = [0, 256], sizes = [16, 128], strides = [1, 1]} : vector<16x384xf32> to vector<16x128xf32>
    %188 = vector.extract_strided_slice %170 {offsets = [0, 256], sizes = [16, 128], strides = [1, 1]} : vector<16x384xf32> to vector<16x128xf32>
    %189 = arith.addf %188, %15 : vector<16x128xf32>
    %190 = arith.mulf %178, %189 : vector<16x128xf32>
    %191 = arith.addf %187, %190 : vector<16x128xf32>
    %192 = math.tanh %191 : vector<16x128xf32>
    %cst_55 = arith.constant 1.000000e+00 : f32
    %193 = vector.broadcast %cst_55 : f32 to vector<16x128xf32>
    %194 = arith.subf %193, %186 : vector<16x128xf32>
    %195 = arith.mulf %194, %192 : vector<16x128xf32>
    %196 = arith.mulf %186, %160 : vector<16x128xf32>
    %197 = arith.addf %195, %196 : vector<16x128xf32>
    %198 = arith.truncf %197 : vector<16x128xf32> to vector<16x128xbf16>
    %199 = arith.index_cast %c4_i32 : i32 to index
    %c0_56 = arith.constant 0 : index
    %c0_57 = arith.constant 0 : index
    %200 = vector.load %arg16[%199, %c0_56, %c0_57] : memref<8x16x128xbf16, #tpu.memory_space<vmem>>, vector<1x16x128xbf16>
    %201 = vector.shape_cast %200 : vector<1x16x128xbf16> to vector<16x128xbf16>
    %202 = vector.shape_cast %198 : vector<16x128xbf16> to vector<1x16x128xbf16>
    tpu.vector_store %arg16[%199, %c0_56, %c0_57], %202 {strides = array<i32>} : memref<8x16x128xbf16, #tpu.memory_space<vmem>>, vector<1x16x128xbf16>,
    %c5_i32 = arith.constant 5 : i32
    %203 = arith.index_cast %c5_i32 : i32 to index
    %c0_58 = arith.constant 0 : index
    %c0_59 = arith.constant 0 : index
    %204 = vector.load %arg15[%203, %c0_58, %c0_59] : memref<8x16x384xf32, #tpu.memory_space<vmem>>, vector<1x16x384xf32>
    %205 = vector.shape_cast %204 : vector<1x16x384xf32> to vector<16x384xf32>
    %206 = arith.truncf %197 : vector<16x128xf32> to vector<16x128xbf16>
    %cst_60 = arith.constant dense<0.000000e+00> : vector<16x384xf32>
    %207 = tpu.matmul %206, %4, %cst_60 {dimension_numbers = #tpu.dot_dimension_numbers<[1], [0], [0], [1], [0, 0, 1, 1], [], []>} : vector<16x128xbf16>, vector<128x384xbf16>, vector<16x384xf32> -> vector<16x384xf32>
    %208 = vector.extract_strided_slice %205 {offsets = [0, 0], sizes = [16, 128], strides = [1, 1]} : vector<16x384xf32> to vector<16x128xf32>
    %209 = vector.extract_strided_slice %207 {offsets = [0, 0], sizes = [16, 128], strides = [1, 1]} : vector<16x384xf32> to vector<16x128xf32>
    %210 = arith.addf %208, %209 : vector<16x128xf32>
    %211 = arith.negf %210 : vector<16x128xf32>
    %212 = math.exp %211 : vector<16x128xf32>
    %cst_61 = arith.constant 1.000000e+00 : f32
    %213 = vector.broadcast %cst_61 : f32 to vector<16x128xf32>
    %214 = arith.addf %213, %212 : vector<16x128xf32>
    %215 = arith.divf %213, %214 : vector<16x128xf32>
    %216 = vector.extract_strided_slice %205 {offsets = [0, 128], sizes = [16, 128], strides = [1, 1]} : vector<16x384xf32> to vector<16x128xf32>
    %217 = vector.extract_strided_slice %207 {offsets = [0, 128], sizes = [16, 128], strides = [1, 1]} : vector<16x384xf32> to vector<16x128xf32>
    %218 = arith.addf %216, %217 : vector<16x128xf32>
    %219 = arith.negf %218 : vector<16x128xf32>
    %220 = math.exp %219 : vector<16x128xf32>
    %cst_62 = arith.constant 1.000000e+00 : f32
    %221 = vector.broadcast %cst_62 : f32 to vector<16x128xf32>
    %222 = arith.addf %221, %220 : vector<16x128xf32>
    %223 = arith.divf %221, %222 : vector<16x128xf32>
    %224 = vector.extract_strided_slice %205 {offsets = [0, 256], sizes = [16, 128], strides = [1, 1]} : vector<16x384xf32> to vector<16x128xf32>
    %225 = vector.extract_strided_slice %207 {offsets = [0, 256], sizes = [16, 128], strides = [1, 1]} : vector<16x384xf32> to vector<16x128xf32>
    %226 = arith.addf %225, %15 : vector<16x128xf32>
    %227 = arith.mulf %215, %226 : vector<16x128xf32>
    %228 = arith.addf %224, %227 : vector<16x128xf32>
    %229 = math.tanh %228 : vector<16x128xf32>
    %cst_63 = arith.constant 1.000000e+00 : f32
    %230 = vector.broadcast %cst_63 : f32 to vector<16x128xf32>
    %231 = arith.subf %230, %223 : vector<16x128xf32>
    %232 = arith.mulf %231, %229 : vector<16x128xf32>
    %233 = arith.mulf %223, %197 : vector<16x128xf32>
    %234 = arith.addf %232, %233 : vector<16x128xf32>
    %235 = arith.truncf %234 : vector<16x128xf32> to vector<16x128xbf16>
    %236 = arith.index_cast %c5_i32 : i32 to index
    %c0_64 = arith.constant 0 : index
    %c0_65 = arith.constant 0 : index
    %237 = vector.load %arg16[%236, %c0_64, %c0_65] : memref<8x16x128xbf16, #tpu.memory_space<vmem>>, vector<1x16x128xbf16>
    %238 = vector.shape_cast %237 : vector<1x16x128xbf16> to vector<16x128xbf16>
    %239 = vector.shape_cast %235 : vector<16x128xbf16> to vector<1x16x128xbf16>
    tpu.vector_store %arg16[%236, %c0_64, %c0_65], %239 {strides = array<i32>} : memref<8x16x128xbf16, #tpu.memory_space<vmem>>, vector<1x16x128xbf16>,
    %c6_i32 = arith.constant 6 : i32
    %240 = arith.index_cast %c6_i32 : i32 to index
    %c0_66 = arith.constant 0 : index
    %c0_67 = arith.constant 0 : index
    %241 = vector.load %arg15[%240, %c0_66, %c0_67] : memref<8x16x384xf32, #tpu.memory_space<vmem>>, vector<1x16x384xf32>
    %242 = vector.shape_cast %241 : vector<1x16x384xf32> to vector<16x384xf32>
    %243 = arith.truncf %234 : vector<16x128xf32> to vector<16x128xbf16>
    %cst_68 = arith.constant dense<0.000000e+00> : vector<16x384xf32>
    %244 = tpu.matmul %243, %4, %cst_68 {dimension_numbers = #tpu.dot_dimension_numbers<[1], [0], [0], [1], [0, 0, 1, 1], [], []>} : vector<16x128xbf16>, vector<128x384xbf16>, vector<16x384xf32> -> vector<16x384xf32>
    %245 = vector.extract_strided_slice %242 {offsets = [0, 0], sizes = [16, 128], strides = [1, 1]} : vector<16x384xf32> to vector<16x128xf32>
    %246 = vector.extract_strided_slice %244 {offsets = [0, 0], sizes = [16, 128], strides = [1, 1]} : vector<16x384xf32> to vector<16x128xf32>
    %247 = arith.addf %245, %246 : vector<16x128xf32>
    %248 = arith.negf %247 : vector<16x128xf32>
    %249 = math.exp %248 : vector<16x128xf32>
    %cst_69 = arith.constant 1.000000e+00 : f32
    %250 = vector.broadcast %cst_69 : f32 to vector<16x128xf32>
    %251 = arith.addf %250, %249 : vector<16x128xf32>
    %252 = arith.divf %250, %251 : vector<16x128xf32>
    %253 = vector.extract_strided_slice %242 {offsets = [0, 128], sizes = [16, 128], strides = [1, 1]} : vector<16x384xf32> to vector<16x128xf32>
    %254 = vector.extract_strided_slice %244 {offsets = [0, 128], sizes = [16, 128], strides = [1, 1]} : vector<16x384xf32> to vector<16x128xf32>
    %255 = arith.addf %253, %254 : vector<16x128xf32>
    %256 = arith.negf %255 : vector<16x128xf32>
    %257 = math.exp %256 : vector<16x128xf32>
    %cst_70 = arith.constant 1.000000e+00 : f32
    %258 = vector.broadcast %cst_70 : f32 to vector<16x128xf32>
    %259 = arith.addf %258, %257 : vector<16x128xf32>
    %260 = arith.divf %258, %259 : vector<16x128xf32>
    %261 = vector.extract_strided_slice %242 {offsets = [0, 256], sizes = [16, 128], strides = [1, 1]} : vector<16x384xf32> to vector<16x128xf32>
    %262 = vector.extract_strided_slice %244 {offsets = [0, 256], sizes = [16, 128], strides = [1, 1]} : vector<16x384xf32> to vector<16x128xf32>
    %263 = arith.addf %262, %15 : vector<16x128xf32>
    %264 = arith.mulf %252, %263 : vector<16x128xf32>
    %265 = arith.addf %261, %264 : vector<16x128xf32>
    %266 = math.tanh %265 : vector<16x128xf32>
    %cst_71 = arith.constant 1.000000e+00 : f32
    %267 = vector.broadcast %cst_71 : f32 to vector<16x128xf32>
    %268 = arith.subf %267, %260 : vector<16x128xf32>
    %269 = arith.mulf %268, %266 : vector<16x128xf32>
    %270 = arith.mulf %260, %234 : vector<16x128xf32>
    %271 = arith.addf %269, %270 : vector<16x128xf32>
    %272 = arith.truncf %271 : vector<16x128xf32> to vector<16x128xbf16>
    %273 = arith.index_cast %c6_i32 : i32 to index
    %c0_72 = arith.constant 0 : index
    %c0_73 = arith.constant 0 : index
    %274 = vector.load %arg16[%273, %c0_72, %c0_73] : memref<8x16x128xbf16, #tpu.memory_space<vmem>>, vector<1x16x128xbf16>
    %275 = vector.shape_cast %274 : vector<1x16x128xbf16> to vector<16x128xbf16>
    %276 = vector.shape_cast %272 : vector<16x128xbf16> to vector<1x16x128xbf16>
    tpu.vector_store %arg16[%273, %c0_72, %c0_73], %276 {strides = array<i32>} : memref<8x16x128xbf16, #tpu.memory_space<vmem>>, vector<1x16x128xbf16>,
    %c7_i32 = arith.constant 7 : i32
    %277 = arith.index_cast %c7_i32 : i32 to index
    %c0_74 = arith.constant 0 : index
    %c0_75 = arith.constant 0 : index
    %278 = vector.load %arg15[%277, %c0_74, %c0_75] : memref<8x16x384xf32, #tpu.memory_space<vmem>>, vector<1x16x384xf32>
    %279 = vector.shape_cast %278 : vector<1x16x384xf32> to vector<16x384xf32>
    %280 = arith.truncf %271 : vector<16x128xf32> to vector<16x128xbf16>
    %cst_76 = arith.constant dense<0.000000e+00> : vector<16x384xf32>
    %281 = tpu.matmul %280, %4, %cst_76 {dimension_numbers = #tpu.dot_dimension_numbers<[1], [0], [0], [1], [0, 0, 1, 1], [], []>} : vector<16x128xbf16>, vector<128x384xbf16>, vector<16x384xf32> -> vector<16x384xf32>
    %282 = vector.extract_strided_slice %279 {offsets = [0, 0], sizes = [16, 128], strides = [1, 1]} : vector<16x384xf32> to vector<16x128xf32>
    %283 = vector.extract_strided_slice %281 {offsets = [0, 0], sizes = [16, 128], strides = [1, 1]} : vector<16x384xf32> to vector<16x128xf32>
    %284 = arith.addf %282, %283 : vector<16x128xf32>
    %285 = arith.negf %284 : vector<16x128xf32>
    %286 = math.exp %285 : vector<16x128xf32>
    %cst_77 = arith.constant 1.000000e+00 : f32
    %287 = vector.broadcast %cst_77 : f32 to vector<16x128xf32>
    %288 = arith.addf %287, %286 : vector<16x128xf32>
    %289 = arith.divf %287, %288 : vector<16x128xf32>
    %290 = vector.extract_strided_slice %279 {offsets = [0, 128], sizes = [16, 128], strides = [1, 1]} : vector<16x384xf32> to vector<16x128xf32>
    %291 = vector.extract_strided_slice %281 {offsets = [0, 128], sizes = [16, 128], strides = [1, 1]} : vector<16x384xf32> to vector<16x128xf32>
    %292 = arith.addf %290, %291 : vector<16x128xf32>
    %293 = arith.negf %292 : vector<16x128xf32>
    %294 = math.exp %293 : vector<16x128xf32>
    %cst_78 = arith.constant 1.000000e+00 : f32
    %295 = vector.broadcast %cst_78 : f32 to vector<16x128xf32>
    %296 = arith.addf %295, %294 : vector<16x128xf32>
    %297 = arith.divf %295, %296 : vector<16x128xf32>
    %298 = vector.extract_strided_slice %279 {offsets = [0, 256], sizes = [16, 128], strides = [1, 1]} : vector<16x384xf32> to vector<16x128xf32>
    %299 = vector.extract_strided_slice %281 {offsets = [0, 256], sizes = [16, 128], strides = [1, 1]} : vector<16x384xf32> to vector<16x128xf32>
    %300 = arith.addf %299, %15 : vector<16x128xf32>
    %301 = arith.mulf %289, %300 : vector<16x128xf32>
    %302 = arith.addf %298, %301 : vector<16x128xf32>
    %303 = math.tanh %302 : vector<16x128xf32>
    %cst_79 = arith.constant 1.000000e+00 : f32
    %304 = vector.broadcast %cst_79 : f32 to vector<16x128xf32>
    %305 = arith.subf %304, %297 : vector<16x128xf32>
    %306 = arith.mulf %305, %303 : vector<16x128xf32>
    %307 = arith.mulf %297, %271 : vector<16x128xf32>
    %308 = arith.addf %306, %307 : vector<16x128xf32>
    %309 = arith.truncf %308 : vector<16x128xf32> to vector<16x128xbf16>
    %310 = arith.index_cast %c7_i32 : i32 to index
    %c0_80 = arith.constant 0 : index
    %c0_81 = arith.constant 0 : index
    %311 = vector.load %arg16[%310, %c0_80, %c0_81] : memref<8x16x128xbf16, #tpu.memory_space<vmem>>, vector<1x16x128xbf16>
    %312 = vector.shape_cast %311 : vector<1x16x128xbf16> to vector<16x128xbf16>
    %313 = vector.shape_cast %309 : vector<16x128xbf16> to vector<1x16x128xbf16>
    tpu.vector_store %arg16[%310, %c0_80, %c0_81], %313 {strides = array<i32>} : memref<8x16x128xbf16, #tpu.memory_space<vmem>>, vector<1x16x128xbf16>,
    %c8_i32 = arith.constant 8 : i32
    %c0_82 = arith.constant 0 : index
    %c0_83 = arith.constant 0 : index
    %c0_84 = arith.constant 0 : index
    %314 = vector.load %arg14[%c0_82, %c0_83, %c0_84] : memref<2x16x128xf32, #tpu.memory_space<vmem>>, vector<1x16x128xf32>
    %315 = vector.shape_cast %314 : vector<1x16x128xf32> to vector<16x128xf32>
    %316 = vector.shape_cast %308 : vector<16x128xf32> to vector<1x16x128xf32>
    tpu.vector_store %arg14[%c0_82, %c0_83, %c0_84], %316 {strides = array<i32>} : memref<2x16x128xf32, #tpu.memory_space<vmem>>, vector<1x16x128xf32>,
    %c0_85 = arith.constant 0 : index
    %c0_86 = arith.constant 0 : index
    %317 = vector.load %arg7[%c0_85, %c0_86] : memref<128x384xbf16, #tpu.memory_space<vmem>>, vector<128x384xbf16>
    %c0_87 = arith.constant 0 : index
    %c0_88 = arith.constant 0 : index
    %318 = vector.load %arg8[%c0_87, %c0_88] : memref<128x384xbf16, #tpu.memory_space<vmem>>, vector<128x384xbf16>
    %c0_89 = arith.constant 0 : index
    %c0_90 = arith.constant 0 : index
    %319 = vector.load %arg9[%c0_89, %c0_90] : memref<1x384xf32, #tpu.memory_space<vmem>>, vector<1x384xf32>
    %c0_91 = arith.constant 0 : index
    %c0_92 = arith.constant 0 : index
    %320 = vector.load %arg10[%c0_91, %c0_92] : memref<1x128xf32, #tpu.memory_space<vmem>>, vector<1x128xf32>
    %c0_93 = arith.constant 0 : index
    %c0_94 = arith.constant 0 : index
    %c0_95 = arith.constant 0 : index
    %321 = vector.load %arg16[%c0_93, %c0_94, %c0_95] : memref<8x16x128xbf16, #tpu.memory_space<vmem>>, vector<8x16x128xbf16>
    %322 = vector.shape_cast %321 : vector<8x16x128xbf16> to vector<128x128xbf16>
    %cst_96 = arith.constant dense<0.000000e+00> : vector<128x384xf32>
    %323 = tpu.matmul %322, %317, %cst_96 {dimension_numbers = #tpu.dot_dimension_numbers<[1], [0], [0], [1], [0, 0, 1, 1], [], []>} : vector<128x128xbf16>, vector<128x384xbf16>, vector<128x384xf32> -> vector<128x384xf32>
    %324 = vector.broadcast %319 : vector<1x384xf32> to vector<128x384xf32>
    %325 = arith.addf %323, %324 : vector<128x384xf32>
    %326 = vector.shape_cast %325 : vector<128x384xf32> to vector<8x16x384xf32>
    %c0_97 = arith.constant 0 : index
    %c0_98 = arith.constant 0 : index
    %c0_99 = arith.constant 0 : index
    %327 = vector.load %arg15[%c0_97, %c0_98, %c0_99] : memref<8x16x384xf32, #tpu.memory_space<vmem>>, vector<8x16x384xf32>
    tpu.vector_store %arg15[%c0_97, %c0_98, %c0_99], %326 {strides = array<i32>} : memref<8x16x384xf32, #tpu.memory_space<vmem>>, vector<8x16x384xf32>,
    %328 = vector.shape_cast %320 : vector<1x128xf32> to vector<1x128xf32>
    %329 = vector.broadcast %328 : vector<1x128xf32> to vector<16x128xf32>
    %c1 = arith.constant 1 : index
    %c0_100 = arith.constant 0 : index
    %c0_101 = arith.constant 0 : index
    %330 = vector.load %arg14[%c1, %c0_100, %c0_101] : memref<2x16x128xf32, #tpu.memory_space<vmem>>, vector<1x16x128xf32>
    %331 = vector.shape_cast %330 : vector<1x16x128xf32> to vector<16x128xf32>
    %c0_i32_102 = arith.constant 0 : i32
    %332 = arith.index_cast %c0_i32_102 : i32 to index
    %c0_103 = arith.constant 0 : index
    %c0_104 = arith.constant 0 : index
    %333 = vector.load %arg15[%332, %c0_103, %c0_104] : memref<8x16x384xf32, #tpu.memory_space<vmem>>, vector<1x16x384xf32>
    %334 = vector.shape_cast %333 : vector<1x16x384xf32> to vector<16x384xf32>
    %335 = arith.truncf %331 : vector<16x128xf32> to vector<16x128xbf16>
    %cst_105 = arith.constant dense<0.000000e+00> : vector<16x384xf32>
    %336 = tpu.matmul %335, %318, %cst_105 {dimension_numbers = #tpu.dot_dimension_numbers<[1], [0], [0], [1], [0, 0, 1, 1], [], []>} : vector<16x128xbf16>, vector<128x384xbf16>, vector<16x384xf32> -> vector<16x384xf32>
    %337 = vector.extract_strided_slice %334 {offsets = [0, 0], sizes = [16, 128], strides = [1, 1]} : vector<16x384xf32> to vector<16x128xf32>
    %338 = vector.extract_strided_slice %336 {offsets = [0, 0], sizes = [16, 128], strides = [1, 1]} : vector<16x384xf32> to vector<16x128xf32>
    %339 = arith.addf %337, %338 : vector<16x128xf32>
    %340 = arith.negf %339 : vector<16x128xf32>
    %341 = math.exp %340 : vector<16x128xf32>
    %cst_106 = arith.constant 1.000000e+00 : f32
    %342 = vector.broadcast %cst_106 : f32 to vector<16x128xf32>
    %343 = arith.addf %342, %341 : vector<16x128xf32>
    %344 = arith.divf %342, %343 : vector<16x128xf32>
    %345 = vector.extract_strided_slice %334 {offsets = [0, 128], sizes = [16, 128], strides = [1, 1]} : vector<16x384xf32> to vector<16x128xf32>
    %346 = vector.extract_strided_slice %336 {offsets = [0, 128], sizes = [16, 128], strides = [1, 1]} : vector<16x384xf32> to vector<16x128xf32>
    %347 = arith.addf %345, %346 : vector<16x128xf32>
    %348 = arith.negf %347 : vector<16x128xf32>
    %349 = math.exp %348 : vector<16x128xf32>
    %cst_107 = arith.constant 1.000000e+00 : f32
    %350 = vector.broadcast %cst_107 : f32 to vector<16x128xf32>
    %351 = arith.addf %350, %349 : vector<16x128xf32>
    %352 = arith.divf %350, %351 : vector<16x128xf32>
    %353 = vector.extract_strided_slice %334 {offsets = [0, 256], sizes = [16, 128], strides = [1, 1]} : vector<16x384xf32> to vector<16x128xf32>
    %354 = vector.extract_strided_slice %336 {offsets = [0, 256], sizes = [16, 128], strides = [1, 1]} : vector<16x384xf32> to vector<16x128xf32>
    %355 = arith.addf %354, %329 : vector<16x128xf32>
    %356 = arith.mulf %344, %355 : vector<16x128xf32>
    %357 = arith.addf %353, %356 : vector<16x128xf32>
    %358 = math.tanh %357 : vector<16x128xf32>
    %cst_108 = arith.constant 1.000000e+00 : f32
    %359 = vector.broadcast %cst_108 : f32 to vector<16x128xf32>
    %360 = arith.subf %359, %352 : vector<16x128xf32>
    %361 = arith.mulf %360, %358 : vector<16x128xf32>
    %362 = arith.mulf %352, %331 : vector<16x128xf32>
    %363 = arith.addf %361, %362 : vector<16x128xf32>
    %c1_i32_109 = arith.constant 1 : i32
    %364 = arith.index_cast %c1_i32_109 : i32 to index
    %c0_110 = arith.constant 0 : index
    %c0_111 = arith.constant 0 : index
    %365 = vector.load %arg15[%364, %c0_110, %c0_111] : memref<8x16x384xf32, #tpu.memory_space<vmem>>, vector<1x16x384xf32>
    %366 = vector.shape_cast %365 : vector<1x16x384xf32> to vector<16x384xf32>
    %367 = arith.truncf %363 : vector<16x128xf32> to vector<16x128xbf16>
    %cst_112 = arith.constant dense<0.000000e+00> : vector<16x384xf32>
    %368 = tpu.matmul %367, %318, %cst_112 {dimension_numbers = #tpu.dot_dimension_numbers<[1], [0], [0], [1], [0, 0, 1, 1], [], []>} : vector<16x128xbf16>, vector<128x384xbf16>, vector<16x384xf32> -> vector<16x384xf32>
    %369 = vector.extract_strided_slice %366 {offsets = [0, 0], sizes = [16, 128], strides = [1, 1]} : vector<16x384xf32> to vector<16x128xf32>
    %370 = vector.extract_strided_slice %368 {offsets = [0, 0], sizes = [16, 128], strides = [1, 1]} : vector<16x384xf32> to vector<16x128xf32>
    %371 = arith.addf %369, %370 : vector<16x128xf32>
    %372 = arith.negf %371 : vector<16x128xf32>
    %373 = math.exp %372 : vector<16x128xf32>
    %cst_113 = arith.constant 1.000000e+00 : f32
    %374 = vector.broadcast %cst_113 : f32 to vector<16x128xf32>
    %375 = arith.addf %374, %373 : vector<16x128xf32>
    %376 = arith.divf %374, %375 : vector<16x128xf32>
    %377 = vector.extract_strided_slice %366 {offsets = [0, 128], sizes = [16, 128], strides = [1, 1]} : vector<16x384xf32> to vector<16x128xf32>
    %378 = vector.extract_strided_slice %368 {offsets = [0, 128], sizes = [16, 128], strides = [1, 1]} : vector<16x384xf32> to vector<16x128xf32>
    %379 = arith.addf %377, %378 : vector<16x128xf32>
    %380 = arith.negf %379 : vector<16x128xf32>
    %381 = math.exp %380 : vector<16x128xf32>
    %cst_114 = arith.constant 1.000000e+00 : f32
    %382 = vector.broadcast %cst_114 : f32 to vector<16x128xf32>
    %383 = arith.addf %382, %381 : vector<16x128xf32>
    %384 = arith.divf %382, %383 : vector<16x128xf32>
    %385 = vector.extract_strided_slice %366 {offsets = [0, 256], sizes = [16, 128], strides = [1, 1]} : vector<16x384xf32> to vector<16x128xf32>
    %386 = vector.extract_strided_slice %368 {offsets = [0, 256], sizes = [16, 128], strides = [1, 1]} : vector<16x384xf32> to vector<16x128xf32>
    %387 = arith.addf %386, %329 : vector<16x128xf32>
    %388 = arith.mulf %376, %387 : vector<16x128xf32>
    %389 = arith.addf %385, %388 : vector<16x128xf32>
    %390 = math.tanh %389 : vector<16x128xf32>
    %cst_115 = arith.constant 1.000000e+00 : f32
    %391 = vector.broadcast %cst_115 : f32 to vector<16x128xf32>
    %392 = arith.subf %391, %384 : vector<16x128xf32>
    %393 = arith.mulf %392, %390 : vector<16x128xf32>
    %394 = arith.mulf %384, %363 : vector<16x128xf32>
    %395 = arith.addf %393, %394 : vector<16x128xf32>
    %c2_i32_116 = arith.constant 2 : i32
    %396 = arith.index_cast %c2_i32_116 : i32 to index
    %c0_117 = arith.constant 0 : index
    %c0_118 = arith.constant 0 : index
    %397 = vector.load %arg15[%396, %c0_117, %c0_118] : memref<8x16x384xf32, #tpu.memory_space<vmem>>, vector<1x16x384xf32>
    %398 = vector.shape_cast %397 : vector<1x16x384xf32> to vector<16x384xf32>
    %399 = arith.truncf %395 : vector<16x128xf32> to vector<16x128xbf16>
    %cst_119 = arith.constant dense<0.000000e+00> : vector<16x384xf32>
    %400 = tpu.matmul %399, %318, %cst_119 {dimension_numbers = #tpu.dot_dimension_numbers<[1], [0], [0], [1], [0, 0, 1, 1], [], []>} : vector<16x128xbf16>, vector<128x384xbf16>, vector<16x384xf32> -> vector<16x384xf32>
    %401 = vector.extract_strided_slice %398 {offsets = [0, 0], sizes = [16, 128], strides = [1, 1]} : vector<16x384xf32> to vector<16x128xf32>
    %402 = vector.extract_strided_slice %400 {offsets = [0, 0], sizes = [16, 128], strides = [1, 1]} : vector<16x384xf32> to vector<16x128xf32>
    %403 = arith.addf %401, %402 : vector<16x128xf32>
    %404 = arith.negf %403 : vector<16x128xf32>
    %405 = math.exp %404 : vector<16x128xf32>
    %cst_120 = arith.constant 1.000000e+00 : f32
    %406 = vector.broadcast %cst_120 : f32 to vector<16x128xf32>
    %407 = arith.addf %406, %405 : vector<16x128xf32>
    %408 = arith.divf %406, %407 : vector<16x128xf32>
    %409 = vector.extract_strided_slice %398 {offsets = [0, 128], sizes = [16, 128], strides = [1, 1]} : vector<16x384xf32> to vector<16x128xf32>
    %410 = vector.extract_strided_slice %400 {offsets = [0, 128], sizes = [16, 128], strides = [1, 1]} : vector<16x384xf32> to vector<16x128xf32>
    %411 = arith.addf %409, %410 : vector<16x128xf32>
    %412 = arith.negf %411 : vector<16x128xf32>
    %413 = math.exp %412 : vector<16x128xf32>
    %cst_121 = arith.constant 1.000000e+00 : f32
    %414 = vector.broadcast %cst_121 : f32 to vector<16x128xf32>
    %415 = arith.addf %414, %413 : vector<16x128xf32>
    %416 = arith.divf %414, %415 : vector<16x128xf32>
    %417 = vector.extract_strided_slice %398 {offsets = [0, 256], sizes = [16, 128], strides = [1, 1]} : vector<16x384xf32> to vector<16x128xf32>
    %418 = vector.extract_strided_slice %400 {offsets = [0, 256], sizes = [16, 128], strides = [1, 1]} : vector<16x384xf32> to vector<16x128xf32>
    %419 = arith.addf %418, %329 : vector<16x128xf32>
    %420 = arith.mulf %408, %419 : vector<16x128xf32>
    %421 = arith.addf %417, %420 : vector<16x128xf32>
    %422 = math.tanh %421 : vector<16x128xf32>
    %cst_122 = arith.constant 1.000000e+00 : f32
    %423 = vector.broadcast %cst_122 : f32 to vector<16x128xf32>
    %424 = arith.subf %423, %416 : vector<16x128xf32>
    %425 = arith.mulf %424, %422 : vector<16x128xf32>
    %426 = arith.mulf %416, %395 : vector<16x128xf32>
    %427 = arith.addf %425, %426 : vector<16x128xf32>
    %c3_i32_123 = arith.constant 3 : i32
    %428 = arith.index_cast %c3_i32_123 : i32 to index
    %c0_124 = arith.constant 0 : index
    %c0_125 = arith.constant 0 : index
    %429 = vector.load %arg15[%428, %c0_124, %c0_125] : memref<8x16x384xf32, #tpu.memory_space<vmem>>, vector<1x16x384xf32>
    %430 = vector.shape_cast %429 : vector<1x16x384xf32> to vector<16x384xf32>
    %431 = arith.truncf %427 : vector<16x128xf32> to vector<16x128xbf16>
    %cst_126 = arith.constant dense<0.000000e+00> : vector<16x384xf32>
    %432 = tpu.matmul %431, %318, %cst_126 {dimension_numbers = #tpu.dot_dimension_numbers<[1], [0], [0], [1], [0, 0, 1, 1], [], []>} : vector<16x128xbf16>, vector<128x384xbf16>, vector<16x384xf32> -> vector<16x384xf32>
    %433 = vector.extract_strided_slice %430 {offsets = [0, 0], sizes = [16, 128], strides = [1, 1]} : vector<16x384xf32> to vector<16x128xf32>
    %434 = vector.extract_strided_slice %432 {offsets = [0, 0], sizes = [16, 128], strides = [1, 1]} : vector<16x384xf32> to vector<16x128xf32>
    %435 = arith.addf %433, %434 : vector<16x128xf32>
    %436 = arith.negf %435 : vector<16x128xf32>
    %437 = math.exp %436 : vector<16x128xf32>
    %cst_127 = arith.constant 1.000000e+00 : f32
    %438 = vector.broadcast %cst_127 : f32 to vector<16x128xf32>
    %439 = arith.addf %438, %437 : vector<16x128xf32>
    %440 = arith.divf %438, %439 : vector<16x128xf32>
    %441 = vector.extract_strided_slice %430 {offsets = [0, 128], sizes = [16, 128], strides = [1, 1]} : vector<16x384xf32> to vector<16x128xf32>
    %442 = vector.extract_strided_slice %432 {offsets = [0, 128], sizes = [16, 128], strides = [1, 1]} : vector<16x384xf32> to vector<16x128xf32>
    %443 = arith.addf %441, %442 : vector<16x128xf32>
    %444 = arith.negf %443 : vector<16x128xf32>
    %445 = math.exp %444 : vector<16x128xf32>
    %cst_128 = arith.constant 1.000000e+00 : f32
    %446 = vector.broadcast %cst_128 : f32 to vector<16x128xf32>
    %447 = arith.addf %446, %445 : vector<16x128xf32>
    %448 = arith.divf %446, %447 : vector<16x128xf32>
    %449 = vector.extract_strided_slice %430 {offsets = [0, 256], sizes = [16, 128], strides = [1, 1]} : vector<16x384xf32> to vector<16x128xf32>
    %450 = vector.extract_strided_slice %432 {offsets = [0, 256], sizes = [16, 128], strides = [1, 1]} : vector<16x384xf32> to vector<16x128xf32>
    %451 = arith.addf %450, %329 : vector<16x128xf32>
    %452 = arith.mulf %440, %451 : vector<16x128xf32>
    %453 = arith.addf %449, %452 : vector<16x128xf32>
    %454 = math.tanh %453 : vector<16x128xf32>
    %cst_129 = arith.constant 1.000000e+00 : f32
    %455 = vector.broadcast %cst_129 : f32 to vector<16x128xf32>
    %456 = arith.subf %455, %448 : vector<16x128xf32>
    %457 = arith.mulf %456, %454 : vector<16x128xf32>
    %458 = arith.mulf %448, %427 : vector<16x128xf32>
    %459 = arith.addf %457, %458 : vector<16x128xf32>
    %c4_i32_130 = arith.constant 4 : i32
    %460 = arith.index_cast %c4_i32_130 : i32 to index
    %c0_131 = arith.constant 0 : index
    %c0_132 = arith.constant 0 : index
    %461 = vector.load %arg15[%460, %c0_131, %c0_132] : memref<8x16x384xf32, #tpu.memory_space<vmem>>, vector<1x16x384xf32>
    %462 = vector.shape_cast %461 : vector<1x16x384xf32> to vector<16x384xf32>
    %463 = arith.truncf %459 : vector<16x128xf32> to vector<16x128xbf16>
    %cst_133 = arith.constant dense<0.000000e+00> : vector<16x384xf32>
    %464 = tpu.matmul %463, %318, %cst_133 {dimension_numbers = #tpu.dot_dimension_numbers<[1], [0], [0], [1], [0, 0, 1, 1], [], []>} : vector<16x128xbf16>, vector<128x384xbf16>, vector<16x384xf32> -> vector<16x384xf32>
    %465 = vector.extract_strided_slice %462 {offsets = [0, 0], sizes = [16, 128], strides = [1, 1]} : vector<16x384xf32> to vector<16x128xf32>
    %466 = vector.extract_strided_slice %464 {offsets = [0, 0], sizes = [16, 128], strides = [1, 1]} : vector<16x384xf32> to vector<16x128xf32>
    %467 = arith.addf %465, %466 : vector<16x128xf32>
    %468 = arith.negf %467 : vector<16x128xf32>
    %469 = math.exp %468 : vector<16x128xf32>
    %cst_134 = arith.constant 1.000000e+00 : f32
    %470 = vector.broadcast %cst_134 : f32 to vector<16x128xf32>
    %471 = arith.addf %470, %469 : vector<16x128xf32>
    %472 = arith.divf %470, %471 : vector<16x128xf32>
    %473 = vector.extract_strided_slice %462 {offsets = [0, 128], sizes = [16, 128], strides = [1, 1]} : vector<16x384xf32> to vector<16x128xf32>
    %474 = vector.extract_strided_slice %464 {offsets = [0, 128], sizes = [16, 128], strides = [1, 1]} : vector<16x384xf32> to vector<16x128xf32>
    %475 = arith.addf %473, %474 : vector<16x128xf32>
    %476 = arith.negf %475 : vector<16x128xf32>
    %477 = math.exp %476 : vector<16x128xf32>
    %cst_135 = arith.constant 1.000000e+00 : f32
    %478 = vector.broadcast %cst_135 : f32 to vector<16x128xf32>
    %479 = arith.addf %478, %477 : vector<16x128xf32>
    %480 = arith.divf %478, %479 : vector<16x128xf32>
    %481 = vector.extract_strided_slice %462 {offsets = [0, 256], sizes = [16, 128], strides = [1, 1]} : vector<16x384xf32> to vector<16x128xf32>
    %482 = vector.extract_strided_slice %464 {offsets = [0, 256], sizes = [16, 128], strides = [1, 1]} : vector<16x384xf32> to vector<16x128xf32>
    %483 = arith.addf %482, %329 : vector<16x128xf32>
    %484 = arith.mulf %472, %483 : vector<16x128xf32>
    %485 = arith.addf %481, %484 : vector<16x128xf32>
    %486 = math.tanh %485 : vector<16x128xf32>
    %cst_136 = arith.constant 1.000000e+00 : f32
    %487 = vector.broadcast %cst_136 : f32 to vector<16x128xf32>
    %488 = arith.subf %487, %480 : vector<16x128xf32>
    %489 = arith.mulf %488, %486 : vector<16x128xf32>
    %490 = arith.mulf %480, %459 : vector<16x128xf32>
    %491 = arith.addf %489, %490 : vector<16x128xf32>
    %c5_i32_137 = arith.constant 5 : i32
    %492 = arith.index_cast %c5_i32_137 : i32 to index
    %c0_138 = arith.constant 0 : index
    %c0_139 = arith.constant 0 : index
    %493 = vector.load %arg15[%492, %c0_138, %c0_139] : memref<8x16x384xf32, #tpu.memory_space<vmem>>, vector<1x16x384xf32>
    %494 = vector.shape_cast %493 : vector<1x16x384xf32> to vector<16x384xf32>
    %495 = arith.truncf %491 : vector<16x128xf32> to vector<16x128xbf16>
    %cst_140 = arith.constant dense<0.000000e+00> : vector<16x384xf32>
    %496 = tpu.matmul %495, %318, %cst_140 {dimension_numbers = #tpu.dot_dimension_numbers<[1], [0], [0], [1], [0, 0, 1, 1], [], []>} : vector<16x128xbf16>, vector<128x384xbf16>, vector<16x384xf32> -> vector<16x384xf32>
    %497 = vector.extract_strided_slice %494 {offsets = [0, 0], sizes = [16, 128], strides = [1, 1]} : vector<16x384xf32> to vector<16x128xf32>
    %498 = vector.extract_strided_slice %496 {offsets = [0, 0], sizes = [16, 128], strides = [1, 1]} : vector<16x384xf32> to vector<16x128xf32>
    %499 = arith.addf %497, %498 : vector<16x128xf32>
    %500 = arith.negf %499 : vector<16x128xf32>
    %501 = math.exp %500 : vector<16x128xf32>
    %cst_141 = arith.constant 1.000000e+00 : f32
    %502 = vector.broadcast %cst_141 : f32 to vector<16x128xf32>
    %503 = arith.addf %502, %501 : vector<16x128xf32>
    %504 = arith.divf %502, %503 : vector<16x128xf32>
    %505 = vector.extract_strided_slice %494 {offsets = [0, 128], sizes = [16, 128], strides = [1, 1]} : vector<16x384xf32> to vector<16x128xf32>
    %506 = vector.extract_strided_slice %496 {offsets = [0, 128], sizes = [16, 128], strides = [1, 1]} : vector<16x384xf32> to vector<16x128xf32>
    %507 = arith.addf %505, %506 : vector<16x128xf32>
    %508 = arith.negf %507 : vector<16x128xf32>
    %509 = math.exp %508 : vector<16x128xf32>
    %cst_142 = arith.constant 1.000000e+00 : f32
    %510 = vector.broadcast %cst_142 : f32 to vector<16x128xf32>
    %511 = arith.addf %510, %509 : vector<16x128xf32>
    %512 = arith.divf %510, %511 : vector<16x128xf32>
    %513 = vector.extract_strided_slice %494 {offsets = [0, 256], sizes = [16, 128], strides = [1, 1]} : vector<16x384xf32> to vector<16x128xf32>
    %514 = vector.extract_strided_slice %496 {offsets = [0, 256], sizes = [16, 128], strides = [1, 1]} : vector<16x384xf32> to vector<16x128xf32>
    %515 = arith.addf %514, %329 : vector<16x128xf32>
    %516 = arith.mulf %504, %515 : vector<16x128xf32>
    %517 = arith.addf %513, %516 : vector<16x128xf32>
    %518 = math.tanh %517 : vector<16x128xf32>
    %cst_143 = arith.constant 1.000000e+00 : f32
    %519 = vector.broadcast %cst_143 : f32 to vector<16x128xf32>
    %520 = arith.subf %519, %512 : vector<16x128xf32>
    %521 = arith.mulf %520, %518 : vector<16x128xf32>
    %522 = arith.mulf %512, %491 : vector<16x128xf32>
    %523 = arith.addf %521, %522 : vector<16x128xf32>
    %c6_i32_144 = arith.constant 6 : i32
    %524 = arith.index_cast %c6_i32_144 : i32 to index
    %c0_145 = arith.constant 0 : index
    %c0_146 = arith.constant 0 : index
    %525 = vector.load %arg15[%524, %c0_145, %c0_146] : memref<8x16x384xf32, #tpu.memory_space<vmem>>, vector<1x16x384xf32>
    %526 = vector.shape_cast %525 : vector<1x16x384xf32> to vector<16x384xf32>
    %527 = arith.truncf %523 : vector<16x128xf32> to vector<16x128xbf16>
    %cst_147 = arith.constant dense<0.000000e+00> : vector<16x384xf32>
    %528 = tpu.matmul %527, %318, %cst_147 {dimension_numbers = #tpu.dot_dimension_numbers<[1], [0], [0], [1], [0, 0, 1, 1], [], []>} : vector<16x128xbf16>, vector<128x384xbf16>, vector<16x384xf32> -> vector<16x384xf32>
    %529 = vector.extract_strided_slice %526 {offsets = [0, 0], sizes = [16, 128], strides = [1, 1]} : vector<16x384xf32> to vector<16x128xf32>
    %530 = vector.extract_strided_slice %528 {offsets = [0, 0], sizes = [16, 128], strides = [1, 1]} : vector<16x384xf32> to vector<16x128xf32>
    %531 = arith.addf %529, %530 : vector<16x128xf32>
    %532 = arith.negf %531 : vector<16x128xf32>
    %533 = math.exp %532 : vector<16x128xf32>
    %cst_148 = arith.constant 1.000000e+00 : f32
    %534 = vector.broadcast %cst_148 : f32 to vector<16x128xf32>
    %535 = arith.addf %534, %533 : vector<16x128xf32>
    %536 = arith.divf %534, %535 : vector<16x128xf32>
    %537 = vector.extract_strided_slice %526 {offsets = [0, 128], sizes = [16, 128], strides = [1, 1]} : vector<16x384xf32> to vector<16x128xf32>
    %538 = vector.extract_strided_slice %528 {offsets = [0, 128], sizes = [16, 128], strides = [1, 1]} : vector<16x384xf32> to vector<16x128xf32>
    %539 = arith.addf %537, %538 : vector<16x128xf32>
    %540 = arith.negf %539 : vector<16x128xf32>
    %541 = math.exp %540 : vector<16x128xf32>
    %cst_149 = arith.constant 1.000000e+00 : f32
    %542 = vector.broadcast %cst_149 : f32 to vector<16x128xf32>
    %543 = arith.addf %542, %541 : vector<16x128xf32>
    %544 = arith.divf %542, %543 : vector<16x128xf32>
    %545 = vector.extract_strided_slice %526 {offsets = [0, 256], sizes = [16, 128], strides = [1, 1]} : vector<16x384xf32> to vector<16x128xf32>
    %546 = vector.extract_strided_slice %528 {offsets = [0, 256], sizes = [16, 128], strides = [1, 1]} : vector<16x384xf32> to vector<16x128xf32>
    %547 = arith.addf %546, %329 : vector<16x128xf32>
    %548 = arith.mulf %536, %547 : vector<16x128xf32>
    %549 = arith.addf %545, %548 : vector<16x128xf32>
    %550 = math.tanh %549 : vector<16x128xf32>
    %cst_150 = arith.constant 1.000000e+00 : f32
    %551 = vector.broadcast %cst_150 : f32 to vector<16x128xf32>
    %552 = arith.subf %551, %544 : vector<16x128xf32>
    %553 = arith.mulf %552, %550 : vector<16x128xf32>
    %554 = arith.mulf %544, %523 : vector<16x128xf32>
    %555 = arith.addf %553, %554 : vector<16x128xf32>
    %c7_i32_151 = arith.constant 7 : i32
    %556 = arith.index_cast %c7_i32_151 : i32 to index
    %c0_152 = arith.constant 0 : index
    %c0_153 = arith.constant 0 : index
    %557 = vector.load %arg15[%556, %c0_152, %c0_153] : memref<8x16x384xf32, #tpu.memory_space<vmem>>, vector<1x16x384xf32>
    %558 = vector.shape_cast %557 : vector<1x16x384xf32> to vector<16x384xf32>
    %559 = arith.truncf %555 : vector<16x128xf32> to vector<16x128xbf16>
    %cst_154 = arith.constant dense<0.000000e+00> : vector<16x384xf32>
    %560 = tpu.matmul %559, %318, %cst_154 {dimension_numbers = #tpu.dot_dimension_numbers<[1], [0], [0], [1], [0, 0, 1, 1], [], []>} : vector<16x128xbf16>, vector<128x384xbf16>, vector<16x384xf32> -> vector<16x384xf32>
    %561 = vector.extract_strided_slice %558 {offsets = [0, 0], sizes = [16, 128], strides = [1, 1]} : vector<16x384xf32> to vector<16x128xf32>
    %562 = vector.extract_strided_slice %560 {offsets = [0, 0], sizes = [16, 128], strides = [1, 1]} : vector<16x384xf32> to vector<16x128xf32>
    %563 = arith.addf %561, %562 : vector<16x128xf32>
    %564 = arith.negf %563 : vector<16x128xf32>
    %565 = math.exp %564 : vector<16x128xf32>
    %cst_155 = arith.constant 1.000000e+00 : f32
    %566 = vector.broadcast %cst_155 : f32 to vector<16x128xf32>
    %567 = arith.addf %566, %565 : vector<16x128xf32>
    %568 = arith.divf %566, %567 : vector<16x128xf32>
    %569 = vector.extract_strided_slice %558 {offsets = [0, 128], sizes = [16, 128], strides = [1, 1]} : vector<16x384xf32> to vector<16x128xf32>
    %570 = vector.extract_strided_slice %560 {offsets = [0, 128], sizes = [16, 128], strides = [1, 1]} : vector<16x384xf32> to vector<16x128xf32>
    %571 = arith.addf %569, %570 : vector<16x128xf32>
    %572 = arith.negf %571 : vector<16x128xf32>
    %573 = math.exp %572 : vector<16x128xf32>
    %cst_156 = arith.constant 1.000000e+00 : f32
    %574 = vector.broadcast %cst_156 : f32 to vector<16x128xf32>
    %575 = arith.addf %574, %573 : vector<16x128xf32>
    %576 = arith.divf %574, %575 : vector<16x128xf32>
    %577 = vector.extract_strided_slice %558 {offsets = [0, 256], sizes = [16, 128], strides = [1, 1]} : vector<16x384xf32> to vector<16x128xf32>
    %578 = vector.extract_strided_slice %560 {offsets = [0, 256], sizes = [16, 128], strides = [1, 1]} : vector<16x384xf32> to vector<16x128xf32>
    %579 = arith.addf %578, %329 : vector<16x128xf32>
    %580 = arith.mulf %568, %579 : vector<16x128xf32>
    %581 = arith.addf %577, %580 : vector<16x128xf32>
    %582 = math.tanh %581 : vector<16x128xf32>
    %cst_157 = arith.constant 1.000000e+00 : f32
    %583 = vector.broadcast %cst_157 : f32 to vector<16x128xf32>
    %584 = arith.subf %583, %576 : vector<16x128xf32>
    %585 = arith.mulf %584, %582 : vector<16x128xf32>
    %586 = arith.mulf %576, %555 : vector<16x128xf32>
    %587 = arith.addf %585, %586 : vector<16x128xf32>
    %c8_i32_158 = arith.constant 8 : i32
    %c1_159 = arith.constant 1 : index
    %c0_160 = arith.constant 0 : index
    %c0_161 = arith.constant 0 : index
    %588 = vector.load %arg14[%c1_159, %c0_160, %c0_161] : memref<2x16x128xf32, #tpu.memory_space<vmem>>, vector<1x16x128xf32>
    %589 = vector.shape_cast %588 : vector<1x16x128xf32> to vector<16x128xf32>
    %590 = vector.shape_cast %587 : vector<16x128xf32> to vector<1x16x128xf32>
    tpu.vector_store %arg14[%c1_159, %c0_160, %c0_161], %590 {strides = array<i32>} : memref<2x16x128xf32, #tpu.memory_space<vmem>>, vector<1x16x128xf32>,
    %c0_i32_162 = arith.constant 0 : i32
    %591 = arith.cmpi eq, %arg1, %c0_i32_162 : i32
    %592 = arith.extui %591 : i1 to i32
    %c0_i32_163 = arith.constant 0 : i32
    %593 = arith.cmpi ne, %592, %c0_i32_163 : i32
    scf.if %593 {
      %c1_164 = arith.constant 1 : index
      %c0_165 = arith.constant 0 : index
      %c0_166 = arith.constant 0 : index
      %594 = vector.load %arg14[%c1_164, %c0_165, %c0_166] : memref<2x16x128xf32, #tpu.memory_space<vmem>>, vector<1x16x128xf32>
      %595 = vector.shape_cast %594 : vector<1x16x128xf32> to vector<16x128xf32>
      %596 = arith.truncf %595 : vector<16x128xf32> to vector<16x128xbf16>
      %c0_167 = arith.constant 0 : index
      %c0_168 = arith.constant 0 : index
      %597 = vector.load %arg11[%c0_167, %c0_168] : memref<128x128xbf16, #tpu.memory_space<vmem>>, vector<128x128xbf16>
      %cst_169 = arith.constant dense<0.000000e+00> : vector<16x128xf32>
      %598 = tpu.matmul %596, %597, %cst_169 {dimension_numbers = #tpu.dot_dimension_numbers<[1], [0], [0], [1], [0, 0, 1, 1], [], []>} : vector<16x128xbf16>, vector<128x128xbf16>, vector<16x128xf32> -> vector<16x128xf32>
      %c0_170 = arith.constant 0 : index
      %c0_171 = arith.constant 0 : index
      %599 = vector.load %arg12[%c0_170, %c0_171] : memref<1x128xf32, #tpu.memory_space<vmem>>, vector<1x128xf32>
      %600 = vector.broadcast %599 : vector<1x128xf32> to vector<16x128xf32>
      %601 = arith.addf %598, %600 : vector<16x128xf32>
      %602 = arith.negf %601 : vector<16x128xf32>
      %603 = math.exp %602 : vector<16x128xf32>
      %cst_172 = arith.constant 1.000000e+00 : f32
      %604 = vector.broadcast %cst_172 : f32 to vector<16x128xf32>
      %605 = arith.addf %604, %603 : vector<16x128xf32>
      %606 = arith.divf %604, %605 : vector<16x128xf32>
      %c0_173 = arith.constant 0 : index
      %c0_174 = arith.constant 0 : index
      %607 = vector.load %arg13[%c0_173, %c0_174] : memref<16x128xf32, #tpu.memory_space<vmem>>, vector<16x128xf32>
      tpu.vector_store %arg13[%c0_173, %c0_174], %606 {strides = array<i32>} : memref<16x128xf32, #tpu.memory_space<vmem>>, vector<16x128xf32>,
    } else {
    }
    return
  }
  func.func @transform_0(%arg0: i32, %arg1: i32) -> (i32, i32, i32) {
    %c0_i32 = arith.constant 0 : i32
    %c0_i32_0 = arith.constant 0 : i32
    return %arg1, %arg0, %c0_i32 : i32, i32, i32
  }
  func.func @transform_1(%arg0: i32, %arg1: i32) -> (i32, i32) {
    %c0_i32 = arith.constant 0 : i32
    %c0_i32_0 = arith.constant 0 : i32
    %c0_i32_1 = arith.constant 0 : i32
    return %c0_i32, %c0_i32_0 : i32, i32
  }
  func.func @transform_2(%arg0: i32, %arg1: i32) -> (i32, i32) {
    %c0_i32 = arith.constant 0 : i32
    %c0_i32_0 = arith.constant 0 : i32
    %c0_i32_1 = arith.constant 0 : i32
    return %c0_i32, %c0_i32_0 : i32, i32
  }
  func.func @transform_3(%arg0: i32, %arg1: i32) -> (i32, i32) {
    %c0_i32 = arith.constant 0 : i32
    %c0_i32_0 = arith.constant 0 : i32
    %c0_i32_1 = arith.constant 0 : i32
    return %c0_i32, %c0_i32_0 : i32, i32
  }
  func.func @transform_4(%arg0: i32, %arg1: i32) -> (i32, i32) {
    %c0_i32 = arith.constant 0 : i32
    %c0_i32_0 = arith.constant 0 : i32
    %c0_i32_1 = arith.constant 0 : i32
    return %c0_i32, %c0_i32_0 : i32, i32
  }
  func.func @transform_5(%arg0: i32, %arg1: i32) -> (i32, i32) {
    %c0_i32 = arith.constant 0 : i32
    %c0_i32_0 = arith.constant 0 : i32
    %c0_i32_1 = arith.constant 0 : i32
    return %c0_i32, %c0_i32_0 : i32, i32
  }
  func.func @transform_6(%arg0: i32, %arg1: i32) -> (i32, i32) {
    %c0_i32 = arith.constant 0 : i32
    %c0_i32_0 = arith.constant 0 : i32
    %c0_i32_1 = arith.constant 0 : i32
    return %c0_i32, %c0_i32_0 : i32, i32
  }
  func.func @transform_7(%arg0: i32, %arg1: i32) -> (i32, i32) {
    %c0_i32 = arith.constant 0 : i32
    %c0_i32_0 = arith.constant 0 : i32
    %c0_i32_1 = arith.constant 0 : i32
    return %c0_i32, %c0_i32_0 : i32, i32
  }
  func.func @transform_8(%arg0: i32, %arg1: i32) -> (i32, i32) {
    %c0_i32 = arith.constant 0 : i32
    %c0_i32_0 = arith.constant 0 : i32
    %c0_i32_1 = arith.constant 0 : i32
    return %c0_i32, %c0_i32_0 : i32, i32
  }
  func.func @transform_9(%arg0: i32, %arg1: i32) -> (i32, i32) {
    %c0_i32 = arith.constant 0 : i32
    %c0_i32_0 = arith.constant 0 : i32
    %c0_i32_1 = arith.constant 0 : i32
    return %c0_i32, %c0_i32_0 : i32, i32
  }
  func.func @transform_10(%arg0: i32, %arg1: i32) -> (i32, i32) {
    %c0_i32 = arith.constant 0 : i32
    %c0_i32_0 = arith.constant 0 : i32
    %c0_i32_1 = arith.constant 0 : i32
    return %c0_i32, %c0_i32_0 : i32, i32
  }
  func.func @transform_11(%arg0: i32, %arg1: i32) -> (i32, i32) {
    %c0_i32 = arith.constant 0 : i32
    %c0_i32_0 = arith.constant 0 : i32
    return %arg0, %c0_i32 : i32, i32
  }
}

</mosaic_0001>

<bundles_post_ra>
// kernel: tpu_custom_call.1
= control target key start
LH: loop header
LB: loop body
LE: loop exit
PB: predicated region body
PF: predicated region fallthrough
CT: control target
= control target key end

     0   :  { %16 = vsyncpa [#allocation6], 0  ;;  %s6752_s0 = inlined_call_operand.hbm [shape: bf16[8,16,128], index: 0, kind: input, shape index: {}]   ;;  %s6753_s1 = inlined_call_operand.hbm [shape: bf16[128,384], index: 1, kind: input, shape index: {}]   ;;  %s6754_s2 = inlined_call_operand.hbm [shape: bf16[128,384], index: 2, kind: input, shape index: {}]   ;;  %s6755_s3 = inlined_call_operand.vmem [shape: f32[1,384], index: 3, kind: input, shape index: {}]   ;;  %s6756_s4 = inlined_call_operand.vmem [shape: f32[1,128], index: 4, kind: input, shape index: {}]   ;;  %s6757_s5 = inlined_call_operand.hbm [shape: bf16[128,384], index: 5, kind: input, shape index: {}]   ;;  %s6758_s6 = inlined_call_operand.hbm [shape: bf16[128,384], index: 6, kind: input, shape index: {}]   ;;  %s6759_s7 = inlined_call_operand.vmem [shape: f32[1,384], index: 7, kind: input, shape index: {}]   ;;  %s6760_s8 = inlined_call_operand.vmem [shape: f32[1,128], index: 8, kind: input, shape index: {}]   ;;  %s6761_s9 = inlined_call_operand.hbm [shape: bf16[128,128], index: 9, kind: input, shape index: {}]   ;;  %s6762_s10 = inlined_call_operand.vmem [shape: f32[1,128], index: 10, kind: input, shape index: {}]   ;;  %s6763_s11 = inlined_call_operand.hbm [shape: f32[16,128], index: 11, kind: output, shape index: {}]  }
   0x1   :  { %17 = vsyncpa [#allocation9], 0 }
   0x2   :  { %18 = vsyncpa [#allocation12], 0 }
   0x3   :  { %19 = vsyncpa [#allocation15], 0 }
   0x4   :  { %20 = vsyncpa [#allocation7], 0  ;;  %s5351_s17 = smov [#allocation8]   ;;  %s5187_s21 = scalar_lea.hbm %s6753_s1, 3072 }
   0x5   :  { %s38_s18 = sshll.u32 %s5351_s17, 4  ;;  %p5188_p0 = scmp.ne.s32.totalorder %s6753_s1, %s5187_s21  ;;  %s39_s18 = int_to_ptr.vmem [resolvable:$true] %s38_s18 }
   0x6   :  { %p5191_p1 = scmp.lt.u32.totalorder %s5187_s21, %s6753_s1 }
   0x8   :  { %p5193_p2 = pnand %p5191_p1, %p5188_p0 }
   0xa   :  { %5196 = shalt.err (!%p5193_p2)
}
   0xb   :  { %s5197_s26 = scalar_lea.vmem %s39_s18, 3072  ;;  %p5202_p4 = scmp.lt.s32.totalorder %s39_s18, %s39_s18 }
   0xc   :  { %p5198_p3 = scmp.ne.s32.totalorder %s39_s18, %s5197_s26  ;;  %p5203_p5 = scmp.lt.s32.totalorder %s5197_s26, %s5197_s26 }
   0xe   :  { %p5204_p6 = por %p5203_p5, %p5202_p4 }
  0x10   :  { %p5205_p7 = pnand %p5204_p6, %p5198_p3 }
  0x12   :  { %5208 = shalt.err (!%p5205_p7)
}
  0x13   :  { %s5352_s27 = smov 192   ;;  %s5353_s28 = smov 12  }
  0x14   :  { %44 = dma.hbm_to_vmem [thread:$0]  %s6753_s1, 3072, %s39_s18, [#allocation9], %s5352_s27, %s5352_s27, %s5353_s28  }
  0x15   :  { %s5354_s12 = smov [#allocation11]   ;;  %s5355_s14 = smov [#allocation5]  }
  0x16   :  { %s66_s13 = sshll.u32 %s5354_s12, 4  ;;  %s26_s15 = sshll.u32 %s5355_s14, 4  ;;  %s67_s13 = int_to_ptr.vmem [resolvable:$true] %s66_s13  ;;  %s27_s15 = int_to_ptr.vmem [resolvable:$true] %s26_s15 }
  0x17   :  { %s5209_s19 = scalar_lea.hbm %s6757_s5, 3072 }
  0x18   :  { %p5210_p8 = scmp.ne.s32.totalorder %s6757_s5, %s5209_s19  ;;  %p5213_p9 = scmp.lt.u32.totalorder %s5209_s19, %s6757_s5 }
  0x1a   :  { %p5215_p10 = pnand %p5213_p9, %p5210_p8 }
  0x1c   :  { %5218 = shalt.err (!%p5215_p10)
}
  0x1d   :  { %s5219_s1 = scalar_lea.vmem %s67_s13, 3072  ;;  %p5224_p12 = scmp.lt.s32.totalorder %s67_s13, %s67_s13 }
  0x1e   :  { %p5220_p11 = scmp.ne.s32.totalorder %s67_s13, %s5219_s1  ;;  %p5225_p13 = scmp.lt.s32.totalorder %s5219_s1, %s5219_s1 }
  0x20   :  { %p5226_p0 = por %p5225_p13, %p5224_p12 }
  0x22   :  { %p5227_p1 = pnand %p5226_p0, %p5220_p11 }
  0x24   :  { %5230 = shalt.err (!%p5227_p1)
}
  0x25   :  { %72 = dma.hbm_to_vmem [thread:$0]  %s6757_s5, 3072, %s67_s13, [#allocation12], %s5352_s27, %s5352_s27, %s5353_s28  }
  0x26   :  { %s5231_s29 = scalar_lea.hbm %s6752_s0, 1024 }
  0x27   :  { %p5232_p2 = scmp.ne.s32.totalorder %s6752_s0, %s5231_s29  ;;  %p5235_p3 = scmp.lt.u32.totalorder %s5231_s29, %s6752_s0 }
  0x29   :  { %p5237_p4 = pnand %p5235_p3, %p5232_p2 }
  0x2b   :  { %5240 = shalt.err (!%p5237_p4)
}
  0x2c   :  { %s5241_s17 = scalar_lea.vmem %s27_s15, 1024  ;;  %p5246_p6 = scmp.lt.s32.totalorder %s27_s15, %s27_s15 }
  0x2d   :  { %p5242_p5 = scmp.ne.s32.totalorder %s27_s15, %s5241_s17  ;;  %p5247_p7 = scmp.lt.s32.totalorder %s5241_s17, %s5241_s17 }
  0x2f   :  { %p5248_p8 = por %p5247_p7, %p5246_p6 }
  0x31   :  { %p5249_p9 = pnand %p5248_p8, %p5242_p5 }
  0x33   :  { %5252 = shalt.err (!%p5249_p9)
}
  0x34   :  { %s5356_s5 = smov 64   ;;  %s5357_s13 = smov 4  }
  0x35   :  { %32 = dma.hbm_to_vmem [thread:$0]  %s6752_s0, 1024, %s27_s15, [#allocation6], %s5356_s5, %s5356_s5, %s5357_s13  }
  0x36   :  { %s5358_s21 = smov [#allocation10]   ;;  %s5359_s23 = smov [#allocation13]  }
  0x37   :  { %s50_s22 = sshll.u32 %s5358_s21, 4  ;;  %s78_s1 = sshll.u32 %s5359_s23, 4  ;;  %s51_s22 = int_to_ptr.vmem [resolvable:$true] %s50_s22  ;;  %s79_s1 = int_to_ptr.vmem [resolvable:$true] %s78_s1 }
  0x38   :  { %s5253_s25 = scalar_lea.hbm %s6754_s2, 3072 }
  0x39   :  { %p5254_p10 = scmp.ne.s32.totalorder %s6754_s2, %s5253_s25  ;;  %p5257_p11 = scmp.lt.u32.totalorder %s5253_s25, %s6754_s2 }
  0x3b   :  { %p5259_p12 = pnand %p5257_p11, %p5254_p10 }
  0x3d   :  { %5262 = shalt.err (!%p5259_p12)
}
  0x3e   :  { %s5263_s0 = scalar_lea.vmem %s51_s22, 3072  ;;  %p5268_p0 = scmp.lt.s32.totalorder %s51_s22, %s51_s22 }
  0x3f   :  { %p5264_p13 = scmp.ne.s32.totalorder %s51_s22, %s5263_s0  ;;  %p5269_p1 = scmp.lt.s32.totalorder %s5263_s0, %s5263_s0 }
  0x41   :  { %p5270_p2 = por %p5269_p1, %p5268_p0 }
  0x43   :  { %p5271_p3 = pnand %p5270_p2, %p5264_p13 }
  0x45   :  { %5274 = shalt.err (!%p5271_p3)
}
  0x46   :  { %56 = dma.hbm_to_vmem [thread:$0]  %s6754_s2, 3072, %s51_s22, [#allocation9], %s5352_s27, %s5352_s27, %s5353_s28  }
  0x47   :  { %s5275_s19 = scalar_lea.hbm %s6758_s6, 3072 }
  0x48   :  { %p5276_p4 = scmp.ne.s32.totalorder %s6758_s6, %s5275_s19  ;;  %p5279_p5 = scmp.lt.u32.totalorder %s5275_s19, %s6758_s6 }
  0x4a   :  { %p5281_p6 = pnand %p5279_p5, %p5276_p4 }
  0x4c   :  { %5284 = shalt.err (!%p5281_p6)
}
  0x4d   :  { %s5285_s24 = scalar_lea.vmem %s79_s1, 3072  ;;  %p5290_p8 = scmp.lt.s32.totalorder %s79_s1, %s79_s1 }
  0x4e   :  { %p5286_p7 = scmp.ne.s32.totalorder %s79_s1, %s5285_s24  ;;  %p5291_p9 = scmp.lt.s32.totalorder %s5285_s24, %s5285_s24 }
  0x50   :  { %p5292_p10 = por %p5291_p9, %p5290_p8 }
  0x52   :  { %p5293_p11 = pnand %p5292_p10, %p5286_p7 }
  0x54   :  { %5296 = shalt.err (!%p5293_p11)
}
  0x55   :  { %84 = dma.hbm_to_vmem [thread:$0]  %s6758_s6, 3072, %s79_s1, [#allocation12], %s5352_s27, %s5352_s27, %s5353_s28  }
  0x56   :  { %s5360_s25 = smov [#allocation14]   ;;  %s5297_s12 = scalar_lea.hbm %s6761_s9, 1024 }
  0x57   :  { %s94_s26 = sshll.u32 %s5360_s25, 4  ;;  %p5298_p12 = scmp.ne.s32.totalorder %s6761_s9, %s5297_s12  ;;  %s95_s26 = int_to_ptr.vmem [resolvable:$true] %s94_s26 }
  0x58   :  { %p5301_p13 = scmp.lt.u32.totalorder %s5297_s12, %s6761_s9 }
  0x5a   :  { %p5303_p0 = pnand %p5301_p13, %p5298_p12 }
  0x5c   :  { %5306 = shalt.err (!%p5303_p0)
}
  0x5d   :  { %s5307_s17 = scalar_lea.vmem %s95_s26, 1024  ;;  %p5312_p2 = scmp.lt.s32.totalorder %s95_s26, %s95_s26 }
  0x5e   :  { %p5308_p1 = scmp.ne.s32.totalorder %s95_s26, %s5307_s17  ;;  %p5313_p3 = scmp.lt.s32.totalorder %s5307_s17, %s5307_s17 }
  0x60   :  { %p5314_p4 = por %p5313_p3, %p5312_p2 }
  0x62   :  { %p5315_p5 = pnand %p5314_p4, %p5308_p1 }
  0x64   :  { %5318 = shalt.err (!%p5315_p5)
}
  0x65   :  { %100 = dma.hbm_to_vmem [thread:$0]  %s6761_s9, 1024, %s95_s26, [#allocation15], %s5356_s5, %s5356_s5, %s5357_s13  }
  0x66   :  { %5341 = dma.done.wait [#allocation6], 1024  }
  0x67   :  { %5342 = vsyncadd [#allocation6], 4294966272 }
  0x68   :  { %5343 = dma.done.wait [#allocation9], 6144  }
  0x69   :  { %5344 = vsyncadd [#allocation9], 4294961152 }
  0x6a   :  { %5345 = dma.done.wait [#allocation12], 6144  }
  0x6b   :  { %5346 = vsyncadd [#allocation12], 4294961152 }
  0x6c   :  { %5347 = dma.done.wait [#allocation15], 1024  }
  0x6d   :  { %5348 = vsyncadd [#allocation15], 4294966272  ;;  %v6769_v0 = vmov 0   ;;  %v4665_v1 = vld [vmem:[#allocation8 + $0x4] ss:$12 sps:$4 sm:$0xff]   ;;  %v4693_v29 = vld [vmem:[#allocation5 + $0x8] sm:$0xff]   ;;  %v213_v59 = vlaneseq }
  0x6e   :  { %436 = vmatprep.mubr.bf16.mxu0 %v6769_v0  ;;  %v4667_v2 = vld [vmem:[#allocation8] ss:$12 sps:$4 sm:$0xff]   ;;  %404 = vmatprep.subr.bf16.mxu0 %v4665_v1  ;;  %v4668_v3 = vld [vmem:[#allocation8 + $0x1c] ss:$12 sps:$4 sm:$0xff]   ;;  %v4670_v4 = vld [vmem:[#allocation8 + $0x18] ss:$12 sps:$4 sm:$0xff]  }
  0x6f   :  { %405 = vmatpush1.bf16.msra.mxu0 %v4667_v2  ;;  %v4671_v5 = vld [vmem:[#allocation8 + $0x34] ss:$12 sps:$4 sm:$0xff]   ;;  %v4673_v6 = vld [vmem:[#allocation8 + $0x30] ss:$12 sps:$4 sm:$0xff]   ;;  %v4674_v7 = vld [vmem:[#allocation8 + $0x4c] ss:$12 sps:$4 sm:$0xff]  }
  0x70   :  { %406 = vmatprep.subr.bf16.mxu0 %v4668_v3  ;;  %v4676_v8 = vld [vmem:[#allocation8 + $0x48] ss:$12 sps:$4 sm:$0xff]   ;;  %v4689_v9 = vld [vmem:[#allocation5] sm:$0xff]   ;;  %v4685_v17 = vld [vmem:[#allocation8 + $0x90] ss:$12 sps:$4 sm:$0xff]   ;;  %v6771_v43 = vmov 0.0  }
  0x71   :  { %v4677_v10 = vld [vmem:[#allocation8 + $0x64] ss:$12 sps:$4 sm:$0xff]   ;;  %4132 = vmatprep.mubr.bf16.mxu1 %v4689_v9  ;;  %v4679_v11 = vld [vmem:[#allocation8 + $0x60] ss:$12 sps:$4 sm:$0xff]   ;;  %v4680_v12 = vld [vmem:[#allocation8 + $0x7c] ss:$12 sps:$4 sm:$0xff]  }
  0x72   :  { %v4682_v13 = vld [vmem:[#allocation8 + $0x78] ss:$12 sps:$4 sm:$0xff]   ;;  %v4702_v14 = vld [vmem:[#allocation8 + $0x8] ss:$12 sps:$4 sm:$0xff]   ;;  %v4706_v16 = vld [vmem:[#allocation8 + $0x20] ss:$12 sps:$4 sm:$0xff]  }
  0x73   :  { %407 = vmatpush1.bf16.msra.mxu0 %v4670_v4  ;;  %v4683_v15 = vld [vmem:[#allocation8 + $0x94] ss:$12 sps:$4 sm:$0xff]   ;;  %4116 = vmatprep.subr.bf16.mxu1 %v4702_v14  ;;  %v4708_v18 = vld [vmem:[#allocation8 + $0x38] ss:$12 sps:$4 sm:$0xff]   ;;  %v4712_v21 = vld [vmem:[#allocation8 + $0x50] ss:$12 sps:$4 sm:$0xff]  }
  0x74   :  { %408 = vmatprep.subr.bf16.mxu0 %v4671_v5  ;;  %4117 = vmatpush3.bf16.msra.mxu1 %v4702_v14  ;;  %v4686_v19 = vld [vmem:[#allocation8 + $0xac] ss:$12 sps:$4 sm:$0xff]   ;;  %v4688_v20 = vld [vmem:[#allocation8 + $0xa8] ss:$12 sps:$4 sm:$0xff]   ;;  %v5519_v22 = vld [vmem:[#allocation10 + $0x4] ss:$12 sps:$4 sm:$0xff]  }
  0x75   :  { %4118 = vmatprep.subr.bf16.mxu1 %v4706_v16  ;;  %v5521_v23 = vld [vmem:[#allocation10] ss:$12 sps:$4 sm:$0xff]   ;;  %v5523_v24 = vld [vmem:[#allocation10 + $0x1c] ss:$12 sps:$4 sm:$0xff]   ;;  %v5526_v26 = vld [vmem:[#allocation10 + $0x18] ss:$12 sps:$4 sm:$0xff]  }
  0x76   :  { %v4714_v25 = vld [vmem:[#allocation8 + $0x68] ss:$12 sps:$4 sm:$0xff]   ;;  %v4718_v27 = vld [vmem:[#allocation8 + $0x80] ss:$12 sps:$4 sm:$0xff]   ;;  %v5533_v30 = vld [vmem:[#allocation10 + $0x30] ss:$12 sps:$4 sm:$0xff]  }
  0x77   :  { %409 = vmatpush1.bf16.msra.mxu0 %v4673_v6  ;;  %v5531_v28 = vld [vmem:[#allocation10 + $0x34] ss:$12 sps:$4 sm:$0xff]   ;;  %v5536_v31 = vld [vmem:[#allocation10 + $0x4c] ss:$12 sps:$4 sm:$0xff]   ;;  %v4724_v34 = vld [vmem:[#allocation8 + $0xb0] ss:$12 sps:$4 sm:$0xff]  }
  0x78   :  { %410 = vmatprep.subr.bf16.mxu0 %v4674_v7  ;;  %4119 = vmatpush3.bf16.msra.mxu1 %v4706_v16  ;;  %v4720_v32 = vld [vmem:[#allocation8 + $0x98] ss:$12 sps:$4 sm:$0xff]   ;;  %v5539_v33 = vld [vmem:[#allocation10 + $0x48] ss:$12 sps:$4 sm:$0xff]   ;;  %v5546_v37 = vld [vmem:[#allocation10 + $0x60] ss:$12 sps:$4 sm:$0xff]  }
  0x79   :  { %4120 = vmatprep.subr.bf16.mxu1 %v4708_v18  ;;  %v5544_v35 = vld [vmem:[#allocation10 + $0x64] ss:$12 sps:$4 sm:$0xff]   ;;  %v5548_v38 = vld [vmem:[#allocation10 + $0x7c] ss:$12 sps:$4 sm:$0xff]   ;;  %v5556_v41 = vld [vmem:[#allocation10 + $0x94] ss:$12 sps:$4 sm:$0xff]  }
  0x7a   :  { %v4697_v36 = vld [vmem:[#allocation5 + $0x10] sm:$0xff]   ;;  %v5554_v40 = vld [vmem:[#allocation10 + $0x78] ss:$12 sps:$4 sm:$0xff]   ;;  %v5562_v44 = vld [vmem:[#allocation10 + $0x20] ss:$12 sps:$4 sm:$0xff]   ;;  %vm5363_vm0 = vmmov 0  }
  0x7b   :  { %411 = vmatpush1.bf16.msra.mxu0 %v4676_v8  ;;  %v5552_v39 = vld [vmem:[#allocation10 + $0x8] ss:$12 sps:$4 sm:$0xff]   ;;  %v4701_v42 = vld [vmem:[#allocation5 + $0x18] sm:$0xff]   ;;  %v4707_v49 = vld [vmem:[#allocation5 + $0x20] sm:$0xff]   ;;  %v6767_v58 = vmov 0.0|0.0   ;;  %v5648_v60 = vshrl.u32 %v213_v59, 7 }
  0x7c   :  { %412 = vmatprep.subr.bf16.mxu0 %v4677_v10  ;;  %4121 = vmatpush3.bf16.msra.mxu1 %v4708_v18  ;;  %v5564_v45 = vld [vmem:[#allocation10 + $0x90] ss:$12 sps:$4 sm:$0xff]   ;;  %v5566_v46 = vld [vmem:[#allocation10 + $0xac] ss:$12 sps:$4 sm:$0xff]   ;;  %v5574_v48 = vld [vmem:[#allocation10 + $0xa8] ss:$12 sps:$4 sm:$0xff]  }
  0x7d   :  { %4122 = vmatprep.subr.bf16.mxu1 %v4712_v21  ;;  %v5572_v47 = vld [vmem:[#allocation10 + $0x38] ss:$12 sps:$4 sm:$0xff]   ;;  %v5581_v50 = vld [vmem:[#allocation10 + $0x50] ss:$12 sps:$4 sm:$0xff]   ;;  %v5586_v51 = vld [vmem:[#allocation10 + $0x68] ss:$12 sps:$4 sm:$0xff]  }
  0x7e   :  { %v4713_v52 = vld [vmem:[#allocation5 + $0x28] sm:$0xff]   ;;  %v4719_v53 = vld [vmem:[#allocation5 + $0x30] sm:$0xff]   ;;  %v5597_v55 = vld [vmem:[#allocation10 + $0x98] ss:$12 sps:$4 sm:$0xff]   ;;  %6775 = vst [vmem:[#allocation22_spill] sm:$0xff] %v5648_v60  ;;  %v6764_v61 = vsub.s32 2, %v5648_v60 }
  0x7f   :  { %413 = vmatpush1.bf16.msra.mxu0 %v4679_v11  ;;  %v5592_v54 = vld [vmem:[#allocation10 + $0x80] ss:$12 sps:$4 sm:$0xff]   ;;  %v4725_v56 = vld [vmem:[#allocation5 + $0x38] sm:$0xff]   ;;  %s5365_s24 = smov [#allocation16]  }
  0x80   :  { %414 = vmatprep.subr.bf16.mxu0 %v4680_v12  ;;  %4123 = vmatpush3.bf16.msra.mxu1 %v4712_v21  ;;  %v5602_v57 = vld [vmem:[#allocation10 + $0xb0] ss:$12 sps:$4 sm:$0xff]   ;;  %v194_v62 = vld [vmem:[%s6755_s3] sm:$0x7]  ;;  %s3735_s2 = sshll.u32 %s5365_s24, 4  ;;  %s3736_s2 = int_to_ptr.vmem [resolvable:$true] %s3735_s2 }
  0x81   :  { %4124 = vmatprep.subr.bf16.mxu1 %v4714_v25  ;;  %v5656_v63 = vrot.slane %v194_v62, %v6764_v61  ;;  %p5324_p7 = scmp.lt.s32.totalorder %s3736_s2, %s3736_s2 }
  0x83   :  { %415 = vmatpush1.bf16.msra.mxu0 %v4682_v13 }
  0x84   :  { %416 = vmatprep.subr.bf16.mxu0 %v4683_v15  ;;  %4125 = vmatpush3.bf16.msra.mxu1 %v4714_v25 }
  0x85   :  { %4126 = vmatprep.subr.bf16.mxu1 %v4718_v27 }
  0x87   :  { %417 = vmatpush1.bf16.msra.mxu0 %v4685_v17 }
  0x88   :  { %418 = vmatprep.subr.bf16.mxu0 %v4686_v19  ;;  %4127 = vmatpush3.bf16.msra.mxu1 %v4718_v27 }
  0x89   :  { %4128 = vmatprep.subr.bf16.mxu1 %v4720_v32 }
  0x8b   :  { %419 = vmatpush1.bf16.msra.mxu0 %v4688_v20 }
  0x8c   :  { %805 = vmatprep.subr.bf16.mxu0 %v5519_v22  ;;  %4129 = vmatpush3.bf16.msra.mxu1 %v4720_v32 }
  0x8d   :  { %4130 = vmatprep.subr.bf16.mxu1 %v4724_v34 }
  0x8e   :  { %437 = vmatmul.mubr.bf16.vlgmr.msra.gmra.mrb[0].mxu0 %v4689_v9 }
  0x8f   :  { %806 = vmatpush1.bf16.msra.mxu0 %v5521_v23  ;;  %446 = vmatprep.mubr.bf16.mxu0 %v6769_v0 }
  0x90   :  { %807 = vmatprep.subr.bf16.mxu0 %v5523_v24  ;;  %4131 = vmatpush3.bf16.msra.mxu1 %v4724_v34 }
  0x91   :  { %4148 = vmatprep.subr.bf16.mxu1 %v6771_v43 }
  0x93   :  { %808 = vmatpush1.bf16.msra.mxu0 %v5526_v26  ;;  %4133 = vmatmul.mubr.bf16.vlgmr.msra.gmra.mrb[0].mxu1 %v4693_v29 }
  0x94   :  { %809 = vmatprep.subr.bf16.mxu0 %v5531_v28  ;;  %4149 = vmatpush3.bf16.msra.mxu1 %v5552_v39 }
  0x95   :  { %4136 = vmatprep.mubr.bf16.mxu1 %v4697_v36  ;;  %4150 = vmatprep.subr.bf16.mxu1 %v6771_v43 }
  0x96   :  { %447 = vmatmul.mubr.bf16.gmra.mrb[4].mxu0 %v4693_v29 }
  0x97   :  { %456 = vmatprep.mubr.bf16.mxu0 %v6769_v0  ;;  %810 = vmatpush1.bf16.msra.mxu0 %v5533_v30 }
  0x98   :  { %811 = vmatprep.subr.bf16.mxu0 %v5536_v31  ;;  %4151 = vmatpush3.bf16.msra.mxu1 %v5562_v44 }
  0x99   :  { %4152 = vmatprep.subr.bf16.mxu1 %v6771_v43 }
  0x9b   :  { %812 = vmatpush1.bf16.msra.mxu0 %v5539_v33  ;;  %4137 = vmatmul.mubr.bf16.gmra.mrb[4].mxu1 %v4701_v42 }
  0x9c   :  { %813 = vmatprep.subr.bf16.mxu0 %v5544_v35  ;;  %4153 = vmatpush3.bf16.msra.mxu1 %v5572_v47 }
  0x9d   :  { %4140 = vmatprep.mubr.bf16.mxu1 %v4707_v49  ;;  %4154 = vmatprep.subr.bf16.mxu1 %v6771_v43 }
  0x9e   :  { %457 = vmatmul.mubr.bf16.gmra.mrb[8].mxu0 %v4697_v36 }
  0x9f   :  { %466 = vmatprep.mubr.bf16.mxu0 %v6769_v0  ;;  %814 = vmatpush1.bf16.msra.mxu0 %v5546_v37 }
  0xa0   :  { %815 = vmatprep.subr.bf16.mxu0 %v5548_v38  ;;  %4155 = vmatpush3.bf16.msra.mxu1 %v5581_v50 }
  0xa1   :  { %4156 = vmatprep.subr.bf16.mxu1 %v6771_v43 }
  0xa3   :  { %816 = vmatpush1.bf16.msra.mxu0 %v5554_v40  ;;  %4141 = vmatmul.mubr.bf16.gmra.mrb[8].mxu1 %v4713_v52 }
  0xa4   :  { %817 = vmatprep.subr.bf16.mxu0 %v5556_v41  ;;  %4157 = vmatpush3.bf16.msra.mxu1 %v5586_v51 }
  0xa5   :  { %4144 = vmatprep.mubr.bf16.mxu1 %v4719_v53  ;;  %4158 = vmatprep.subr.bf16.mxu1 %v6771_v43 }
  0xa6   :  { %467 = vmatmul.mubr.bf16.gmra.mrb[12].mxu0 %v4701_v42 }
  0xa7   :  { %476 = vmatprep.mubr.bf16.mxu0 %v6769_v0  ;;  %818 = vmatpush1.bf16.msra.mxu0 %v5564_v45 }
  0xa8   :  { %819 = vmatprep.subr.bf16.mxu0 %v5566_v46  ;;  %4159 = vmatpush3.bf16.msra.mxu1 %v5592_v54 }
  0xa9   :  { %4160 = vmatprep.subr.bf16.mxu1 %v6771_v43 }
  0xab   :  { %820 = vmatpush1.bf16.msra.mxu0 %v5574_v48  ;;  %4145 = vmatmul.mubr.bf16.gmra.mrb[12].mxu1 %v4725_v56 }
  0xac   :  { %942 = vmatprep.subr.bf16.mxu0 %v5519_v22  ;;  %4161 = vmatpush3.bf16.msra.mxu1 %v5597_v55 }
  0xad   :  { %4164 = vmatprep.mubr.msk.bf16.mxu1 %vm5363_vm0, %v6771_v43  ;;  %4162 = vmatprep.subr.bf16.mxu1 %v6771_v43 }
  0xae   :  { %477 = vmatmul.mubr.bf16.gmra.mrb[16].mxu0 %v4707_v49 }
  0xaf   :  { %486 = vmatprep.mubr.bf16.mxu0 %v6769_v0 }
  0xb0   :  { %4163 = vmatpush3.bf16.msra.mxu1 %v5602_v57 }
  0xb1   :  { %4168 = vmatprep.subr.bf16.mxu1 %v6771_v43 }
  0xb3   :  { %4165 = vmatmul.mubr.bf16.vlgmr.msra.gmra.mrb[16].mxu1 %v6767_v58 }
  0xb4   :  { %4169 = vmatpush3.bf16.msra.mxu1 %v5552_v39  ;;  %4184 = vmatprep.mubr.msk.bf16.mxu1 %vm5363_vm0, %v6771_v43 }
  0xb5   :  { %4170 = vmatprep.subr.bf16.mxu1 %v6771_v43 }
  0xb6   :  { %487 = vmatmul.mubr.bf16.gmra.mrb[20].mxu0 %v4713_v52 }
  0xb7   :  { %496 = vmatprep.mubr.bf16.mxu0 %v6769_v0 }
  0xb8   :  { %4171 = vmatpush3.bf16.msra.mxu1 %v5562_v44 }
  0xb9   :  { %4172 = vmatprep.subr.bf16.mxu1 %v6771_v43 }
  0xbc   :  { %4173 = vmatpush3.bf16.msra.mxu1 %v5572_v47 }
  0xbd   :  { %4174 = vmatprep.subr.bf16.mxu1 %v6771_v43 }
  0xbe   :  { %497 = vmatmul.mubr.bf16.gmra.mrb[24].mxu0 %v4719_v53 }
  0xbf   :  { %506 = vmatprep.mubr.bf16.mxu0 %v6769_v0 }
  0xc0   :  { %4175 = vmatpush3.bf16.msra.mxu1 %v5581_v50 }
  0xc1   :  { %4176 = vmatprep.subr.bf16.mxu1 %v6771_v43 }
  0xc4   :  { %4177 = vmatpush3.bf16.msra.mxu1 %v5586_v51 }
  0xc5   :  { %4178 = vmatprep.subr.bf16.mxu1 %v6771_v43 }
  0xc6   :  { %507 = vmatmul.mubr.bf16.gmra.mrb[28].mxu0 %v4725_v56 }
  0xc7   :  { %837 = vmatprep.mubr.bf16.mxu0 %v6769_v0 }
  0xc8   :  { %4179 = vmatpush3.bf16.msra.mxu1 %v5592_v54 }
  0xc9   :  { %4180 = vmatprep.subr.bf16.mxu1 %v6771_v43 }
  0xcc   :  { %4181 = vmatpush3.bf16.msra.mxu1 %v5597_v55 }
  0xcd   :  { %4182 = vmatprep.subr.bf16.mxu1 %v6771_v43 }
  0xce   :  { %838 = vmatmul.mubr.bf16.vlgmr.msra.gmra.mrb[0].mxu0 %v6767_v58 }
  0xcf   :  { %943 = vmatpush1.bf16.msra.mxu0 %v5521_v23  ;;  %974 = vmatprep.mubr.bf16.mxu0 %v6769_v0 }
  0xd0   :  { %944 = vmatprep.subr.bf16.mxu0 %v5523_v24  ;;  %4183 = vmatpush3.bf16.msra.mxu1 %v5602_v57 }
  0xd1   :  { %4188 = vmatprep.subr.bf16.mxu1 %v6771_v43 }
  0xd3   :  { %945 = vmatpush1.bf16.msra.mxu0 %v5526_v26 }
  0xd4   :  { %946 = vmatprep.subr.bf16.mxu0 %v5531_v28 }
  0xd7   :  { %947 = vmatpush1.bf16.msra.mxu0 %v5533_v30 }
  0xd8   :  { %948 = vmatprep.subr.bf16.mxu0 %v5536_v31 }
  0xdb   :  { %949 = vmatpush1.bf16.msra.mxu0 %v5539_v33 }
  0xdc   :  { %950 = vmatprep.subr.bf16.mxu0 %v5544_v35 }
  0xdf   :  { %951 = vmatpush1.bf16.msra.mxu0 %v5546_v37 }
  0xe0   :  { %952 = vmatprep.subr.bf16.mxu0 %v5548_v38 }
  0xe3   :  { %953 = vmatpush1.bf16.msra.mxu0 %v5554_v40 }
  0xe4   :  { %954 = vmatprep.subr.bf16.mxu0 %v5556_v41 }
  0xe7   :  { %955 = vmatpush1.bf16.msra.mxu0 %v5564_v45 }
  0xe8   :  { %956 = vmatprep.subr.bf16.mxu0 %v5566_v46 }
  0xeb   :  { %957 = vmatpush1.bf16.msra.mxu0 %v5574_v48 }
  0xec   :  { %1080 = vmatprep.subr.bf16.mxu0 %v5519_v22 }
 0x166   :  { %v4134_v1 = vpop.f32.mrb[0].mxu1 }
 0x167   :  { %v5659_v2 = vadd.f32 %v4134_v1, %v5656_v63  ;;  %v5661_v3 = vpop.f32.mrb[1].mxu1 }
 0x168   :  { %v4135_v4 = vpop.f32.mrb[2].mxu1 }
 0x169   :  { %v5664_v5 = vadd.f32 %v4135_v4, %v5656_v63  ;;  %v5666_v6 = vpop.f32.mrb[3].mxu1  ;;  %v6766_v4 = vsub.s32 0, %v5648_v60 }
 0x16e   :  { %v4138_v7 = vpop.f32.mrb[4].mxu1 }
 0x16f   :  { %v5669_v8 = vadd.f32 %v4138_v7, %v5656_v63  ;;  %v567_v9 = vpop.f32.mrb[5].mxu1  ;;  %v6765_v7 = vsub.s32 1, %v5648_v60 }
 0x170   :  { %v5672_v10 = vadd.f32 %v567_v9, %v5656_v63  ;;  %v4139_v11 = vpop.f32.mrb[6].mxu1  ;;  %v5708_v9 = vrot.slane %v194_v62, %v6766_v4 }
 0x171   :  { %v5675_v12 = vadd.f32 %v4139_v11, %v5656_v63  ;;  %v570_v13 = vpop.f32.mrb[7].mxu1 }
 0x172   :  { %v5678_v14 = vadd.f32 %v570_v13, %v5656_v63  ;;  %v5712_v13 = vrot.slane %v194_v62, %v6765_v7 }
 0x176   :  { %v4142_v15 = vpop.f32.mrb[8].mxu1 }
 0x177   :  { %v5681_v16 = vadd.f32 %v4142_v15, %v5656_v63  ;;  %v583_v17 = vpop.f32.mrb[9].mxu1 }
 0x178   :  { %v5684_v18 = vadd.f32 %v583_v17, %v5656_v63  ;;  %v4143_v19 = vpop.f32.mrb[10].mxu1 }
 0x179   :  { %v5687_v20 = vadd.f32 %v4143_v19, %v5656_v63  ;;  %v586_v21 = vpop.f32.mrb[11].mxu1 }
 0x17a   :  { %v5690_v25 = vadd.f32 %v586_v21, %v5656_v63 }
 0x17e   :  { %v4146_v27 = vpop.f32.mrb[12].mxu1 }
 0x17f   :  { %v5693_v29 = vadd.f32 %v4146_v27, %v5656_v63  ;;  %v599_v32 = vpop.f32.mrb[13].mxu1 }
 0x180   :  { %v5696_v34 = vadd.f32 %v599_v32, %v5656_v63  ;;  %v4147_v36 = vpop.f32.mrb[14].mxu1 }
 0x181   :  { %v5699_v42 = vadd.f32 %v4147_v36, %v5656_v63  ;;  %v602_v49 = vpop.f32.mrb[15].mxu1 }
 0x182   :  { %v5702_v52 = vadd.f32 %v602_v49, %v5656_v63 }
 0x183   :  { %6776 = vst [vmem:[#allocation23_spill] sm:$0xff] %v5699_v42 }
 0x186   :  { %v882_v53 = vpop.f32.mrb[16].mxu1 }
 0x187   :  { %v4166_v56 = vpop.f32.mrb[17].mxu1 }
 0x188   :  { %v885_v59 = vpop.f32.mrb[18].mxu1 }
 0x189   :  { %v4167_v1 = vpop.f32.mrb[19].mxu1 }
 0x1a1   :  { %v839_v11 = vpop.f32.mrb[0].mxu0 }
 0x1a2   :  { %v4520_v15 = vadd.f32 %v839_v11, %v5708_v9  ;;  %v841_v17 = vpop.f32.mrb[1].mxu0 }
 0x1a3   :  { %v843_v19 = vpop.f32.mrb[2].mxu0  ;;  %v4521_v36 = vadd.f32 %v841_v17, %v5712_v13  ;;  %v5721_v17 = vld [vmem:[%s6756_s4] ss:$0 sm:$0xff] }
 0x1a4   :  { %v3807_v21 = vmul.f32 -1.442695, %v4520_v15  ;;  %v4522_v27 = vadd.f32 %v843_v19, %v5708_v9  ;;  %v845_v32 = vpop.f32.mrb[3].mxu0 }
 0x1a5   :  { %v4523_v56 = vadd.f32 %v845_v32, %v5712_v13  ;;  %v3809_v1 = vmul.f32 -1.442695, %v4521_v36 }
 0x1a6   :  { %4809 = vpow2.f32 %v3807_v21  ;;  %v3808_v49 = vmul.f32 -1.442695, %v4522_v27  ;;  %v917_v27 = vadd.f32 %v5721_v17, %v882_v53 }
 0x1a7   :  { %v3810_v61 = vmul.f32 -1.442695, %v4523_v56  ;;  %v555_v56 = vadd.f32 %v5666_v6, %v5656_v63 }
 0x1a8   :  { %4811 = vpow2.f32 %v3808_v49 }
 0x1a9   :  { %4813 = vpow2.f32 %v3809_v1 }
 0x1aa   :  { %4815 = vpow2.f32 %v3810_v61  ;;  %v552_v61 = vadd.f32 %v5661_v3, %v5656_v63 }
 0x1b0   :  { %v4810_v62 = vpop.eup %4809 }
 0x1b1   :  { %v897_v7 = vadd.f32 1.0, %v4810_v62 }
 0x1b2   :  { %v4812_v11 = vpop.eup %4811 }
 0x1b3   :  { %4817 = vrcp.f32 %v897_v7  ;;  %v898_v4 = vadd.f32 1.0, %v4812_v11  ;;  %v4814_v15 = vpop.eup %4813  ;;  %v918_v7 = vadd.f32 %v5721_v17, %v885_v59 }
 0x1b4   :  { %v4816_v19 = vpop.eup %4815  ;;  %v911_v21 = vadd.f32 1.0, %v4814_v15 }
 0x1b5   :  { %4819 = vrcp.f32 %v898_v4  ;;  %v912_v32 = vadd.f32 1.0, %v4816_v19 }
 0x1b6   :  { %4821 = vrcp.f32 %v911_v21 }
 0x1b7   :  { %4823 = vrcp.f32 %v912_v32 }
 0x1bd   :  { %v4818_v36 = vpop.eup %4817 }
 0x1be   :  { %v919_v49 = vmul.f32 %v4818_v36, %v917_v27 }
 0x1bf   :  { %v4820_v4 = vpop.eup %4819 }
 0x1c0   :  { %v921_v1 = vadd.f32 %v919_v49, %v552_v61  ;;  %v920_v62 = vmul.f32 %v4820_v4, %v918_v7  ;;  %v4822_v53 = vpop.eup %4821 }
 0x1c1   :  { %v4824_v15 = vpop.eup %4823  ;;  %v925_v19 = vsub.f32 1.0, %v4822_v53  ;;  %v929_v21 = vmul.f32 0.0, %v4822_v53 }
 0x1c2   :  { %4825 = vtanh.f32 %v921_v1  ;;  %v922_v11 = vadd.f32 %v920_v62, %v555_v56  ;;  %v926_v0 = vsub.f32 1.0, %v4824_v15  ;;  %v930_v59 = vmul.f32 0.0, %v4824_v15 }
 0x1c4   :  { %4827 = vtanh.f32 %v922_v11 }
 0x1cc   :  { %v4826_v58 = vpop.eup %4825 }
 0x1cd   :  { %v927_v3 = vmul.f32 %v4826_v58, %v925_v19  ;;  %v6778_v58 = vmov 0  }
 0x1ce   :  { %v4828_v27 = vpop.eup %4827 }
 0x1cf   :  { %v928_v36 = vmul.f32 %v4828_v27, %v926_v0  ;;  %v5729_v43 = vadd.f32 %v929_v21, %v927_v3  ;;  %v6777_v0 = vmov 0.0  }
 0x1d1   :  { %v5731_v60 = vadd.f32 %v930_v59, %v928_v36 }
 0x1d3   :  { %v5735_v63 = vpack.c.bf16 %v5731_v60, %v5729_v43 }
 0x1d5   :  { %975 = vmatmul.mubr.bf16.vlgmr.msra.gmra.mrb[4].mxu0 %v5735_v63  ;;  %4185 = vmatmul.mubr.bf16.vlgmr.msra.gmra.mrb[20].mxu1 %v5735_v63 }
 0x1d6   :  { %1081 = vmatpush1.bf16.msra.mxu0 %v5521_v23  ;;  %4189 = vmatpush3.bf16.msra.mxu1 %v5552_v39 }
 0x1d7   :  { %1082 = vmatprep.subr.bf16.mxu0 %v5523_v24  ;;  %4190 = vmatprep.subr.bf16.mxu1 %v6777_v0 }
 0x1d8   :  { %1112 = vmatprep.mubr.bf16.mxu0 %v6778_v58  ;;  %4204 = vmatprep.mubr.msk.bf16.mxu1 %vm5363_vm0, %v6777_v0 }
 0x1da   :  { %1083 = vmatpush1.bf16.msra.mxu0 %v5526_v26  ;;  %4191 = vmatpush3.bf16.msra.mxu1 %v5562_v44 }
 0x1db   :  { %1084 = vmatprep.subr.bf16.mxu0 %v5531_v28  ;;  %4192 = vmatprep.subr.bf16.mxu1 %v6777_v0 }
 0x1de   :  { %1085 = vmatpush1.bf16.msra.mxu0 %v5533_v30  ;;  %4193 = vmatpush3.bf16.msra.mxu1 %v5572_v47 }
 0x1df   :  { %1086 = vmatprep.subr.bf16.mxu0 %v5536_v31  ;;  %4194 = vmatprep.subr.bf16.mxu1 %v6777_v0 }
 0x1e2   :  { %1087 = vmatpush1.bf16.msra.mxu0 %v5539_v33  ;;  %4195 = vmatpush3.bf16.msra.mxu1 %v5581_v50 }
 0x1e3   :  { %1088 = vmatprep.subr.bf16.mxu0 %v5544_v35  ;;  %4196 = vmatprep.subr.bf16.mxu1 %v6777_v0 }
 0x1e6   :  { %1089 = vmatpush1.bf16.msra.mxu0 %v5546_v37  ;;  %4197 = vmatpush3.bf16.msra.mxu1 %v5586_v51 }
 0x1e7   :  { %1090 = vmatprep.subr.bf16.mxu0 %v5548_v38  ;;  %4198 = vmatprep.subr.bf16.mxu1 %v6777_v0 }
 0x1ea   :  { %1091 = vmatpush1.bf16.msra.mxu0 %v5554_v40  ;;  %4199 = vmatpush3.bf16.msra.mxu1 %v5592_v54 }
 0x1eb   :  { %1092 = vmatprep.subr.bf16.mxu0 %v5556_v41  ;;  %4200 = vmatprep.subr.bf16.mxu1 %v6777_v0 }
 0x1ee   :  { %1093 = vmatpush1.bf16.msra.mxu0 %v5564_v45  ;;  %4201 = vmatpush3.bf16.msra.mxu1 %v5597_v55 }
 0x1ef   :  { %1094 = vmatprep.subr.bf16.mxu0 %v5566_v46  ;;  %4202 = vmatprep.subr.bf16.mxu1 %v6777_v0 }
 0x1f2   :  { %1095 = vmatpush1.bf16.msra.mxu0 %v5574_v48  ;;  %4203 = vmatpush3.bf16.msra.mxu1 %v5602_v57 }
 0x1f3   :  { %1218 = vmatprep.subr.bf16.mxu0 %v5519_v22  ;;  %4208 = vmatprep.subr.bf16.mxu1 %v6777_v0 }
 0x2a8   :  { %v976_v6 = vpop.f32.mrb[4].mxu0  ;;  %v1019_v32 = vpop.f32.mrb[20].mxu1 }
 0x2a9   :  { %v4524_v61 = vadd.f32 %v976_v6, %v5708_v9  ;;  %v978_v49 = vpop.f32.mrb[5].mxu0  ;;  %v4186_v7 = vpop.f32.mrb[21].mxu1 }
 0x2aa   :  { %v980_v4 = vpop.f32.mrb[6].mxu0  ;;  %v1022_v56 = vpop.f32.mrb[22].mxu1  ;;  %v4525_v15 = vadd.f32 %v978_v49, %v5712_v13  ;;  %v1054_v49 = vadd.f32 %v5721_v17, %v1019_v32 }
 0x2ab   :  { %v3811_v1 = vmul.f32 -1.442695, %v4524_v61  ;;  %v4526_v62 = vadd.f32 %v980_v4, %v5708_v9  ;;  %v982_v11 = vpop.f32.mrb[7].mxu0  ;;  %v4187_v53 = vpop.f32.mrb[23].mxu1 }
 0x2ac   :  { %v4527_v3 = vadd.f32 %v982_v11, %v5712_v13  ;;  %v3813_v21 = vmul.f32 -1.442695, %v4525_v15  ;;  %v1055_v11 = vadd.f32 %v5721_v17, %v1022_v56 }
 0x2ad   :  { %4829 = vpow2.f32 %v3811_v1  ;;  %v3812_v19 = vmul.f32 -1.442695, %v4526_v62 }
 0x2ae   :  { %v3814_v27 = vmul.f32 -1.442695, %v4527_v3 }
 0x2af   :  { %4831 = vpow2.f32 %v3812_v19 }
 0x2b0   :  { %4833 = vpow2.f32 %v3813_v21 }
 0x2b1   :  { %4835 = vpow2.f32 %v3814_v27 }
 0x2b7   :  { %v4830_v36 = vpop.eup %4829 }
 0x2b8   :  { %v1034_v59 = vadd.f32 1.0, %v4830_v36 }
 0x2b9   :  { %v4832_v6 = vpop.eup %4831 }
 0x2ba   :  { %4837 = vrcp.f32 %v1034_v59  ;;  %v1035_v61 = vadd.f32 1.0, %v4832_v6  ;;  %v4834_v7 = vpop.eup %4833 }
 0x2bb   :  { %v4836_v4 = vpop.eup %4835  ;;  %v1048_v53 = vadd.f32 1.0, %v4834_v7 }
 0x2bc   :  { %4839 = vrcp.f32 %v1035_v61  ;;  %v1049_v1 = vadd.f32 1.0, %v4836_v4 }
 0x2bd   :  { %4841 = vrcp.f32 %v1048_v53 }
 0x2be   :  { %4843 = vrcp.f32 %v1049_v1 }
 0x2c4   :  { %v4838_v62 = vpop.eup %4837 }
 0x2c5   :  { %v1056_v42 = vmul.f32 %v4838_v62, %v1054_v49 }
 0x2c6   :  { %v4840_v15 = vpop.eup %4839 }
 0x2c7   :  { %v1058_v19 = vadd.f32 %v1056_v42, %v5659_v2  ;;  %v1057_v3 = vmul.f32 %v4840_v15, %v1055_v11  ;;  %v4842_v27 = vpop.eup %4841 }
 0x2c8   :  { %v4844_v36 = vpop.eup %4843  ;;  %v1062_v59 = vsub.f32 1.0, %v4842_v27  ;;  %v1066_v7 = vmul.f32 %v4842_v27, %v5729_v43 }
 0x2c9   :  { %4845 = vtanh.f32 %v1058_v19  ;;  %v1059_v21 = vadd.f32 %v1057_v3, %v5664_v5  ;;  %v1063_v32 = vsub.f32 1.0, %v4844_v36  ;;  %v1067_v56 = vmul.f32 %v4844_v36, %v5731_v60 }
 0x2cb   :  { %4847 = vtanh.f32 %v1059_v21 }
 0x2d3   :  { %v4846_v6 = vpop.eup %4845 }
 0x2d4   :  { %v1064_v61 = vmul.f32 %v4846_v6, %v1062_v59 }
 0x2d5   :  { %v4848_v4 = vpop.eup %4847 }
 0x2d6   :  { %v1065_v53 = vmul.f32 %v4848_v4, %v1063_v32  ;;  %v5784_v49 = vadd.f32 %v1066_v7, %v1064_v61 }
 0x2d8   :  { %v5786_v2 = vadd.f32 %v1067_v56, %v1065_v53 }
 0x2da   :  { %v5790_v5 = vpack.c.bf16 %v5786_v2, %v5784_v49 }
 0x2dc   :  { %1113 = vmatmul.mubr.bf16.vlgmr.msra.gmra.mrb[8].mxu0 %v5790_v5  ;;  %4205 = vmatmul.mubr.bf16.vlgmr.msra.gmra.mrb[24].mxu1 %v5790_v5 }
 0x2dd   :  { %1219 = vmatpush1.bf16.msra.mxu0 %v5521_v23  ;;  %4209 = vmatpush3.bf16.msra.mxu1 %v5552_v39 }
 0x2de   :  { %1220 = vmatprep.subr.bf16.mxu0 %v5523_v24  ;;  %4210 = vmatprep.subr.bf16.mxu1 %v6777_v0 }
 0x2df   :  { %1250 = vmatprep.mubr.bf16.mxu0 %v6778_v58  ;;  %4224 = vmatprep.mubr.msk.bf16.mxu1 %vm5363_vm0, %v6777_v0 }
 0x2e1   :  { %1221 = vmatpush1.bf16.msra.mxu0 %v5526_v26  ;;  %4211 = vmatpush3.bf16.msra.mxu1 %v5562_v44 }
 0x2e2   :  { %1222 = vmatprep.subr.bf16.mxu0 %v5531_v28  ;;  %4212 = vmatprep.subr.bf16.mxu1 %v6777_v0 }
 0x2e5   :  { %1223 = vmatpush1.bf16.msra.mxu0 %v5533_v30  ;;  %4213 = vmatpush3.bf16.msra.mxu1 %v5572_v47 }
 0x2e6   :  { %1224 = vmatprep.subr.bf16.mxu0 %v5536_v31  ;;  %4214 = vmatprep.subr.bf16.mxu1 %v6777_v0 }
 0x2e9   :  { %1225 = vmatpush1.bf16.msra.mxu0 %v5539_v33  ;;  %4215 = vmatpush3.bf16.msra.mxu1 %v5581_v50 }
 0x2ea   :  { %1226 = vmatprep.subr.bf16.mxu0 %v5544_v35  ;;  %4216 = vmatprep.subr.bf16.mxu1 %v6777_v0 }
 0x2ed   :  { %1227 = vmatpush1.bf16.msra.mxu0 %v5546_v37  ;;  %4217 = vmatpush3.bf16.msra.mxu1 %v5586_v51 }
 0x2ee   :  { %1228 = vmatprep.subr.bf16.mxu0 %v5548_v38  ;;  %4218 = vmatprep.subr.bf16.mxu1 %v6777_v0 }
 0x2f1   :  { %1229 = vmatpush1.bf16.msra.mxu0 %v5554_v40  ;;  %4219 = vmatpush3.bf16.msra.mxu1 %v5592_v54 }
 0x2f2   :  { %1230 = vmatprep.subr.bf16.mxu0 %v5556_v41  ;;  %4220 = vmatprep.subr.bf16.mxu1 %v6777_v0 }
 0x2f5   :  { %1231 = vmatpush1.bf16.msra.mxu0 %v5564_v45  ;;  %4221 = vmatpush3.bf16.msra.mxu1 %v5597_v55 }
 0x2f6   :  { %1232 = vmatprep.subr.bf16.mxu0 %v5566_v46  ;;  %4222 = vmatprep.subr.bf16.mxu1 %v6777_v0 }
 0x2f9   :  { %1233 = vmatpush1.bf16.msra.mxu0 %v5574_v48  ;;  %4223 = vmatpush3.bf16.msra.mxu1 %v5602_v57 }
 0x2fa   :  { %1356 = vmatprep.subr.bf16.mxu0 %v5519_v22  ;;  %4228 = vmatprep.subr.bf16.mxu1 %v6777_v0 }
 0x3af   :  { %v1114_v23 = vpop.f32.mrb[8].mxu0  ;;  %v1157_v24 = vpop.f32.mrb[24].mxu1 }
 0x3b0   :  { %v4528_v26 = vadd.f32 %v1114_v23, %v5708_v9  ;;  %v1116_v28 = vpop.f32.mrb[9].mxu0  ;;  %v4206_v43 = vpop.f32.mrb[25].mxu1  ;;  %v1192_v53 = vadd.f32 %v5721_v17, %v1157_v24 }
 0x3b1   :  { %v1118_v60 = vpop.f32.mrb[10].mxu0  ;;  %v1160_v42 = vpop.f32.mrb[26].mxu1  ;;  %v4529_v19 = vadd.f32 %v1116_v28, %v5712_v13 }
 0x3b2   :  { %v3815_v1 = vmul.f32 -1.442695, %v4528_v26  ;;  %v4530_v62 = vadd.f32 %v1118_v60, %v5708_v9  ;;  %v1120_v11 = vpop.f32.mrb[11].mxu0  ;;  %v4207_v15 = vpop.f32.mrb[27].mxu1  ;;  %v1193_v28 = vadd.f32 %v5721_v17, %v1160_v42 }
 0x3b3   :  { %v4531_v22 = vadd.f32 %v1120_v11, %v5712_v13  ;;  %v3817_v21 = vmul.f32 -1.442695, %v4529_v19 }
 0x3b4   :  { %4849 = vpow2.f32 %v3815_v1  ;;  %v3816_v3 = vmul.f32 -1.442695, %v4530_v62 }
 0x3b5   :  { %v3818_v27 = vmul.f32 -1.442695, %v4531_v22 }
 0x3b6   :  { %4851 = vpow2.f32 %v3816_v3 }
 0x3b7   :  { %4853 = vpow2.f32 %v3817_v21 }
 0x3b8   :  { %4855 = vpow2.f32 %v3818_v27 }
 0x3be   :  { %v4850_v36 = vpop.eup %4849 }
 0x3bf   :  { %v1172_v59 = vadd.f32 1.0, %v4850_v36 }
 0x3c0   :  { %v4852_v6 = vpop.eup %4851 }
 0x3c1   :  { %4857 = vrcp.f32 %v1172_v59  ;;  %v1173_v32 = vadd.f32 1.0, %v4852_v6  ;;  %v4854_v61 = vpop.eup %4853  ;;  %v5849_v6 = vld [vmem:[#allocation10] ss:$12 sps:$4 sm:$0xff]  }
 0x3c2   :  { %v4856_v7 = vpop.eup %4855  ;;  %v1186_v4 = vadd.f32 1.0, %v4854_v61 }
 0x3c3   :  { %4859 = vrcp.f32 %v1173_v32  ;;  %v1187_v56 = vadd.f32 1.0, %v4856_v7  ;;  %v5864_v32 = vld [vmem:[#allocation10 + $0x34] ss:$12 sps:$4 sm:$0xff]  }
 0x3c4   :  { %4861 = vrcp.f32 %v1186_v4 }
 0x3c5   :  { %4863 = vrcp.f32 %v1187_v56 }
 0x3cb   :  { %v4858_v23 = vpop.eup %4857 }
 0x3cc   :  { %v1194_v26 = vmul.f32 %v4858_v23, %v1192_v53 }
 0x3cd   :  { %v4860_v43 = vpop.eup %4859 }
 0x3ce   :  { %v1196_v60 = vadd.f32 %v1194_v26, %v5672_v10  ;;  %v1195_v1 = vmul.f32 %v4860_v43, %v1193_v28  ;;  %v4862_v11 = vpop.eup %4861 }
 0x3cf   :  { %v4864_v15 = vpop.eup %4863  ;;  %v1200_v19 = vsub.f32 1.0, %v4862_v11  ;;  %v1204_v21 = vmul.f32 %v4862_v11, %v5784_v49  ;;  %v5853_v49 = vld [vmem:[#allocation10 + $0x1c] ss:$12 sps:$4 sm:$0xff]  }
 0x3d0   :  { %4865 = vtanh.f32 %v1196_v60  ;;  %v1197_v62 = vadd.f32 %v1195_v1, %v5678_v14  ;;  %v1201_v24 = vsub.f32 1.0, %v4864_v15  ;;  %v1205_v42 = vmul.f32 %v4864_v15, %v5786_v2  ;;  %v5860_v2 = vld [vmem:[#allocation10 + $0x18] ss:$12 sps:$4 sm:$0xff]  }
 0x3d2   :  { %4867 = vtanh.f32 %v1197_v62 }
 0x3da   :  { %v4866_v3 = vpop.eup %4865 }
 0x3db   :  { %v1202_v22 = vmul.f32 %v4866_v3, %v1200_v19 }
 0x3dc   :  { %v4868_v27 = vpop.eup %4867 }
 0x3dd   :  { %v1203_v36 = vmul.f32 %v4868_v27, %v1201_v24  ;;  %v5839_v59 = vadd.f32 %v1204_v21, %v1202_v22 }
 0x3df   :  { %v5841_v10 = vadd.f32 %v1205_v42, %v1203_v36 }
 0x3e1   :  { %v5845_v14 = vpack.c.bf16 %v5841_v10, %v5839_v59 }
 0x3e3   :  { %1251 = vmatmul.mubr.bf16.vlgmr.msra.gmra.mrb[12].mxu0 %v5845_v14  ;;  %4225 = vmatmul.mubr.bf16.vlgmr.msra.gmra.mrb[28].mxu1 %v5845_v14 }
 0x3e4   :  { %1357 = vmatpush1.bf16.msra.mxu0 %v5849_v6  ;;  %4229 = vmatpush3.bf16.msra.mxu1 %v5552_v39 }
 0x3e5   :  { %1358 = vmatprep.subr.bf16.mxu0 %v5853_v49  ;;  %4230 = vmatprep.subr.bf16.mxu1 %v6777_v0 }
 0x3e6   :  { %1388 = vmatprep.mubr.bf16.mxu0 %v6778_v58  ;;  %4244 = vmatprep.mubr.msk.bf16.mxu1 %vm5363_vm0, %v6777_v0 }
 0x3e8   :  { %1359 = vmatpush1.bf16.msra.mxu0 %v5860_v2  ;;  %4231 = vmatpush3.bf16.msra.mxu1 %v5562_v44 }
 0x3e9   :  { %1360 = vmatprep.subr.bf16.mxu0 %v5864_v32  ;;  %4232 = vmatprep.subr.bf16.mxu1 %v6777_v0 }
 0x3ec   :  { %1361 = vmatpush1.bf16.msra.mxu0 %v5533_v30  ;;  %4233 = vmatpush3.bf16.msra.mxu1 %v5572_v47  ;;  %v5890_v30 = vld [vmem:[#allocation10 + $0x4] ss:$12 sps:$4 sm:$0xff]  }
 0x3ed   :  { %1362 = vmatprep.subr.bf16.mxu0 %v5536_v31  ;;  %4234 = vmatprep.subr.bf16.mxu1 %v6777_v0 }
 0x3f0   :  { %1363 = vmatpush1.bf16.msra.mxu0 %v5539_v33  ;;  %4235 = vmatpush3.bf16.msra.mxu1 %v5581_v50 }
 0x3f1   :  { %1364 = vmatprep.subr.bf16.mxu0 %v5544_v35  ;;  %4236 = vmatprep.subr.bf16.mxu1 %v6777_v0 }
 0x3f4   :  { %1365 = vmatpush1.bf16.msra.mxu0 %v5546_v37  ;;  %4237 = vmatpush3.bf16.msra.mxu1 %v5586_v51 }
 0x3f5   :  { %1366 = vmatprep.subr.bf16.mxu0 %v5548_v38  ;;  %4238 = vmatprep.subr.bf16.mxu1 %v6777_v0 }
 0x3f8   :  { %1367 = vmatpush1.bf16.msra.mxu0 %v5554_v40  ;;  %4239 = vmatpush3.bf16.msra.mxu1 %v5592_v54 }
 0x3f9   :  { %1368 = vmatprep.subr.bf16.mxu0 %v5556_v41  ;;  %4240 = vmatprep.subr.bf16.mxu1 %v6777_v0 }
 0x3fc   :  { %1369 = vmatpush1.bf16.msra.mxu0 %v5564_v45  ;;  %4241 = vmatpush3.bf16.msra.mxu1 %v5597_v55 }
 0x3fd   :  { %1370 = vmatprep.subr.bf16.mxu0 %v5566_v46  ;;  %4242 = vmatprep.subr.bf16.mxu1 %v6777_v0 }
 0x400   :  { %1371 = vmatpush1.bf16.msra.mxu0 %v5574_v48  ;;  %4243 = vmatpush3.bf16.msra.mxu1 %v5602_v57 }
 0x401   :  { %1494 = vmatprep.subr.bf16.mxu0 %v5890_v30  ;;  %4248 = vmatprep.subr.bf16.mxu1 %v6777_v0 }
 0x4b6   :  { %v1252_v31 = vpop.f32.mrb[12].mxu0  ;;  %v1295_v33 = vpop.f32.mrb[28].mxu1 }
 0x4b7   :  { %v4532_v35 = vadd.f32 %v1252_v31, %v5708_v9  ;;  %v1254_v37 = vpop.f32.mrb[13].mxu0  ;;  %v4226_v38 = vpop.f32.mrb[29].mxu1  ;;  %v1330_v1 = vadd.f32 %v5721_v17, %v1295_v33 }
 0x4b8   :  { %v1256_v39 = vpop.f32.mrb[14].mxu0  ;;  %v1298_v40 = vpop.f32.mrb[30].mxu1  ;;  %v4533_v47 = vadd.f32 %v1254_v37, %v5712_v13 }
 0x4b9   :  { %v3819_v41 = vmul.f32 -1.442695, %v4532_v35  ;;  %v4534_v44 = vadd.f32 %v1256_v39, %v5708_v9  ;;  %v1258_v45 = vpop.f32.mrb[15].mxu0  ;;  %v4227_v46 = vpop.f32.mrb[31].mxu1  ;;  %v1331_v19 = vadd.f32 %v5721_v17, %v1298_v40 }
 0x4ba   :  { %v4535_v61 = vadd.f32 %v1258_v45, %v5712_v13  ;;  %v3821_v7 = vmul.f32 -1.442695, %v4533_v47  ;;  %v5932_v45 = vld [vmem:[#allocation10 + $0x38] ss:$12 sps:$4 sm:$0xff]   ;;  %v5939_v47 = vld [vmem:[#allocation10 + $0x48] ss:$12 sps:$4 sm:$0xff]  }
 0x4bb   :  { %4869 = vpow2.f32 %v3819_v41  ;;  %v3820_v48 = vmul.f32 -1.442695, %v4534_v44  ;;  %v5915_v44 = vld [vmem:[#allocation10 + $0x8] ss:$12 sps:$4 sm:$0xff]   ;;  %v5935_v46 = vld [vmem:[#allocation10 + $0x4c] ss:$12 sps:$4 sm:$0xff]  }
 0x4bc   :  { %v3822_v4 = vmul.f32 -1.442695, %v4535_v61  ;;  %v5947_v61 = vld [vmem:[#allocation10 + $0x60] ss:$12 sps:$4 sm:$0xff]  }
 0x4bd   :  { %4871 = vpow2.f32 %v3820_v48  ;;  %v5943_v48 = vld [vmem:[#allocation10 + $0x64] ss:$12 sps:$4 sm:$0xff]  }
 0x4be   :  { %4873 = vpow2.f32 %v3821_v7  ;;  %v5951_v7 = vld [vmem:[#allocation10 + $0x7c] ss:$12 sps:$4 sm:$0xff]  }
 0x4bf   :  { %4875 = vpow2.f32 %v3822_v4  ;;  %v5955_v4 = vld [vmem:[#allocation10 + $0x78] ss:$12 sps:$4 sm:$0xff]  }
 0x4c5   :  { %v4870_v53 = vpop.eup %4869 }
 0x4c6   :  { %v1310_v56 = vadd.f32 1.0, %v4870_v53  ;;  %v5963_v53 = vld [vmem:[#allocation10 + $0x90] ss:$12 sps:$4 sm:$0xff]  }
 0x4c7   :  { %v4872_v23 = vpop.eup %4871 }
 0x4c8   :  { %4877 = vrcp.f32 %v1310_v56  ;;  %v1311_v26 = vadd.f32 1.0, %v4872_v23  ;;  %v4874_v28 = vpop.eup %4873  ;;  %v5971_v56 = vld [vmem:[#allocation10 + $0xa8] ss:$12 sps:$4 sm:$0xff]  }
 0x4c9   :  { %v4876_v43 = vpop.eup %4875  ;;  %v1324_v60 = vadd.f32 1.0, %v4874_v28 }
 0x4ca   :  { %4879 = vrcp.f32 %v1311_v26  ;;  %v1325_v62 = vadd.f32 1.0, %v4876_v43 }
 0x4cb   :  { %4881 = vrcp.f32 %v1324_v60 }
 0x4cc   :  { %4883 = vrcp.f32 %v1325_v62 }
 0x4d2   :  { %v4878_v11 = vpop.eup %4877 }
 0x4d3   :  { %v1332_v15 = vmul.f32 %v4878_v11, %v1330_v1 }
 0x4d4   :  { %v4880_v3 = vpop.eup %4879 }
 0x4d5   :  { %v1334_v24 = vadd.f32 %v1332_v15, %v5669_v8  ;;  %v1333_v22 = vmul.f32 %v4880_v3, %v1331_v19  ;;  %v4882_v27 = vpop.eup %4881 }
 0x4d6   :  { %v4884_v36 = vpop.eup %4883  ;;  %v1338_v42 = vsub.f32 1.0, %v4882_v27  ;;  %v1342_v37 = vmul.f32 %v4882_v27, %v5839_v59  ;;  %v5924_v59 = vld [vmem:[#allocation10 + $0x20] ss:$12 sps:$4 sm:$0xff]  }
 0x4d7   :  { %4885 = vtanh.f32 %v1334_v24  ;;  %v1335_v21 = vadd.f32 %v1333_v22, %v5675_v12  ;;  %v1339_v33 = vsub.f32 1.0, %v4884_v36  ;;  %v1343_v40 = vmul.f32 %v4884_v36, %v5841_v10  ;;  %v5929_v10 = vld [vmem:[#allocation10 + $0x30] ss:$12 sps:$4 sm:$0xff]  }
 0x4d9   :  { %4887 = vtanh.f32 %v1335_v21 }
 0x4e1   :  { %v4886_v31 = vpop.eup %4885 }
 0x4e2   :  { %v1340_v35 = vmul.f32 %v4886_v31, %v1338_v42 }
 0x4e3   :  { %v4888_v38 = vpop.eup %4887 }
 0x4e4   :  { %v1341_v39 = vmul.f32 %v4888_v38, %v1339_v33  ;;  %v5904_v41 = vadd.f32 %v1342_v37, %v1340_v35 }
 0x4e6   :  { %v5906_v8 = vadd.f32 %v1343_v40, %v1341_v39 }
 0x4e8   :  { %v5910_v12 = vpack.c.bf16 %v5906_v8, %v5904_v41 }
 0x4ea   :  { %1389 = vmatmul.mubr.bf16.vlgmr.msra.gmra.mrb[16].mxu0 %v5910_v12  ;;  %4245 = vmatmul.mubr.bf16.vlgmr.msra.gmra.mrb[32].mxu1 %v5910_v12 }
 0x4eb   :  { %1495 = vmatpush1.bf16.msra.mxu0 %v5849_v6  ;;  %4249 = vmatpush3.bf16.msra.mxu1 %v5915_v44 }
 0x4ec   :  { %1496 = vmatprep.subr.bf16.mxu0 %v5853_v49  ;;  %4250 = vmatprep.subr.bf16.mxu1 %v6777_v0 }
 0x4ed   :  { %1526 = vmatprep.mubr.bf16.mxu0 %v6778_v58  ;;  %4264 = vmatprep.mubr.msk.bf16.mxu1 %vm5363_vm0, %v6777_v0 }
 0x4ef   :  { %1497 = vmatpush1.bf16.msra.mxu0 %v5860_v2  ;;  %4251 = vmatpush3.bf16.msra.mxu1 %v5924_v59 }
 0x4f0   :  { %1498 = vmatprep.subr.bf16.mxu0 %v5864_v32  ;;  %4252 = vmatprep.subr.bf16.mxu1 %v6777_v0 }
 0x4f3   :  { %1499 = vmatpush1.bf16.msra.mxu0 %v5929_v10  ;;  %4253 = vmatpush3.bf16.msra.mxu1 %v5932_v45 }
 0x4f4   :  { %1500 = vmatprep.subr.bf16.mxu0 %v5935_v46  ;;  %4254 = vmatprep.subr.bf16.mxu1 %v6777_v0 }
 0x4f7   :  { %1501 = vmatpush1.bf16.msra.mxu0 %v5939_v47  ;;  %4255 = vmatpush3.bf16.msra.mxu1 %v5581_v50  ;;  %v5959_v50 = vld [vmem:[#allocation10 + $0x94] ss:$12 sps:$4 sm:$0xff]  }
 0x4f8   :  { %1502 = vmatprep.subr.bf16.mxu0 %v5943_v48  ;;  %4256 = vmatprep.subr.bf16.mxu1 %v6777_v0 }
 0x4fb   :  { %1503 = vmatpush1.bf16.msra.mxu0 %v5947_v61  ;;  %4257 = vmatpush3.bf16.msra.mxu1 %v5586_v51  ;;  %v5967_v51 = vld [vmem:[#allocation10 + $0xac] ss:$12 sps:$4 sm:$0xff]  }
 0x4fc   :  { %1504 = vmatprep.subr.bf16.mxu0 %v5951_v7  ;;  %4258 = vmatprep.subr.bf16.mxu1 %v6777_v0 }
 0x4ff   :  { %1505 = vmatpush1.bf16.msra.mxu0 %v5955_v4  ;;  %4259 = vmatpush3.bf16.msra.mxu1 %v5592_v54 }
 0x500   :  { %1506 = vmatprep.subr.bf16.mxu0 %v5959_v50  ;;  %4260 = vmatprep.subr.bf16.mxu1 %v6777_v0 }
 0x503   :  { %1507 = vmatpush1.bf16.msra.mxu0 %v5963_v53  ;;  %4261 = vmatpush3.bf16.msra.mxu1 %v5597_v55 }
 0x504   :  { %1508 = vmatprep.subr.bf16.mxu0 %v5967_v51  ;;  %4262 = vmatprep.subr.bf16.mxu1 %v6777_v0 }
 0x507   :  { %1509 = vmatpush1.bf16.msra.mxu0 %v5971_v56  ;;  %4263 = vmatpush3.bf16.msra.mxu1 %v5602_v57 }
 0x508   :  { %1632 = vmatprep.subr.bf16.mxu0 %v5890_v30  ;;  %4268 = vmatprep.subr.bf16.mxu1 %v6777_v0 }
 0x5bd   :  { %v1390_v54 = vpop.f32.mrb[16].mxu0  ;;  %v1433_v23 = vpop.f32.mrb[32].mxu1 }
 0x5be   :  { %v4536_v55 = vadd.f32 %v1390_v54, %v5708_v9  ;;  %v1392_v26 = vpop.f32.mrb[17].mxu0  ;;  %v4246_v28 = vpop.f32.mrb[33].mxu1  ;;  %v1468_v37 = vadd.f32 %v5721_v17, %v1433_v23 }
 0x5bf   :  { %v1394_v43 = vpop.f32.mrb[18].mxu0  ;;  %v1436_v60 = vpop.f32.mrb[34].mxu1  ;;  %v4537_v19 = vadd.f32 %v1392_v26, %v5712_v13 }
 0x5c0   :  { %v3823_v1 = vmul.f32 -1.442695, %v4536_v55  ;;  %v4538_v62 = vadd.f32 %v1394_v43, %v5708_v9  ;;  %v1396_v11 = vpop.f32.mrb[19].mxu0  ;;  %v4247_v15 = vpop.f32.mrb[35].mxu1  ;;  %v1469_v54 = vadd.f32 %v5721_v17, %v1436_v60 }
 0x5c1   :  { %v4539_v3 = vadd.f32 %v1396_v11, %v5712_v13  ;;  %v3825_v24 = vmul.f32 -1.442695, %v4537_v19 }
 0x5c2   :  { %4889 = vpow2.f32 %v3823_v1  ;;  %v3824_v57 = vmul.f32 -1.442695, %v4538_v62 }
 0x5c3   :  { %v3826_v22 = vmul.f32 -1.442695, %v4539_v3 }
 0x5c4   :  { %4891 = vpow2.f32 %v3824_v57 }
 0x5c5   :  { %4893 = vpow2.f32 %v3825_v24 }
 0x5c6   :  { %4895 = vpow2.f32 %v3826_v22 }
 0x5cc   :  { %v4890_v21 = vpop.eup %4889 }
 0x5cd   :  { %v1448_v27 = vadd.f32 1.0, %v4890_v21  ;;  %v6025_v21 = vld [vmem:[#allocation10 + $0x80] ss:$12 sps:$4 sm:$0xff]  }
 0x5ce   :  { %v4892_v36 = vpop.eup %4891 }
 0x5cf   :  { %4897 = vrcp.f32 %v1448_v27  ;;  %v1449_v42 = vadd.f32 1.0, %v4892_v36  ;;  %v4894_v31 = vpop.eup %4893  ;;  %v6031_v27 = vld [vmem:[#allocation10 + $0x98] ss:$12 sps:$4 sm:$0xff]   ;;  %v6037_v36 = vld [vmem:[#allocation10 + $0xb0] ss:$12 sps:$4 sm:$0xff]  }
 0x5d0   :  { %v4896_v33 = vpop.eup %4895  ;;  %v1462_v35 = vadd.f32 1.0, %v4894_v31 }
 0x5d1   :  { %4899 = vrcp.f32 %v1449_v42  ;;  %v1463_v38 = vadd.f32 1.0, %v4896_v33 }
 0x5d2   :  { %4901 = vrcp.f32 %v1462_v35 }
 0x5d3   :  { %4903 = vrcp.f32 %v1463_v38 }
 0x5d9   :  { %v4898_v39 = vpop.eup %4897 }
 0x5da   :  { %v1470_v40 = vmul.f32 %v4898_v39, %v1468_v37 }
 0x5db   :  { %v4900_v55 = vpop.eup %4899 }
 0x5dc   :  { %v1472_v26 = vadd.f32 %v1470_v40, %v5684_v18  ;;  %v1471_v28 = vmul.f32 %v4900_v55, %v1469_v54  ;;  %v4902_v1 = vpop.eup %4901 }
 0x5dd   :  { %v4904_v62 = vpop.eup %4903  ;;  %v1476_v11 = vsub.f32 1.0, %v4902_v1  ;;  %v1480_v57 = vmul.f32 %v4902_v1, %v5904_v41  ;;  %v6013_v41 = vld [vmem:[#allocation10 + $0x50] ss:$12 sps:$4 sm:$0xff]  }
 0x5de   :  { %4905 = vtanh.f32 %v1472_v26  ;;  %v1473_v43 = vadd.f32 %v1471_v28, %v5690_v25  ;;  %v1477_v23 = vsub.f32 1.0, %v4904_v62  ;;  %v1481_v60 = vmul.f32 %v4904_v62, %v5906_v8  ;;  %v6019_v8 = vld [vmem:[#allocation10 + $0x68] ss:$12 sps:$4 sm:$0xff]  }
 0x5e0   :  { %4907 = vtanh.f32 %v1473_v43 }
 0x5e8   :  { %v4906_v15 = vpop.eup %4905 }
 0x5e9   :  { %v1478_v19 = vmul.f32 %v4906_v15, %v1476_v11 }
 0x5ea   :  { %v4908_v3 = vpop.eup %4907 }
 0x5eb   :  { %v1479_v24 = vmul.f32 %v4908_v3, %v1477_v23  ;;  %v5987_v22 = vadd.f32 %v1480_v57, %v1478_v19 }
 0x5ed   :  { %v5989_v18 = vadd.f32 %v1481_v60, %v1479_v24 }
 0x5ef   :  { %v5993_v25 = vpack.c.bf16 %v5989_v18, %v5987_v22 }
 0x5f1   :  { %1527 = vmatmul.mubr.bf16.vlgmr.msra.gmra.mrb[20].mxu0 %v5993_v25  ;;  %4265 = vmatmul.mubr.bf16.vlgmr.msra.gmra.mrb[36].mxu1 %v5993_v25 }
 0x5f2   :  { %1633 = vmatpush1.bf16.msra.mxu0 %v5849_v6  ;;  %4269 = vmatpush3.bf16.msra.mxu1 %v5915_v44 }
 0x5f3   :  { %1634 = vmatprep.subr.bf16.mxu0 %v5853_v49  ;;  %4270 = vmatprep.subr.bf16.mxu1 %v6777_v0 }
 0x5f4   :  { %1664 = vmatprep.mubr.bf16.mxu0 %v6778_v58  ;;  %4284 = vmatprep.mubr.msk.bf16.mxu1 %vm5363_vm0, %v6777_v0 }
 0x5f6   :  { %1635 = vmatpush1.bf16.msra.mxu0 %v5860_v2  ;;  %4271 = vmatpush3.bf16.msra.mxu1 %v5924_v59 }
 0x5f7   :  { %1636 = vmatprep.subr.bf16.mxu0 %v5864_v32  ;;  %4272 = vmatprep.subr.bf16.mxu1 %v6777_v0 }
 0x5fa   :  { %1637 = vmatpush1.bf16.msra.mxu0 %v5929_v10  ;;  %4273 = vmatpush3.bf16.msra.mxu1 %v5932_v45 }
 0x5fb   :  { %1638 = vmatprep.subr.bf16.mxu0 %v5935_v46  ;;  %4274 = vmatprep.subr.bf16.mxu1 %v6777_v0 }
 0x5fe   :  { %1639 = vmatpush1.bf16.msra.mxu0 %v5939_v47  ;;  %4275 = vmatpush3.bf16.msra.mxu1 %v6013_v41 }
 0x5ff   :  { %1640 = vmatprep.subr.bf16.mxu0 %v5943_v48  ;;  %4276 = vmatprep.subr.bf16.mxu1 %v6777_v0 }
 0x602   :  { %1641 = vmatpush1.bf16.msra.mxu0 %v5947_v61  ;;  %4277 = vmatpush3.bf16.msra.mxu1 %v6019_v8 }
 0x603   :  { %1642 = vmatprep.subr.bf16.mxu0 %v5951_v7  ;;  %4278 = vmatprep.subr.bf16.mxu1 %v6777_v0 }
 0x606   :  { %1643 = vmatpush1.bf16.msra.mxu0 %v5955_v4  ;;  %4279 = vmatpush3.bf16.msra.mxu1 %v6025_v21 }
 0x607   :  { %1644 = vmatprep.subr.bf16.mxu0 %v5959_v50  ;;  %4280 = vmatprep.subr.bf16.mxu1 %v6777_v0 }
 0x60a   :  { %1645 = vmatpush1.bf16.msra.mxu0 %v5963_v53  ;;  %4281 = vmatpush3.bf16.msra.mxu1 %v6031_v27 }
 0x60b   :  { %1646 = vmatprep.subr.bf16.mxu0 %v5967_v51  ;;  %4282 = vmatprep.subr.bf16.mxu1 %v6777_v0 }
 0x60e   :  { %1647 = vmatpush1.bf16.msra.mxu0 %v5971_v56  ;;  %4283 = vmatpush3.bf16.msra.mxu1 %v6037_v36 }
 0x60f   :  { %1770 = vmatprep.subr.bf16.mxu0 %v5890_v30  ;;  %4288 = vmatprep.subr.bf16.mxu1 %v6777_v0 }
 0x6c4   :  { %v1528_v42 = vpop.f32.mrb[20].mxu0  ;;  %v1571_v31 = vpop.f32.mrb[36].mxu1 }
 0x6c5   :  { %v4540_v33 = vadd.f32 %v1528_v42, %v5708_v9  ;;  %v1530_v35 = vpop.f32.mrb[21].mxu0  ;;  %v4266_v37 = vpop.f32.mrb[37].mxu1  ;;  %v1606_v60 = vadd.f32 %v5721_v17, %v1571_v31 }
 0x6c6   :  { %v1532_v38 = vpop.f32.mrb[22].mxu0  ;;  %v1574_v39 = vpop.f32.mrb[38].mxu1  ;;  %v4541_v28 = vadd.f32 %v1530_v35, %v5712_v13 }
 0x6c7   :  { %v3827_v40 = vmul.f32 -1.442695, %v4540_v33  ;;  %v4542_v54 = vadd.f32 %v1532_v38, %v5708_v9  ;;  %v1534_v55 = vpop.f32.mrb[23].mxu0  ;;  %v4267_v26 = vpop.f32.mrb[39].mxu1  ;;  %v1607_v37 = vadd.f32 %v5721_v17, %v1574_v39 }
 0x6c8   :  { %v4543_v30 = vadd.f32 %v1534_v55, %v5712_v13  ;;  %v3829_v1 = vmul.f32 -1.442695, %v4541_v28 }
 0x6c9   :  { %4909 = vpow2.f32 %v3827_v40  ;;  %v3828_v43 = vmul.f32 -1.442695, %v4542_v54 }
 0x6ca   :  { %v3830_v62 = vmul.f32 -1.442695, %v4543_v30 }
 0x6cb   :  { %4911 = vpow2.f32 %v3828_v43 }
 0x6cc   :  { %4913 = vpow2.f32 %v3829_v1 }
 0x6cd   :  { %4915 = vpow2.f32 %v3830_v62 }
 0x6d3   :  { %v4910_v11 = vpop.eup %4909 }
 0x6d4   :  { %v1586_v15 = vadd.f32 1.0, %v4910_v11 }
 0x6d5   :  { %v4912_v23 = vpop.eup %4911 }
 0x6d6   :  { %4917 = vrcp.f32 %v1586_v15  ;;  %v1587_v19 = vadd.f32 1.0, %v4912_v23  ;;  %v4914_v57 = vpop.eup %4913  ;;  %v6105_v23 = vld [vmem:[%s6756_s4] ss:$0 sm:$0xff] }
 0x6d7   :  { %v4916_v3 = vpop.eup %4915  ;;  %v1600_v24 = vadd.f32 1.0, %v4914_v57 }
 0x6d8   :  { %4919 = vrcp.f32 %v1587_v19  ;;  %v1601_v42 = vadd.f32 1.0, %v4916_v3 }
 0x6d9   :  { %4921 = vrcp.f32 %v1600_v24 }
 0x6da   :  { %4923 = vrcp.f32 %v1601_v42 }
 0x6e0   :  { %v4918_v33 = vpop.eup %4917 }
 0x6e1   :  { %v1608_v35 = vmul.f32 %v4918_v33, %v1606_v60 }
 0x6e2   :  { %v4920_v38 = vpop.eup %4919 }
 0x6e3   :  { %v1610_v40 = vadd.f32 %v1608_v35, %v5681_v16  ;;  %v1609_v54 = vmul.f32 %v4920_v38, %v1607_v37  ;;  %v4922_v26 = vpop.eup %4921 }
 0x6e4   :  { %v4924_v28 = vpop.eup %4923  ;;  %v1614_v43 = vsub.f32 1.0, %v4922_v26  ;;  %v1618_v62 = vmul.f32 %v4922_v26, %v5987_v22 }
 0x6e5   :  { %4925 = vtanh.f32 %v1610_v40  ;;  %v1611_v55 = vadd.f32 %v1609_v54, %v5687_v20  ;;  %v1615_v31 = vsub.f32 1.0, %v4924_v28  ;;  %v1619_v17 = vmul.f32 %v4924_v28, %v5989_v18 }
 0x6e7   :  { %4927 = vtanh.f32 %v1611_v55 }
 0x6ef   :  { %v4926_v30 = vpop.eup %4925 }
 0x6f0   :  { %v1616_v1 = vmul.f32 %v4926_v30, %v1614_v43 }
 0x6f1   :  { %v4928_v11 = vpop.eup %4927 }
 0x6f2   :  { %v1617_v15 = vmul.f32 %v4928_v11, %v1615_v31  ;;  %v6052_v39 = vadd.f32 %v1618_v62, %v1616_v1  ;;  %v4737_v11 = vld [vmem:[#allocation11] ss:$12 sps:$4 sm:$0xff]  }
 0x6f4   :  { %v6054_v16 = vadd.f32 %v1619_v17, %v1617_v15  ;;  %v4743_v15 = vld [vmem:[#allocation11 + $0x1c] ss:$12 sps:$4 sm:$0xff]   ;;  %v4744_v17 = vld [vmem:[#allocation11 + $0x20] ss:$12 sps:$4 sm:$0xff]  }
 0x6f6   :  { %v6058_v20 = vpack.c.bf16 %v6054_v16, %v6052_v39 }
 0x6f8   :  { %1665 = vmatmul.mubr.bf16.vlgmr.msra.gmra.mrb[24].mxu0 %v6058_v20  ;;  %4285 = vmatmul.mubr.bf16.vlgmr.msra.gmra.mrb[40].mxu1 %v6058_v20 }
 0x6f9   :  { %1771 = vmatpush1.bf16.msra.mxu0 %v5849_v6  ;;  %4289 = vmatpush3.bf16.msra.mxu1 %v5915_v44  ;;  %v4739_v6 = vld [vmem:[#allocation11 + $0x4] ss:$12 sps:$4 sm:$0xff]  }
 0x6fa   :  { %1772 = vmatprep.subr.bf16.mxu0 %v5853_v49  ;;  %4290 = vmatprep.subr.bf16.mxu1 %v6777_v0  ;;  %v6095_v49 = vld [vmem:[#allocation11 + $0x8] ss:$12 sps:$4 sm:$0xff]  }
 0x6fb   :  { %1802 = vmatprep.mubr.bf16.mxu0 %v6778_v58  ;;  %4304 = vmatprep.mubr.msk.bf16.mxu1 %vm5363_vm0, %v6777_v0 }
 0x6fd   :  { %1773 = vmatpush1.bf16.msra.mxu0 %v5860_v2  ;;  %4291 = vmatpush3.bf16.msra.mxu1 %v5924_v59 }
 0x6fe   :  { %1774 = vmatprep.subr.bf16.mxu0 %v5864_v32  ;;  %4292 = vmatprep.subr.bf16.mxu1 %v6777_v0 }
 0x701   :  { %1775 = vmatpush1.bf16.msra.mxu0 %v5929_v10  ;;  %4293 = vmatpush3.bf16.msra.mxu1 %v5932_v45 }
 0x702   :  { %1776 = vmatprep.subr.bf16.mxu0 %v5935_v46  ;;  %4294 = vmatprep.subr.bf16.mxu1 %v6777_v0 }
 0x705   :  { %1777 = vmatpush1.bf16.msra.mxu0 %v5939_v47  ;;  %4295 = vmatpush3.bf16.msra.mxu1 %v6013_v41 }
 0x706   :  { %1778 = vmatprep.subr.bf16.mxu0 %v5943_v48  ;;  %4296 = vmatprep.subr.bf16.mxu1 %v6777_v0 }
 0x709   :  { %1779 = vmatpush1.bf16.msra.mxu0 %v5947_v61  ;;  %4297 = vmatpush3.bf16.msra.mxu1 %v6019_v8 }
 0x70a   :  { %1780 = vmatprep.subr.bf16.mxu0 %v5951_v7  ;;  %4298 = vmatprep.subr.bf16.mxu1 %v6777_v0 }
 0x70d   :  { %1781 = vmatpush1.bf16.msra.mxu0 %v5955_v4  ;;  %4299 = vmatpush3.bf16.msra.mxu1 %v6025_v21 }
 0x70e   :  { %1782 = vmatprep.subr.bf16.mxu0 %v5959_v50  ;;  %4300 = vmatprep.subr.bf16.mxu1 %v6777_v0 }
 0x711   :  { %1783 = vmatpush1.bf16.msra.mxu0 %v5963_v53  ;;  %4301 = vmatpush3.bf16.msra.mxu1 %v6031_v27 }
 0x712   :  { %1784 = vmatprep.subr.bf16.mxu0 %v5967_v51  ;;  %4302 = vmatprep.subr.bf16.mxu1 %v6777_v0 }
 0x715   :  { %1785 = vmatpush1.bf16.msra.mxu0 %v5971_v56  ;;  %4303 = vmatpush3.bf16.msra.mxu1 %v6037_v36 }
 0x716   :  { %2121 = vmatprep.subr.bf16.mxu1 %v4739_v6  ;;  %4308 = vmatprep.subr.bf16.mxu0 %v6095_v49  ;;  %v4748_v6 = vld [vmem:[#allocation11 + $0x38] ss:$12 sps:$4 sm:$0xff]  }
 0x7cb   :  { %v1666_v2 = vpop.f32.mrb[24].mxu0  ;;  %v1709_v32 = vpop.f32.mrb[40].mxu1 }
 0x7cc   :  { %v4544_v44 = vadd.f32 %v1666_v2, %v5708_v9  ;;  %v1668_v59 = vpop.f32.mrb[25].mxu0  ;;  %v4286_v10 = vpop.f32.mrb[41].mxu1  ;;  %v1744_v19 = vadd.f32 %v6105_v23, %v1709_v32  ;;  %v4745_v2 = vld [vmem:[#allocation11 + $0x30] ss:$12 sps:$4 sm:$0xff]   ;;  %v4751_v32 = vld [vmem:[#allocation11 + $0x4c] ss:$12 sps:$4 sm:$0xff]  }
 0x7cd   :  { %v1670_v45 = vpop.f32.mrb[26].mxu0  ;;  %v1712_v46 = vpop.f32.mrb[42].mxu1  ;;  %v4545_v4 = vadd.f32 %v1668_v59, %v5712_v13  ;;  %v4749_v59 = vld [vmem:[#allocation11 + $0x48] ss:$12 sps:$4 sm:$0xff]  }
 0x7ce   :  { %v3831_v47 = vmul.f32 -1.442695, %v4544_v44  ;;  %v4546_v48 = vadd.f32 %v1670_v45, %v5708_v9  ;;  %v1672_v61 = vpop.f32.mrb[27].mxu0  ;;  %v4287_v7 = vpop.f32.mrb[43].mxu1  ;;  %v1745_v60 = vadd.f32 %v6105_v23, %v1712_v46  ;;  %v4752_v44 = vld [vmem:[#allocation11 + $0x50] ss:$12 sps:$4 sm:$0xff]  }
 0x7cf   :  { %v4547_v53 = vadd.f32 %v1672_v61, %v5712_v13  ;;  %v3833_v51 = vmul.f32 -1.442695, %v4545_v4  ;;  %v4756_v10 = vld [vmem:[#allocation11 + $0x68] ss:$12 sps:$4 sm:$0xff]   ;;  %v4753_v45 = vld [vmem:[#allocation11 + $0x60] ss:$12 sps:$4 sm:$0xff]  }
 0x7d0   :  { %4929 = vpow2.f32 %v3831_v47  ;;  %v3832_v50 = vmul.f32 -1.442695, %v4546_v48  ;;  %v4759_v46 = vld [vmem:[#allocation11 + $0x7c] ss:$12 sps:$4 sm:$0xff]   ;;  %v4760_v47 = vld [vmem:[#allocation11 + $0x80] ss:$12 sps:$4 sm:$0xff]  }
 0x7d1   :  { %v3834_v56 = vmul.f32 -1.442695, %v4547_v53  ;;  %v4757_v48 = vld [vmem:[#allocation11 + $0x78] ss:$12 sps:$4 sm:$0xff]   ;;  %v4763_v61 = vld [vmem:[#allocation11 + $0x94] ss:$12 sps:$4 sm:$0xff]  }
 0x7d2   :  { %4931 = vpow2.f32 %v3832_v50  ;;  %v4764_v7 = vld [vmem:[#allocation11 + $0x98] ss:$12 sps:$4 sm:$0xff]   ;;  %v4761_v4 = vld [vmem:[#allocation11 + $0x90] ss:$12 sps:$4 sm:$0xff]  }
 0x7d3   :  { %4933 = vpow2.f32 %v3833_v51  ;;  %v4767_v50 = vld [vmem:[#allocation11 + $0xac] ss:$12 sps:$4 sm:$0xff]   ;;  %v4768_v53 = vld [vmem:[#allocation11 + $0xb0] ss:$12 sps:$4 sm:$0xff]   ;;  %v4765_v51 = vld [vmem:[#allocation11 + $0xa8] ss:$12 sps:$4 sm:$0xff]  }
 0x7d4   :  { %4935 = vpow2.f32 %v3834_v56  ;;  %v6126_v56 = vld [vmem:[#allocation13 + $0x4] ss:$12 sps:$4 sm:$0xff]  }
 0x7da   :  { %v4930_v22 = vpop.eup %4929 }
 0x7db   :  { %v1724_v18 = vadd.f32 1.0, %v4930_v22  ;;  %v6129_v22 = vld [vmem:[#allocation13] ss:$12 sps:$4 sm:$0xff]  }
 0x7dc   :  { %v4932_v41 = vpop.eup %4931 }
 0x7dd   :  { %4937 = vrcp.f32 %v1724_v18  ;;  %v1725_v8 = vadd.f32 1.0, %v4932_v41  ;;  %v4934_v21 = vpop.eup %4933  ;;  %v6170_v18 = vld [vmem:[#allocation13 + $0x64] ss:$12 sps:$4 sm:$0xff]   ;;  %v6173_v41 = vld [vmem:[#allocation13 + $0x60] ss:$12 sps:$4 sm:$0xff]  }
 0x7de   :  { %v4936_v27 = vpop.eup %4935  ;;  %v1738_v36 = vadd.f32 1.0, %v4934_v21  ;;  %v6179_v21 = vld [vmem:[#allocation13 + $0x78] ss:$12 sps:$4 sm:$0xff]  }
 0x7df   :  { %4939 = vrcp.f32 %v1725_v8  ;;  %v1739_v57 = vadd.f32 1.0, %v4936_v27  ;;  %v6176_v8 = vld [vmem:[#allocation13 + $0x7c] ss:$12 sps:$4 sm:$0xff]   ;;  %v6182_v27 = vld [vmem:[#allocation13 + $0x94] ss:$12 sps:$4 sm:$0xff]  }
 0x7e0   :  { %4941 = vrcp.f32 %v1738_v36  ;;  %v6185_v36 = vld [vmem:[#allocation13 + $0x90] ss:$12 sps:$4 sm:$0xff]  }
 0x7e1   :  { %4943 = vrcp.f32 %v1739_v57  ;;  %v6190_v57 = vld [vmem:[#allocation13 + $0xac] ss:$12 sps:$4 sm:$0xff]  }
 0x7e7   :  { %v4938_v3 = vpop.eup %4937 }
 0x7e8   :  { %v1746_v24 = vmul.f32 %v4938_v3, %v1744_v19  ;;  %v6188_v19 = vld [vmem:[#allocation13 + $0x8] ss:$12 sps:$4 sm:$0xff]   ;;  %v6193_v3 = vld [vmem:[#allocation13 + $0x20] ss:$12 sps:$4 sm:$0xff]  }
 0x7e9   :  { %v4940_v42 = vpop.eup %4939 }
 0x7ea   :  { %v1748_v33 = vadd.f32 %v1746_v24, %v5696_v34  ;;  %v1747_v35 = vmul.f32 %v4940_v42, %v1745_v60  ;;  %v4942_v38 = vpop.eup %4941  ;;  %v6196_v24 = vld [vmem:[#allocation13 + $0xa8] ss:$12 sps:$4 sm:$0xff]   ;;  %v6203_v60 = vld [vmem:[#allocation13 + $0x38] ss:$12 sps:$4 sm:$0xff]   ;;  %v6207_v42 = vld [vmem:[#allocation13 + $0x50] ss:$12 sps:$4 sm:$0xff]  }
 0x7eb   :  { %v4944_v40 = vpop.eup %4943  ;;  %v1752_v54 = vsub.f32 1.0, %v4942_v38  ;;  %v1756_v43 = vmul.f32 %v4942_v38, %v6052_v39  ;;  %v4741_v39 = vld [vmem:[#allocation11 + $0x18] ss:$12 sps:$4 sm:$0xff]   ;;  %v6223_v38 = vld [vmem:[#allocation13 + $0xb0] ss:$12 sps:$4 sm:$0xff]  }
 0x7ec   :  { %4945 = vtanh.f32 %v1748_v33  ;;  %v1749_v37 = vadd.f32 %v1747_v35, %v5702_v52  ;;  %v1753_v26 = vsub.f32 1.0, %v4944_v40  ;;  %v1757_v1 = vmul.f32 %v4944_v40, %v6054_v16  ;;  %v4747_v16 = vld [vmem:[#allocation11 + $0x34] ss:$12 sps:$4 sm:$0xff]  }
 0x7ed   :  { %v6211_v33 = vld [vmem:[#allocation13 + $0x68] ss:$12 sps:$4 sm:$0xff]   ;;  %v6215_v35 = vld [vmem:[#allocation13 + $0x80] ss:$12 sps:$4 sm:$0xff]  }
 0x7ee   :  { %4947 = vtanh.f32 %v1749_v37  ;;  %v6219_v37 = vld [vmem:[#allocation13 + $0x98] ss:$12 sps:$4 sm:$0xff]  }
 0x7f6   :  { %v4946_v55 = vpop.eup %4945 }
 0x7f7   :  { %v1754_v28 = vmul.f32 %v4946_v55, %v1752_v54 }
 0x7f8   :  { %v4948_v30 = vpop.eup %4947 }
 0x7f9   :  { %v1755_v31 = vmul.f32 %v4948_v30, %v1753_v26  ;;  %v6113_v62 = vadd.f32 %v1756_v43, %v1754_v28 }
 0x7fb   :  { %v6115_v34 = vadd.f32 %v1757_v1, %v1755_v31 }
 0x7fd   :  { %v6119_v52 = vpack.c.bf16 %v6115_v34, %v6113_v62 }
 0x7ff   :  { %1803 = vmatmul.mubr.bf16.vlgmr.msra.gmra.mrb[28].mxu0 %v6119_v52  ;;  %4305 = vmatmul.mubr.bf16.vlgmr.msra.gmra.mrb[44].mxu1 %v6119_v52 }
 0x800   :  { %2122 = vmatpush1.bf16.msra.mxu1 %v4737_v11  ;;  %4309 = vmatpush3.bf16.msra.mxu0 %v6095_v49  ;;  %v4755_v49 = vld [vmem:[#allocation11 + $0x64] ss:$12 sps:$4 sm:$0xff]  }
 0x801   :  { %4324 = vmatprep.mubr.bf16.mxu0 %v5735_v63  ;;  %2123 = vmatprep.subr.bf16.mxu1 %v4743_v15 }
 0x802   :  { %4310 = vmatprep.subr.bf16.mxu0 %v4744_v17  ;;  %2153 = vmatprep.mubr.bf16.mxu1 %v6778_v58 }
 0x804   :  { %2124 = vmatpush1.bf16.msra.mxu1 %v4741_v39  ;;  %4311 = vmatpush3.bf16.msra.mxu0 %v4744_v17 }
 0x805   :  { %2125 = vmatprep.subr.bf16.mxu1 %v4747_v16  ;;  %4312 = vmatprep.subr.bf16.mxu0 %v4748_v6 }
 0x808   :  { %2126 = vmatpush1.bf16.msra.mxu1 %v4745_v2  ;;  %4313 = vmatpush3.bf16.msra.mxu0 %v4748_v6 }
 0x809   :  { %2127 = vmatprep.subr.bf16.mxu1 %v4751_v32  ;;  %4314 = vmatprep.subr.bf16.mxu0 %v4752_v44 }
 0x80c   :  { %2128 = vmatpush1.bf16.msra.mxu1 %v4749_v59  ;;  %4315 = vmatpush3.bf16.msra.mxu0 %v4752_v44 }
 0x80d   :  { %2129 = vmatprep.subr.bf16.mxu1 %v4755_v49  ;;  %4316 = vmatprep.subr.bf16.mxu0 %v4756_v10 }
 0x810   :  { %2130 = vmatpush1.bf16.msra.mxu1 %v4753_v45  ;;  %4317 = vmatpush3.bf16.msra.mxu0 %v4756_v10 }
 0x811   :  { %2131 = vmatprep.subr.bf16.mxu1 %v4759_v46  ;;  %4318 = vmatprep.subr.bf16.mxu0 %v4760_v47 }
 0x814   :  { %2132 = vmatpush1.bf16.msra.mxu1 %v4757_v48  ;;  %4319 = vmatpush3.bf16.msra.mxu0 %v4760_v47 }
 0x815   :  { %2133 = vmatprep.subr.bf16.mxu1 %v4763_v61  ;;  %4320 = vmatprep.subr.bf16.mxu0 %v4764_v7 }
 0x818   :  { %2134 = vmatpush1.bf16.msra.mxu1 %v4761_v4  ;;  %4321 = vmatpush3.bf16.msra.mxu0 %v4764_v7 }
 0x819   :  { %2135 = vmatprep.subr.bf16.mxu1 %v4767_v50  ;;  %4322 = vmatprep.subr.bf16.mxu0 %v4768_v53 }
 0x81c   :  { %2136 = vmatpush1.bf16.msra.mxu1 %v4765_v51  ;;  %4323 = vmatpush3.bf16.msra.mxu0 %v4768_v53  ;;  %v6779_v53 = vld [vmem:[#allocation23_spill] sm:$0xff] }
 0x81d   :  { %2523 = vmatprep.subr.bf16.mxu1 %v6126_v56  ;;  %4340 = vmatprep.subr.bf16.mxu0 %v6777_v0 }
 0x81f   :  { %2154 = vmatmul.mubr.bf16.vlgmr.msra.gmra.mrb[48].mxu1 %v5735_v63  ;;  %4325 = vmatmul.mubr.bf16.vlgmr.msra.gmra.mrb[32].mxu0 %v5790_v5  ;;  %v6153_v63 = vld [vmem:[#allocation13 + $0x1c] ss:$12 sps:$4 sm:$0xff]  }
 0x820   :  { %4328 = vmatprep.mubr.bf16.mxu0 %v5845_v14  ;;  %2163 = vmatprep.mubr.bf16.mxu1 %v6778_v58 }
 0x821   :  { %2524 = vmatpush1.bf16.msra.mxu1 %v6129_v22  ;;  %4341 = vmatpush3.bf16.msra.mxu0 %v6188_v19 }
 0x822   :  { %2525 = vmatprep.subr.bf16.mxu1 %v6153_v63  ;;  %4342 = vmatprep.subr.bf16.mxu0 %v6777_v0 }
 0x825   :  { %4343 = vmatpush3.bf16.msra.mxu0 %v6193_v3 }
 0x826   :  { %4344 = vmatprep.subr.bf16.mxu0 %v6777_v0 }
 0x827   :  { %2164 = vmatmul.mubr.bf16.gmra.mrb[52].mxu1 %v5790_v5  ;;  %4329 = vmatmul.mubr.bf16.gmra.mrb[36].mxu0 %v5910_v12  ;;  %v6155_v5 = vld [vmem:[#allocation13 + $0x18] ss:$12 sps:$4 sm:$0xff]  }
 0x828   :  { %4332 = vmatprep.mubr.bf16.mxu0 %v5993_v25  ;;  %2173 = vmatprep.mubr.bf16.mxu1 %v6778_v58 }
 0x829   :  { %2526 = vmatpush1.bf16.msra.mxu1 %v6155_v5  ;;  %4345 = vmatpush3.bf16.msra.mxu0 %v6203_v60 }
 0x82a   :  { %4346 = vmatprep.subr.bf16.mxu0 %v6777_v0 }
 0x82d   :  { %4347 = vmatpush3.bf16.msra.mxu0 %v6207_v42 }
 0x82e   :  { %4348 = vmatprep.subr.bf16.mxu0 %v6777_v0 }
 0x82f   :  { %2174 = vmatmul.mubr.bf16.gmra.mrb[56].mxu1 %v5845_v14  ;;  %4333 = vmatmul.mubr.bf16.gmra.mrb[40].mxu0 %v6058_v20  ;;  %v6159_v14 = vld [vmem:[#allocation13 + $0x34] ss:$12 sps:$4 sm:$0xff]  }
 0x830   :  { %4336 = vmatprep.mubr.bf16.mxu0 %v6119_v52  ;;  %2183 = vmatprep.mubr.bf16.mxu1 %v6778_v58 }
 0x831   :  { %2527 = vmatprep.subr.bf16.mxu1 %v6159_v14  ;;  %4349 = vmatpush3.bf16.msra.mxu0 %v6211_v33 }
 0x832   :  { %4350 = vmatprep.subr.bf16.mxu0 %v6777_v0 }
 0x835   :  { %4351 = vmatpush3.bf16.msra.mxu0 %v6215_v35 }
 0x836   :  { %4352 = vmatprep.subr.bf16.mxu0 %v6777_v0 }
 0x837   :  { %2184 = vmatmul.mubr.bf16.gmra.mrb[60].mxu1 %v5910_v12  ;;  %v6161_v12 = vld [vmem:[#allocation13 + $0x30] ss:$12 sps:$4 sm:$0xff]  }
 0x838   :  { %2193 = vmatprep.mubr.bf16.mxu1 %v6778_v58  ;;  %2528 = vmatpush1.bf16.msra.mxu1 %v6161_v12 }
 0x839   :  { %4353 = vmatpush3.bf16.msra.mxu0 %v6219_v37 }
 0x83a   :  { %4354 = vmatprep.subr.bf16.mxu0 %v6777_v0 }
 0x83d   :  { %4355 = vmatpush3.bf16.msra.mxu0 %v6223_v38 }
 0x83e   :  { %4360 = vmatprep.subr.bf16.mxu0 %v6777_v0 }
 0x83f   :  { %2194 = vmatmul.mubr.bf16.gmra.mrb[64].mxu1 %v5993_v25  ;;  %v6163_v25 = vld [vmem:[#allocation13 + $0x4c] ss:$12 sps:$4 sm:$0xff]  }
 0x840   :  { %2203 = vmatprep.mubr.bf16.mxu1 %v6778_v58  ;;  %2529 = vmatprep.subr.bf16.mxu1 %v6163_v25 }
 0x847   :  { %2204 = vmatmul.mubr.bf16.gmra.mrb[68].mxu1 %v6058_v20  ;;  %v6167_v20 = vld [vmem:[#allocation13 + $0x48] ss:$12 sps:$4 sm:$0xff]  }
 0x848   :  { %2213 = vmatprep.mubr.bf16.mxu1 %v6778_v58  ;;  %2530 = vmatpush1.bf16.msra.mxu1 %v6167_v20 }
 0x849   :  { %2531 = vmatprep.subr.bf16.mxu1 %v6170_v18 }
 0x84c   :  { %2532 = vmatpush1.bf16.msra.mxu1 %v6173_v41 }
 0x84d   :  { %2533 = vmatprep.subr.bf16.mxu1 %v6176_v8 }
 0x84f   :  { %2214 = vmatmul.mubr.bf16.gmra.mrb[72].mxu1 %v6119_v52 }
 0x850   :  { %2223 = vmatprep.mubr.bf16.mxu1 %v6778_v58  ;;  %2534 = vmatpush1.bf16.msra.mxu1 %v6179_v21 }
 0x851   :  { %2535 = vmatprep.subr.bf16.mxu1 %v6182_v27 }
 0x854   :  { %2536 = vmatpush1.bf16.msra.mxu1 %v6185_v36 }
 0x855   :  { %2537 = vmatprep.subr.bf16.mxu1 %v6190_v57 }
 0x858   :  { %2538 = vmatpush1.bf16.msra.mxu1 %v6196_v24 }
 0x859   :  { %2658 = vmatprep.subr.bf16.mxu1 %v6126_v56 }
 0x8d2   :  { %v1804_v40 = vpop.f32.mrb[28].mxu0  ;;  %v1847_v54 = vpop.f32.mrb[44].mxu1 }
 0x8d3   :  { %v4548_v55 = vadd.f32 %v1804_v40, %v5708_v9  ;;  %v1806_v26 = vpop.f32.mrb[29].mxu0  ;;  %v4306_v28 = vpop.f32.mrb[45].mxu1  ;;  %v1882_v45 = vadd.f32 %v6105_v23, %v1847_v54 }
 0x8d4   :  { %v1808_v43 = vpop.f32.mrb[30].mxu0  ;;  %v1850_v30 = vpop.f32.mrb[46].mxu1  ;;  %v4549_v15 = vadd.f32 %v1806_v26, %v5712_v13 }
 0x8d5   :  { %v3835_v31 = vmul.f32 -1.442695, %v4548_v55  ;;  %v4550_v1 = vadd.f32 %v1808_v43, %v5708_v9  ;;  %v1810_v11 = vpop.f32.mrb[31].mxu0  ;;  %v4307_v52 = vpop.f32.mrb[47].mxu1 }
 0x8d6   :  { %v4551_v39 = vadd.f32 %v1810_v11, %v5712_v13  ;;  %v3837_v16 = vmul.f32 -1.442695, %v4549_v15  ;;  %v1883_v13 = vadd.f32 %v6105_v23, %v1850_v30 }
 0x8d7   :  { %4949 = vpow2.f32 %v3835_v31  ;;  %v3836_v17 = vmul.f32 -1.442695, %v4550_v1 }
 0x8d8   :  { %v3838_v6 = vmul.f32 -1.442695, %v4551_v39 }
 0x8d9   :  { %4951 = vpow2.f32 %v3836_v17 }
 0x8da   :  { %4953 = vpow2.f32 %v3837_v16 }
 0x8db   :  { %4955 = vpow2.f32 %v3838_v6 }
 0x8e1   :  { %v4950_v2 = vpop.eup %4949 }
 0x8e2   :  { %v1862_v32 = vadd.f32 1.0, %v4950_v2 }
 0x8e3   :  { %v4952_v44 = vpop.eup %4951 }
 0x8e4   :  { %4957 = vrcp.f32 %v1862_v32  ;;  %v1863_v59 = vadd.f32 1.0, %v4952_v44  ;;  %v4954_v9 = vpop.eup %4953 }
 0x8e5   :  { %v4956_v49 = vpop.eup %4955  ;;  %v1876_v10 = vadd.f32 1.0, %v4954_v9 }
 0x8e6   :  { %4959 = vrcp.f32 %v1863_v59  ;;  %v1877_v46 = vadd.f32 1.0, %v4956_v49 }
 0x8e7   :  { %4961 = vrcp.f32 %v1876_v10 }
 0x8e8   :  { %4963 = vrcp.f32 %v1877_v46 }
 0x8ee   :  { %v4958_v47 = vpop.eup %4957 }
 0x8ef   :  { %v1884_v48 = vmul.f32 %v4958_v47, %v1882_v45  ;;  %v1967_v47 = vld [vmem:[%s6759_s7] sm:$0x7] }
 0x8f0   :  { %v4960_v61 = vpop.eup %4959 }
 0x8f1   :  { %v1886_v7 = vadd.f32 %v1884_v48, %v5693_v29  ;;  %v1885_v4 = vmul.f32 %v4960_v61, %v1883_v13  ;;  %v4962_v26 = vpop.eup %4961  ;;  %v6783_v48 = vld [vmem:[#allocation22_spill] sm:$0xff] }
 0x8f2   :  { %v6235_v50 = vpop.f32.mrb[32].mxu0  ;;  %v4964_v23 = vpop.eup %4963  ;;  %v1890_v30 = vsub.f32 1.0, %v4962_v26  ;;  %v1894_v15 = vmul.f32 %v4962_v26, %v6113_v62  ;;  %v6780_v62 = vmov 0.0|0.0   ;;  %v6784_v13 = vsub.s32 0, %v6783_v48 }
 0x8f3   :  { %4965 = vtanh.f32 %v1886_v7  ;;  %v1887_v51 = vadd.f32 %v1885_v4, %v6779_v53  ;;  %v6238_v40 = vpop.f32.mrb[33].mxu0  ;;  %v1891_v11 = vsub.f32 1.0, %v4964_v23  ;;  %v1895_v16 = vmul.f32 %v4964_v23, %v6115_v34 }
 0x8f4   :  { %v6240_v55 = vpop.f32.mrb[34].mxu0  ;;  %v6315_v61 = vrot.slane %v1967_v47, %v6784_v13  ;;  %v6785_v4 = vsub.s32 1, %v6783_v48 }
 0x8f5   :  { %4967 = vtanh.f32 %v1887_v51  ;;  %v6242_v54 = vpop.f32.mrb[35].mxu0 }
 0x8f6   :  { %v6319_v53 = vrot.slane %v1967_v47, %v6785_v4 }
 0x8fa   :  { %v6244_v28 = vpop.f32.mrb[36].mxu0 }
 0x8fb   :  { %v6246_v43 = vpop.f32.mrb[37].mxu0 }
 0x8fc   :  { %v6248_v29 = vpop.f32.mrb[38].mxu0 }
 0x8fd   :  { %v4966_v31 = vpop.eup %4965  ;;  %v6250_v1 = vpop.f32.mrb[39].mxu0 }
 0x8fe   :  { %v1892_v52 = vmul.f32 %v4966_v31, %v1890_v30 }
 0x8ff   :  { %v4968_v17 = vpop.eup %4967 }
 0x900   :  { %v1893_v39 = vmul.f32 %v4968_v17, %v1891_v11  ;;  %v1896_v6 = vadd.f32 %v1894_v15, %v1892_v52 }
 0x902   :  { %v6254_v2 = vpop.f32.mrb[40].mxu0  ;;  %v1897_v32 = vadd.f32 %v1895_v16, %v1893_v39 }
 0x903   :  { %v6256_v44 = vpop.f32.mrb[41].mxu0 }
 0x904   :  { %v6258_v59 = vpop.f32.mrb[42].mxu0  ;;  %v1898_v9 = vpack.c.bf16 %v1897_v32, %v1896_v6 }
 0x905   :  { %v6260_v49 = vpop.f32.mrb[43].mxu0 }
 0x906   :  { %2224 = vmatmul.mubr.bf16.gmra.mrb[76].mxu1 %v1898_v9  ;;  %4337 = vmatmul.mubr.bf16.gmra.mrb[44].mxu0 %v1898_v9 }
 0x907   :  { %2555 = vmatprep.mubr.bf16.mxu1 %v6778_v58  ;;  %4356 = vmatprep.mubr.msk.bf16.mxu0 %vm5363_vm0, %v6777_v0 }
 0x90e   :  { %2556 = vmatmul.mubr.bf16.vlgmr.msra.gmra.mrb[48].mxu1 %v6780_v62  ;;  %4357 = vmatmul.mubr.bf16.vlgmr.msra.gmra.mrb[48].mxu0 %v6780_v62 }
 0x90f   :  { %2659 = vmatpush1.bf16.msra.mxu1 %v6129_v22  ;;  %4361 = vmatpush3.bf16.msra.mxu0 %v6188_v19 }
 0x910   :  { %2660 = vmatprep.subr.bf16.mxu1 %v6153_v63  ;;  %4362 = vmatprep.subr.bf16.mxu0 %v6777_v0 }
 0x911   :  { %2690 = vmatprep.mubr.bf16.mxu1 %v6778_v58  ;;  %4376 = vmatprep.mubr.msk.bf16.mxu0 %vm5363_vm0, %v6777_v0 }
 0x913   :  { %2661 = vmatpush1.bf16.msra.mxu1 %v6155_v5  ;;  %4363 = vmatpush3.bf16.msra.mxu0 %v6193_v3 }
 0x914   :  { %2662 = vmatprep.subr.bf16.mxu1 %v6159_v14  ;;  %4364 = vmatprep.subr.bf16.mxu0 %v6777_v0 }
 0x917   :  { %2663 = vmatpush1.bf16.msra.mxu1 %v6161_v12  ;;  %4365 = vmatpush3.bf16.msra.mxu0 %v6203_v60 }
 0x918   :  { %2664 = vmatprep.subr.bf16.mxu1 %v6163_v25  ;;  %4366 = vmatprep.subr.bf16.mxu0 %v6777_v0 }
 0x91b   :  { %2665 = vmatpush1.bf16.msra.mxu1 %v6167_v20  ;;  %4367 = vmatpush3.bf16.msra.mxu0 %v6207_v42 }
 0x91c   :  { %2666 = vmatprep.subr.bf16.mxu1 %v6170_v18  ;;  %4368 = vmatprep.subr.bf16.mxu0 %v6777_v0 }
 0x91f   :  { %2667 = vmatpush1.bf16.msra.mxu1 %v6173_v41  ;;  %4369 = vmatpush3.bf16.msra.mxu0 %v6211_v33 }
 0x920   :  { %2668 = vmatprep.subr.bf16.mxu1 %v6176_v8  ;;  %4370 = vmatprep.subr.bf16.mxu0 %v6777_v0 }
 0x923   :  { %2669 = vmatpush1.bf16.msra.mxu1 %v6179_v21  ;;  %4371 = vmatpush3.bf16.msra.mxu0 %v6215_v35 }
 0x924   :  { %2670 = vmatprep.subr.bf16.mxu1 %v6182_v27  ;;  %4372 = vmatprep.subr.bf16.mxu0 %v6777_v0 }
 0x927   :  { %2671 = vmatpush1.bf16.msra.mxu1 %v6185_v36  ;;  %4373 = vmatpush3.bf16.msra.mxu0 %v6219_v37 }
 0x928   :  { %2672 = vmatprep.subr.bf16.mxu1 %v6190_v57  ;;  %4374 = vmatprep.subr.bf16.mxu0 %v6777_v0 }
 0x92b   :  { %2673 = vmatpush1.bf16.msra.mxu1 %v6196_v24  ;;  %4375 = vmatpush3.bf16.msra.mxu0 %v6223_v38 }
 0x92c   :  { %2793 = vmatprep.subr.bf16.mxu1 %v6126_v56  ;;  %4380 = vmatprep.subr.bf16.mxu0 %v6777_v0 }
 0x9d9   :  { %v6302_v34 = vpop.f32.mrb[44].mxu0 }
 0x9da   :  { %6781 = vst [vmem:[#allocation23_spill] sm:$0xff] %v6302_v34  ;;  %v6304_v10 = vpop.f32.mrb[45].mxu0 }
 0x9db   :  { %v6306_v45 = vpop.f32.mrb[46].mxu0 }
 0x9dc   :  { %6782 = vst [vmem:[#allocation24_spill] sm:$0xff] %v6306_v45  ;;  %v6308_v46 = vpop.f32.mrb[47].mxu0 }
 0x9e1   :  { %v2557_v7 = vpop.f32.mrb[48].mxu1  ;;  %v2600_v51 = vpop.f32.mrb[48].mxu0 }
 0x9e2   :  { %v4552_v26 = vadd.f32 %v2557_v7, %v6315_v61  ;;  %v2559_v23 = vpop.f32.mrb[49].mxu1  ;;  %v4358_v30 = vpop.f32.mrb[49].mxu0 }
 0x9e3   :  { %v2561_v31 = vpop.f32.mrb[50].mxu1  ;;  %v2603_v11 = vpop.f32.mrb[50].mxu0  ;;  %v4553_v16 = vadd.f32 %v2559_v23, %v6319_v53  ;;  %v6328_v23 = vld [vmem:[%s6760_s8] ss:$0 sm:$0xff] }
 0x9e4   :  { %v3888_v52 = vmul.f32 -1.442695, %v4552_v26  ;;  %v4554_v15 = vadd.f32 %v2561_v31, %v6315_v61  ;;  %v2563_v17 = vpop.f32.mrb[51].mxu1  ;;  %v4359_v39 = vpop.f32.mrb[51].mxu0 }
 0x9e5   :  { %v4555_v32 = vadd.f32 %v2563_v17, %v6319_v53  ;;  %v3890_v9 = vmul.f32 -1.442695, %v4553_v16  ;;  %v2635_v39 = vadd.f32 %v6328_v23, %v2600_v51 }
 0x9e6   :  { %4969 = vpow2.f32 %v3888_v52  ;;  %v3889_v6 = vmul.f32 -1.442695, %v4554_v15  ;;  %v6786_v52 = vsub.s32 2, %v6783_v48 }
 0x9e7   :  { %v3891_v62 = vmul.f32 -1.442695, %v4555_v32 }
 0x9e8   :  { %4971 = vpow2.f32 %v3889_v6  ;;  %v6332_v15 = vrot.slane %v1967_v47, %v6786_v52 }
 0x9e9   :  { %4973 = vpow2.f32 %v3890_v9 }
 0x9ea   :  { %4975 = vpow2.f32 %v3891_v62  ;;  %v2269_v32 = vadd.f32 %v6238_v40, %v6332_v15  ;;  %v2636_v62 = vadd.f32 %v6328_v23, %v2603_v11 }
 0x9f0   :  { %v4970_v13 = vpop.eup %4969 }
 0x9f1   :  { %v2615_v7 = vadd.f32 1.0, %v4970_v13 }
 0x9f2   :  { %v4972_v4 = vpop.eup %4971 }
 0x9f3   :  { %4977 = vrcp.f32 %v2615_v7  ;;  %v2616_v26 = vadd.f32 1.0, %v4972_v4  ;;  %v4974_v30 = vpop.eup %4973  ;;  %v2272_v7 = vadd.f32 %v6242_v54, %v6332_v15 }
 0x9f4   :  { %v4976_v31 = vpop.eup %4975  ;;  %v2629_v17 = vadd.f32 1.0, %v4974_v30 }
 0x9f5   :  { %4979 = vrcp.f32 %v2616_v26  ;;  %v2630_v16 = vadd.f32 1.0, %v4976_v31 }
 0x9f6   :  { %4981 = vrcp.f32 %v2629_v17 }
 0x9f7   :  { %4983 = vrcp.f32 %v2630_v16 }
 0x9fd   :  { %v4978_v6 = vpop.eup %4977 }
 0x9fe   :  { %v2637_v9 = vmul.f32 %v4978_v6, %v2635_v39 }
 0x9ff   :  { %v4980_v13 = vpop.eup %4979 }
 0xa00   :  { %v2639_v48 = vadd.f32 %v2637_v9, %v2269_v32  ;;  %v2638_v47 = vmul.f32 %v4980_v13, %v2636_v62  ;;  %v4982_v51 = vpop.eup %4981 }
 0xa01   :  { %v4984_v26 = vpop.eup %4983  ;;  %v2643_v30 = vsub.f32 1.0, %v4982_v51  ;;  %v2647_v17 = vmul.f32 0.0, %v4982_v51 }
 0xa02   :  { %4985 = vtanh.f32 %v2639_v48  ;;  %v2640_v4 = vadd.f32 %v2638_v47, %v2272_v7  ;;  %v2644_v52 = vsub.f32 1.0, %v4984_v26  ;;  %v2648_v11 = vmul.f32 0.0, %v4984_v26 }
 0xa04   :  { %4987 = vtanh.f32 %v2640_v4 }
 0xa0c   :  { %v4986_v31 = vpop.eup %4985 }
 0xa0d   :  { %v2645_v40 = vmul.f32 %v4986_v31, %v2643_v30 }
 0xa0e   :  { %v4988_v39 = vpop.eup %4987 }
 0xa0f   :  { %v2646_v6 = vmul.f32 %v4988_v39, %v2644_v52  ;;  %v6340_v45 = vadd.f32 %v2647_v17, %v2645_v40 }
 0xa11   :  { %v6342_v34 = vadd.f32 %v2648_v11, %v2646_v6 }
 0xa13   :  { %v2657_v54 = vpack.c.bf16 %v6342_v34, %v6340_v45 }
 0xa15   :  { %2691 = vmatmul.mubr.bf16.vlgmr.msra.gmra.mrb[52].mxu1 %v2657_v54  ;;  %4377 = vmatmul.mubr.bf16.vlgmr.msra.gmra.mrb[52].mxu0 %v2657_v54 }
 0xa16   :  { %2794 = vmatpush1.bf16.msra.mxu1 %v6129_v22  ;;  %4381 = vmatpush3.bf16.msra.mxu0 %v6188_v19 }
 0xa17   :  { %2795 = vmatprep.subr.bf16.mxu1 %v6153_v63  ;;  %4382 = vmatprep.subr.bf16.mxu0 %v6777_v0 }
 0xa18   :  { %2825 = vmatprep.mubr.bf16.mxu1 %v6778_v58  ;;  %4396 = vmatprep.mubr.msk.bf16.mxu0 %vm5363_vm0, %v6777_v0 }
 0xa1a   :  { %2796 = vmatpush1.bf16.msra.mxu1 %v6155_v5  ;;  %4383 = vmatpush3.bf16.msra.mxu0 %v6193_v3 }
 0xa1b   :  { %2797 = vmatprep.subr.bf16.mxu1 %v6159_v14  ;;  %4384 = vmatprep.subr.bf16.mxu0 %v6777_v0 }
 0xa1e   :  { %2798 = vmatpush1.bf16.msra.mxu1 %v6161_v12  ;;  %4385 = vmatpush3.bf16.msra.mxu0 %v6203_v60 }
 0xa1f   :  { %2799 = vmatprep.subr.bf16.mxu1 %v6163_v25  ;;  %4386 = vmatprep.subr.bf16.mxu0 %v6777_v0 }
 0xa22   :  { %2800 = vmatpush1.bf16.msra.mxu1 %v6167_v20  ;;  %4387 = vmatpush3.bf16.msra.mxu0 %v6207_v42 }
 0xa23   :  { %2801 = vmatprep.subr.bf16.mxu1 %v6170_v18  ;;  %4388 = vmatprep.subr.bf16.mxu0 %v6777_v0 }
 0xa26   :  { %2802 = vmatpush1.bf16.msra.mxu1 %v6173_v41  ;;  %4389 = vmatpush3.bf16.msra.mxu0 %v6211_v33 }
 0xa27   :  { %2803 = vmatprep.subr.bf16.mxu1 %v6176_v8  ;;  %4390 = vmatprep.subr.bf16.mxu0 %v6777_v0 }
 0xa2a   :  { %2804 = vmatpush1.bf16.msra.mxu1 %v6179_v21  ;;  %4391 = vmatpush3.bf16.msra.mxu0 %v6215_v35 }
 0xa2b   :  { %2805 = vmatprep.subr.bf16.mxu1 %v6182_v27  ;;  %4392 = vmatprep.subr.bf16.mxu0 %v6777_v0 }
 0xa2e   :  { %2806 = vmatpush1.bf16.msra.mxu1 %v6185_v36  ;;  %4393 = vmatpush3.bf16.msra.mxu0 %v6219_v37 }
 0xa2f   :  { %2807 = vmatprep.subr.bf16.mxu1 %v6190_v57  ;;  %4394 = vmatprep.subr.bf16.mxu0 %v6777_v0 }
 0xa32   :  { %2808 = vmatpush1.bf16.msra.mxu1 %v6196_v24  ;;  %4395 = vmatpush3.bf16.msra.mxu0 %v6223_v38 }
 0xa33   :  { %2928 = vmatprep.subr.bf16.mxu1 %v6126_v56  ;;  %4400 = vmatprep.subr.bf16.mxu0 %v6777_v0 }
 0xae8   :  { %v2692_v16 = vpop.f32.mrb[52].mxu1  ;;  %v2735_v32 = vpop.f32.mrb[52].mxu0 }
 0xae9   :  { %v4556_v9 = vadd.f32 %v2692_v16, %v6315_v61  ;;  %v2694_v62 = vpop.f32.mrb[53].mxu1  ;;  %v4378_v13 = vpop.f32.mrb[53].mxu0 }
 0xaea   :  { %v2696_v7 = vpop.f32.mrb[54].mxu1  ;;  %v2738_v48 = vpop.f32.mrb[54].mxu0  ;;  %v4557_v30 = vadd.f32 %v2694_v62, %v6319_v53  ;;  %v2770_v62 = vadd.f32 %v6328_v23, %v2735_v32 }
 0xaeb   :  { %v3892_v47 = vmul.f32 -1.442695, %v4556_v9  ;;  %v4558_v4 = vadd.f32 %v2696_v7, %v6315_v61  ;;  %v2698_v51 = vpop.f32.mrb[55].mxu1  ;;  %v4379_v26 = vpop.f32.mrb[55].mxu0 }
 0xaec   :  { %v4559_v52 = vadd.f32 %v2698_v51, %v6319_v53  ;;  %v3894_v40 = vmul.f32 -1.442695, %v4557_v30  ;;  %v2771_v26 = vadd.f32 %v6328_v23, %v2738_v48 }
 0xaed   :  { %4989 = vpow2.f32 %v3892_v47  ;;  %v3893_v31 = vmul.f32 -1.442695, %v4558_v4  ;;  %v2277_v4 = vadd.f32 %v6235_v50, %v6332_v15 }
 0xaee   :  { %v3895_v17 = vmul.f32 -1.442695, %v4559_v52 }
 0xaef   :  { %4991 = vpow2.f32 %v3893_v31  ;;  %v2280_v31 = vadd.f32 %v6240_v55, %v6332_v15 }
 0xaf0   :  { %4993 = vpow2.f32 %v3894_v40 }
 0xaf1   :  { %4995 = vpow2.f32 %v3895_v17 }
 0xaf7   :  { %v4990_v39 = vpop.eup %4989 }
 0xaf8   :  { %v2750_v6 = vadd.f32 1.0, %v4990_v39 }
 0xaf9   :  { %v4992_v11 = vpop.eup %4991 }
 0xafa   :  { %4997 = vrcp.f32 %v2750_v6  ;;  %v2751_v54 = vadd.f32 1.0, %v4992_v11  ;;  %v4994_v16 = vpop.eup %4993 }
 0xafb   :  { %v4996_v9 = vpop.eup %4995  ;;  %v2764_v13 = vadd.f32 1.0, %v4994_v16 }
 0xafc   :  { %4999 = vrcp.f32 %v2751_v54  ;;  %v2765_v7 = vadd.f32 1.0, %v4996_v9 }
 0xafd   :  { %5001 = vrcp.f32 %v2764_v13 }
 0xafe   :  { %5003 = vrcp.f32 %v2765_v7 }
 0xb04   :  { %v4998_v47 = vpop.eup %4997 }
 0xb05   :  { %v2772_v51 = vmul.f32 %v4998_v47, %v2770_v62 }
 0xb06   :  { %v5000_v30 = vpop.eup %4999 }
 0xb07   :  { %v2774_v52 = vadd.f32 %v2772_v51, %v2277_v4  ;;  %v2773_v40 = vmul.f32 %v5000_v30, %v2771_v26  ;;  %v5002_v32 = vpop.eup %5001 }
 0xb08   :  { %v5004_v39 = vpop.eup %5003  ;;  %v2778_v6 = vsub.f32 1.0, %v5002_v32  ;;  %v2782_v16 = vmul.f32 %v5002_v32, %v6340_v45 }
 0xb09   :  { %5005 = vtanh.f32 %v2774_v52  ;;  %v2775_v17 = vadd.f32 %v2773_v40, %v2280_v31  ;;  %v2779_v54 = vsub.f32 1.0, %v5004_v39  ;;  %v2783_v13 = vmul.f32 %v5004_v39, %v6342_v34 }
 0xb0b   :  { %5007 = vtanh.f32 %v2775_v17 }
 0xb13   :  { %v5006_v11 = vpop.eup %5005 }
 0xb14   :  { %v2780_v50 = vmul.f32 %v5006_v11, %v2778_v6 }
 0xb15   :  { %v5008_v9 = vpop.eup %5007 }
 0xb16   :  { %v2781_v48 = vmul.f32 %v5008_v9, %v2779_v54  ;;  %v6393_v62 = vadd.f32 %v2782_v16, %v2780_v50 }
 0xb18   :  { %v6395_v55 = vadd.f32 %v2783_v13, %v2781_v48 }
 0xb1a   :  { %v2792_v7 = vpack.c.bf16 %v6395_v55, %v6393_v62 }
 0xb1c   :  { %2826 = vmatmul.mubr.bf16.vlgmr.msra.gmra.mrb[56].mxu1 %v2792_v7  ;;  %4397 = vmatmul.mubr.bf16.vlgmr.msra.gmra.mrb[56].mxu0 %v2792_v7 }
 0xb1d   :  { %2929 = vmatpush1.bf16.msra.mxu1 %v6129_v22  ;;  %4401 = vmatpush3.bf16.msra.mxu0 %v6188_v19 }
 0xb1e   :  { %2930 = vmatprep.subr.bf16.mxu1 %v6153_v63  ;;  %4402 = vmatprep.subr.bf16.mxu0 %v6777_v0 }
 0xb1f   :  { %2960 = vmatprep.mubr.bf16.mxu1 %v6778_v58  ;;  %4416 = vmatprep.mubr.msk.bf16.mxu0 %vm5363_vm0, %v6777_v0 }
 0xb21   :  { %2931 = vmatpush1.bf16.msra.mxu1 %v6155_v5  ;;  %4403 = vmatpush3.bf16.msra.mxu0 %v6193_v3 }
 0xb22   :  { %2932 = vmatprep.subr.bf16.mxu1 %v6159_v14  ;;  %4404 = vmatprep.subr.bf16.mxu0 %v6777_v0 }
 0xb25   :  { %2933 = vmatpush1.bf16.msra.mxu1 %v6161_v12  ;;  %4405 = vmatpush3.bf16.msra.mxu0 %v6203_v60 }
 0xb26   :  { %2934 = vmatprep.subr.bf16.mxu1 %v6163_v25  ;;  %4406 = vmatprep.subr.bf16.mxu0 %v6777_v0 }
 0xb29   :  { %2935 = vmatpush1.bf16.msra.mxu1 %v6167_v20  ;;  %4407 = vmatpush3.bf16.msra.mxu0 %v6207_v42 }
 0xb2a   :  { %2936 = vmatprep.subr.bf16.mxu1 %v6170_v18  ;;  %4408 = vmatprep.subr.bf16.mxu0 %v6777_v0 }
 0xb2d   :  { %2937 = vmatpush1.bf16.msra.mxu1 %v6173_v41  ;;  %4409 = vmatpush3.bf16.msra.mxu0 %v6211_v33 }
 0xb2e   :  { %2938 = vmatprep.subr.bf16.mxu1 %v6176_v8  ;;  %4410 = vmatprep.subr.bf16.mxu0 %v6777_v0 }
 0xb31   :  { %2939 = vmatpush1.bf16.msra.mxu1 %v6179_v21  ;;  %4411 = vmatpush3.bf16.msra.mxu0 %v6215_v35 }
 0xb32   :  { %2940 = vmatprep.subr.bf16.mxu1 %v6182_v27  ;;  %4412 = vmatprep.subr.bf16.mxu0 %v6777_v0 }
 0xb35   :  { %2941 = vmatpush1.bf16.msra.mxu1 %v6185_v36  ;;  %4413 = vmatpush3.bf16.msra.mxu0 %v6219_v37 }
 0xb36   :  { %2942 = vmatprep.subr.bf16.mxu1 %v6190_v57  ;;  %4414 = vmatprep.subr.bf16.mxu0 %v6777_v0 }
 0xb39   :  { %2943 = vmatpush1.bf16.msra.mxu1 %v6196_v24  ;;  %4415 = vmatpush3.bf16.msra.mxu0 %v6223_v38 }
 0xb3a   :  { %3063 = vmatprep.subr.bf16.mxu1 %v6126_v56  ;;  %4420 = vmatprep.subr.bf16.mxu0 %v6777_v0 }
 0xbef   :  { %v2827_v34 = vpop.f32.mrb[56].mxu1  ;;  %v2870_v45 = vpop.f32.mrb[56].mxu0 }
 0xbf0   :  { %v4560_v47 = vadd.f32 %v2827_v34, %v6315_v61  ;;  %v2829_v4 = vpop.f32.mrb[57].mxu1  ;;  %v4398_v51 = vpop.f32.mrb[57].mxu0 }
 0xbf1   :  { %v2831_v26 = vpop.f32.mrb[58].mxu1  ;;  %v2873_v30 = vpop.f32.mrb[58].mxu0  ;;  %v4561_v32 = vadd.f32 %v2829_v4, %v6319_v53 }
 0xbf2   :  { %v3896_v31 = vmul.f32 -1.442695, %v4560_v47  ;;  %v4562_v52 = vadd.f32 %v2831_v26, %v6315_v61  ;;  %v2833_v40 = vpop.f32.mrb[59].mxu1  ;;  %v4399_v17 = vpop.f32.mrb[59].mxu0  ;;  %v2905_v47 = vadd.f32 %v6328_v23, %v2870_v45  ;;  %v2285_v26 = vadd.f32 %v6246_v43, %v6332_v15 }
 0xbf3   :  { %v4563_v6 = vadd.f32 %v2833_v40, %v6319_v53  ;;  %v3898_v11 = vmul.f32 -1.442695, %v4561_v32  ;;  %v2288_v17 = vadd.f32 %v6250_v1, %v6332_v15 }
 0xbf4   :  { %5009 = vpow2.f32 %v3896_v31  ;;  %v3897_v39 = vmul.f32 -1.442695, %v4562_v52  ;;  %v2906_v52 = vadd.f32 %v6328_v23, %v2873_v30 }
 0xbf5   :  { %v3899_v54 = vmul.f32 -1.442695, %v4563_v6 }
 0xbf6   :  { %5011 = vpow2.f32 %v3897_v39 }
 0xbf7   :  { %5013 = vpow2.f32 %v3898_v11 }
 0xbf8   :  { %5015 = vpow2.f32 %v3899_v54 }
 0xbfe   :  { %v5010_v50 = vpop.eup %5009 }
 0xbff   :  { %v2885_v16 = vadd.f32 1.0, %v5010_v50 }
 0xc00   :  { %v5012_v9 = vpop.eup %5011 }
 0xc01   :  { %5017 = vrcp.f32 %v2885_v16  ;;  %v2886_v48 = vadd.f32 1.0, %v5012_v9  ;;  %v5014_v13 = vpop.eup %5013 }
 0xc02   :  { %v5016_v7 = vpop.eup %5015  ;;  %v2899_v34 = vadd.f32 1.0, %v5014_v13 }
 0xc03   :  { %5019 = vrcp.f32 %v2886_v48  ;;  %v2900_v4 = vadd.f32 1.0, %v5016_v7 }
 0xc04   :  { %5021 = vrcp.f32 %v2899_v34 }
 0xc05   :  { %5023 = vrcp.f32 %v2900_v4 }
 0xc0b   :  { %v5018_v51 = vpop.eup %5017 }
 0xc0c   :  { %v2907_v31 = vmul.f32 %v5018_v51, %v2905_v47 }
 0xc0d   :  { %v5020_v40 = vpop.eup %5019 }
 0xc0e   :  { %v2909_v32 = vadd.f32 %v2907_v31, %v2285_v26  ;;  %v2908_v39 = vmul.f32 %v5020_v40, %v2906_v52  ;;  %v5022_v45 = vpop.eup %5021 }
 0xc0f   :  { %v5024_v11 = vpop.eup %5023  ;;  %v2913_v54 = vsub.f32 1.0, %v5022_v45  ;;  %v2917_v9 = vmul.f32 %v5022_v45, %v6393_v62 }
 0xc10   :  { %5025 = vtanh.f32 %v2909_v32  ;;  %v2910_v6 = vadd.f32 %v2908_v39, %v2288_v17  ;;  %v2914_v16 = vsub.f32 1.0, %v5024_v11  ;;  %v2918_v13 = vmul.f32 %v5024_v11, %v6395_v55 }
 0xc11   :  { %v2293_v11 = vadd.f32 %v6244_v28, %v6332_v15 }
 0xc12   :  { %5027 = vtanh.f32 %v2910_v6 }
 0xc1a   :  { %v5026_v50 = vpop.eup %5025 }
 0xc1b   :  { %v2915_v43 = vmul.f32 %v5026_v50, %v2913_v54 }
 0xc1c   :  { %v5028_v48 = vpop.eup %5027 }
 0xc1d   :  { %v2916_v30 = vmul.f32 %v5028_v48, %v2914_v16  ;;  %v6446_v7 = vadd.f32 %v2917_v9, %v2915_v43  ;;  %v2296_v43 = vadd.f32 %v6248_v29, %v6332_v15 }
 0xc1f   :  { %v6448_v1 = vadd.f32 %v2918_v13, %v2916_v30 }
 0xc21   :  { %v2927_v34 = vpack.c.bf16 %v6448_v1, %v6446_v7 }
 0xc23   :  { %2961 = vmatmul.mubr.bf16.vlgmr.msra.gmra.mrb[60].mxu1 %v2927_v34  ;;  %4417 = vmatmul.mubr.bf16.vlgmr.msra.gmra.mrb[60].mxu0 %v2927_v34 }
 0xc24   :  { %3064 = vmatpush1.bf16.msra.mxu1 %v6129_v22  ;;  %4421 = vmatpush3.bf16.msra.mxu0 %v6188_v19 }
 0xc25   :  { %3065 = vmatprep.subr.bf16.mxu1 %v6153_v63  ;;  %4422 = vmatprep.subr.bf16.mxu0 %v6777_v0 }
 0xc26   :  { %3095 = vmatprep.mubr.bf16.mxu1 %v6778_v58  ;;  %4436 = vmatprep.mubr.msk.bf16.mxu0 %vm5363_vm0, %v6777_v0 }
 0xc28   :  { %3066 = vmatpush1.bf16.msra.mxu1 %v6155_v5  ;;  %4423 = vmatpush3.bf16.msra.mxu0 %v6193_v3 }
 0xc29   :  { %3067 = vmatprep.subr.bf16.mxu1 %v6159_v14  ;;  %4424 = vmatprep.subr.bf16.mxu0 %v6777_v0 }
 0xc2c   :  { %3068 = vmatpush1.bf16.msra.mxu1 %v6161_v12  ;;  %4425 = vmatpush3.bf16.msra.mxu0 %v6203_v60 }
 0xc2d   :  { %3069 = vmatprep.subr.bf16.mxu1 %v6163_v25  ;;  %4426 = vmatprep.subr.bf16.mxu0 %v6777_v0 }
 0xc30   :  { %3070 = vmatpush1.bf16.msra.mxu1 %v6167_v20  ;;  %4427 = vmatpush3.bf16.msra.mxu0 %v6207_v42 }
 0xc31   :  { %3071 = vmatprep.subr.bf16.mxu1 %v6170_v18  ;;  %4428 = vmatprep.subr.bf16.mxu0 %v6777_v0 }
 0xc34   :  { %3072 = vmatpush1.bf16.msra.mxu1 %v6173_v41  ;;  %4429 = vmatpush3.bf16.msra.mxu0 %v6211_v33 }
 0xc35   :  { %3073 = vmatprep.subr.bf16.mxu1 %v6176_v8  ;;  %4430 = vmatprep.subr.bf16.mxu0 %v6777_v0 }
 0xc38   :  { %3074 = vmatpush1.bf16.msra.mxu1 %v6179_v21  ;;  %4431 = vmatpush3.bf16.msra.mxu0 %v6215_v35 }
 0xc39   :  { %3075 = vmatprep.subr.bf16.mxu1 %v6182_v27  ;;  %4432 = vmatprep.subr.bf16.mxu0 %v6777_v0 }
 0xc3c   :  { %3076 = vmatpush1.bf16.msra.mxu1 %v6185_v36  ;;  %4433 = vmatpush3.bf16.msra.mxu0 %v6219_v37 }
 0xc3d   :  { %3077 = vmatprep.subr.bf16.mxu1 %v6190_v57  ;;  %4434 = vmatprep.subr.bf16.mxu0 %v6777_v0 }
 0xc40   :  { %3078 = vmatpush1.bf16.msra.mxu1 %v6196_v24  ;;  %4435 = vmatpush3.bf16.msra.mxu0 %v6223_v38 }
 0xc41   :  { %3198 = vmatprep.subr.bf16.mxu1 %v6126_v56  ;;  %4440 = vmatprep.subr.bf16.mxu0 %v6777_v0 }
 0xcf6   :  { %v2962_v22 = vpop.f32.mrb[60].mxu1  ;;  %v3005_v5 = vpop.f32.mrb[60].mxu0 }
 0xcf7   :  { %v4564_v12 = vadd.f32 %v2962_v22, %v6315_v61  ;;  %v2964_v25 = vpop.f32.mrb[61].mxu1  ;;  %v4418_v20 = vpop.f32.mrb[61].mxu0  ;;  %v3040_v39 = vadd.f32 %v6328_v23, %v3005_v5 }
 0xcf8   :  { %v2966_v18 = vpop.f32.mrb[62].mxu1  ;;  %v3008_v41 = vpop.f32.mrb[62].mxu0  ;;  %v4565_v62 = vadd.f32 %v2964_v25, %v6319_v53 }
 0xcf9   :  { %v3900_v8 = vmul.f32 -1.442695, %v4564_v12  ;;  %v4566_v21 = vadd.f32 %v2966_v18, %v6315_v61  ;;  %v2968_v27 = vpop.f32.mrb[63].mxu1  ;;  %v4419_v36 = vpop.f32.mrb[63].mxu0  ;;  %v3041_v50 = vadd.f32 %v6328_v23, %v3008_v41 }
 0xcfa   :  { %v4567_v56 = vadd.f32 %v2968_v27, %v6319_v53  ;;  %v3902_v47 = vmul.f32 -1.442695, %v4565_v62  ;;  %v6505_v27 = vld [vmem:[#allocation13] ss:$12 sps:$4 sm:$0xff]   ;;  %v6544_v36 = vld [vmem:[#allocation13 + $0x78] ss:$12 sps:$4 sm:$0xff]  }
 0xcfb   :  { %5029 = vpow2.f32 %v3900_v8  ;;  %v3901_v55 = vmul.f32 -1.442695, %v4566_v21  ;;  %v6552_v62 = vld [vmem:[#allocation13 + $0x90] ss:$12 sps:$4 sm:$0xff]  }
 0xcfc   :  { %v3903_v4 = vmul.f32 -1.442695, %v4567_v56 }
 0xcfd   :  { %5031 = vpow2.f32 %v3901_v55 }
 0xcfe   :  { %5033 = vpow2.f32 %v3902_v47 }
 0xcff   :  { %5035 = vpow2.f32 %v3903_v4 }
 0xd05   :  { %v5030_v51 = vpop.eup %5029 }
 0xd06   :  { %v3020_v26 = vadd.f32 1.0, %v5030_v51 }
 0xd07   :  { %v5032_v31 = vpop.eup %5031 }
 0xd08   :  { %5037 = vrcp.f32 %v3020_v26  ;;  %v3021_v52 = vadd.f32 1.0, %v5032_v31  ;;  %v5034_v40 = vpop.eup %5033 }
 0xd09   :  { %v5036_v17 = vpop.eup %5035  ;;  %v3034_v32 = vadd.f32 1.0, %v5034_v40 }
 0xd0a   :  { %5039 = vrcp.f32 %v3021_v52  ;;  %v3035_v6 = vadd.f32 1.0, %v5036_v17 }
 0xd0b   :  { %5041 = vrcp.f32 %v3034_v32 }
 0xd0c   :  { %5043 = vrcp.f32 %v3035_v6 }
 0xd12   :  { %v5038_v45 = vpop.eup %5037 }
 0xd13   :  { %v3042_v54 = vmul.f32 %v5038_v45, %v3040_v39 }
 0xd14   :  { %v5040_v16 = vpop.eup %5039 }
 0xd15   :  { %v3044_v9 = vadd.f32 %v3042_v54, %v2293_v11  ;;  %v3043_v48 = vmul.f32 %v5040_v16, %v3041_v50  ;;  %v5042_v13 = vpop.eup %5041 }
 0xd16   :  { %v5044_v34 = vpop.eup %5043  ;;  %v3048_v22 = vsub.f32 1.0, %v5042_v13  ;;  %v3052_v25 = vmul.f32 %v5042_v13, %v6446_v7  ;;  %v6514_v7 = vld [vmem:[#allocation13 + $0x18] ss:$12 sps:$4 sm:$0xff]  }
 0xd17   :  { %5045 = vtanh.f32 %v3044_v9  ;;  %v3045_v30 = vadd.f32 %v3043_v48, %v2296_v43  ;;  %v3049_v12 = vsub.f32 1.0, %v5044_v34  ;;  %v3053_v41 = vmul.f32 %v5044_v34, %v6448_v1  ;;  %v6528_v1 = vld [vmem:[#allocation13 + $0x48] ss:$12 sps:$4 sm:$0xff]  }
 0xd19   :  { %5047 = vtanh.f32 %v3045_v30  ;;  %v2301_v30 = vadd.f32 %v6256_v44, %v6332_v15 }
 0xd21   :  { %v5046_v5 = vpop.eup %5045 }
 0xd22   :  { %v3050_v28 = vmul.f32 %v5046_v5, %v3048_v22  ;;  %v2304_v5 = vadd.f32 %v6260_v49, %v6332_v15 }
 0xd23   :  { %v5048_v20 = vpop.eup %5047 }
 0xd24   :  { %v3051_v18 = vmul.f32 %v5048_v20, %v3049_v12  ;;  %v6499_v8 = vadd.f32 %v3052_v25, %v3050_v28 }
 0xd26   :  { %v6501_v29 = vadd.f32 %v3053_v41, %v3051_v18 }
 0xd28   :  { %v3062_v21 = vpack.c.bf16 %v6501_v29, %v6499_v8 }
 0xd2a   :  { %3096 = vmatmul.mubr.bf16.vlgmr.msra.gmra.mrb[64].mxu1 %v3062_v21  ;;  %4437 = vmatmul.mubr.bf16.vlgmr.msra.gmra.mrb[64].mxu0 %v3062_v21 }
 0xd2b   :  { %3199 = vmatpush1.bf16.msra.mxu1 %v6505_v27  ;;  %4441 = vmatpush3.bf16.msra.mxu0 %v6188_v19  ;;  %v6520_v19 = vld [vmem:[#allocation13 + $0x30] ss:$12 sps:$4 sm:$0xff]  }
 0xd2c   :  { %3200 = vmatprep.subr.bf16.mxu1 %v6153_v63  ;;  %4442 = vmatprep.subr.bf16.mxu0 %v6777_v0  ;;  %v6524_v63 = vld [vmem:[#allocation13 + $0x4c] ss:$12 sps:$4 sm:$0xff]  }
 0xd2d   :  { %3230 = vmatprep.mubr.bf16.mxu1 %v6778_v58  ;;  %4456 = vmatprep.mubr.msk.bf16.mxu0 %vm5363_vm0, %v6777_v0 }
 0xd2f   :  { %3201 = vmatpush1.bf16.msra.mxu1 %v6514_v7  ;;  %4443 = vmatpush3.bf16.msra.mxu0 %v6193_v3  ;;  %v6536_v3 = vld [vmem:[#allocation13 + $0x60] ss:$12 sps:$4 sm:$0xff]  }
 0xd30   :  { %3202 = vmatprep.subr.bf16.mxu1 %v6159_v14  ;;  %4444 = vmatprep.subr.bf16.mxu0 %v6777_v0  ;;  %v6532_v14 = vld [vmem:[#allocation13 + $0x64] ss:$12 sps:$4 sm:$0xff]  }
 0xd33   :  { %3203 = vmatpush1.bf16.msra.mxu1 %v6520_v19  ;;  %4445 = vmatpush3.bf16.msra.mxu0 %v6203_v60  ;;  %v6540_v60 = vld [vmem:[#allocation13 + $0x7c] ss:$12 sps:$4 sm:$0xff]  }
 0xd34   :  { %3204 = vmatprep.subr.bf16.mxu1 %v6524_v63  ;;  %4446 = vmatprep.subr.bf16.mxu0 %v6777_v0 }
 0xd37   :  { %3205 = vmatpush1.bf16.msra.mxu1 %v6528_v1  ;;  %4447 = vmatpush3.bf16.msra.mxu0 %v6207_v42  ;;  %v6548_v42 = vld [vmem:[#allocation13 + $0x94] ss:$12 sps:$4 sm:$0xff]  }
 0xd38   :  { %3206 = vmatprep.subr.bf16.mxu1 %v6532_v14  ;;  %4448 = vmatprep.subr.bf16.mxu0 %v6777_v0 }
 0xd3b   :  { %3207 = vmatpush1.bf16.msra.mxu1 %v6536_v3  ;;  %4449 = vmatpush3.bf16.msra.mxu0 %v6211_v33  ;;  %v6560_v33 = vld [vmem:[#allocation13 + $0x4] ss:$12 sps:$4 sm:$0xff]  }
 0xd3c   :  { %3208 = vmatprep.subr.bf16.mxu1 %v6540_v60  ;;  %4450 = vmatprep.subr.bf16.mxu0 %v6777_v0 }
 0xd3f   :  { %3209 = vmatpush1.bf16.msra.mxu1 %v6544_v36  ;;  %4451 = vmatpush3.bf16.msra.mxu0 %v6215_v35 }
 0xd40   :  { %3210 = vmatprep.subr.bf16.mxu1 %v6548_v42  ;;  %4452 = vmatprep.subr.bf16.mxu0 %v6777_v0 }
 0xd43   :  { %3211 = vmatpush1.bf16.msra.mxu1 %v6552_v62  ;;  %4453 = vmatpush3.bf16.msra.mxu0 %v6219_v37 }
 0xd44   :  { %3212 = vmatprep.subr.bf16.mxu1 %v6190_v57  ;;  %4454 = vmatprep.subr.bf16.mxu0 %v6777_v0 }
 0xd47   :  { %3213 = vmatpush1.bf16.msra.mxu1 %v6196_v24  ;;  %4455 = vmatpush3.bf16.msra.mxu0 %v6223_v38 }
 0xd48   :  { %3333 = vmatprep.subr.bf16.mxu1 %v6560_v33  ;;  %4460 = vmatprep.subr.bf16.mxu0 %v6777_v0 }
 0xdfd   :  { %v3097_v35 = vpop.f32.mrb[64].mxu1  ;;  %v3140_v55 = vpop.f32.mrb[64].mxu0 }
 0xdfe   :  { %v4568_v56 = vadd.f32 %v3097_v35, %v6315_v61  ;;  %v3099_v47 = vpop.f32.mrb[65].mxu1  ;;  %v4438_v37 = vpop.f32.mrb[65].mxu0  ;;  %v3175_v43 = vadd.f32 %v6328_v23, %v3140_v55 }
 0xdff   :  { %v3101_v4 = vpop.f32.mrb[66].mxu1  ;;  %v3143_v57 = vpop.f32.mrb[66].mxu0  ;;  %v4569_v38 = vadd.f32 %v3099_v47, %v6319_v53 }
 0xe00   :  { %v3904_v51 = vmul.f32 -1.442695, %v4568_v56  ;;  %v4570_v26 = vadd.f32 %v3101_v4, %v6315_v61  ;;  %v3103_v24 = vpop.f32.mrb[67].mxu1  ;;  %v4439_v31 = vpop.f32.mrb[67].mxu0  ;;  %v3176_v34 = vadd.f32 %v6328_v23, %v3143_v57 }
 0xe01   :  { %v4571_v40 = vadd.f32 %v3103_v24, %v6319_v53  ;;  %v3906_v17 = vmul.f32 -1.442695, %v4569_v38  ;;  %v6602_v24 = vld [vmem:[#allocation13 + $0x38] ss:$12 sps:$4 sm:$0xff]   ;;  %v6608_v31 = vld [vmem:[#allocation13 + $0x50] ss:$12 sps:$4 sm:$0xff]  }
 0xe02   :  { %5049 = vpow2.f32 %v3904_v51  ;;  %v3905_v52 = vmul.f32 -1.442695, %v4570_v26  ;;  %v6583_v51 = vld [vmem:[#allocation13 + $0x8] ss:$12 sps:$4 sm:$0xff]  }
 0xe03   :  { %v3907_v32 = vmul.f32 -1.442695, %v4571_v40  ;;  %v6597_v26 = vld [vmem:[#allocation13 + $0x34] ss:$12 sps:$4 sm:$0xff]   ;;  %v6626_v40 = vld [vmem:[#allocation13 + $0x98] ss:$12 sps:$4 sm:$0xff]  }
 0xe04   :  { %5051 = vpow2.f32 %v3905_v52  ;;  %v6614_v38 = vld [vmem:[#allocation13 + $0x68] ss:$12 sps:$4 sm:$0xff]   ;;  %v6620_v52 = vld [vmem:[#allocation13 + $0x80] ss:$12 sps:$4 sm:$0xff]  }
 0xe05   :  { %5053 = vpow2.f32 %v3906_v17  ;;  %v6629_v17 = vld [vmem:[#allocation13 + $0xac] ss:$12 sps:$4 sm:$0xff]  }
 0xe06   :  { %5055 = vpow2.f32 %v3907_v32  ;;  %v6633_v32 = vld [vmem:[#allocation13 + $0xa8] ss:$12 sps:$4 sm:$0xff]  }
 0xe0c   :  { %v5050_v39 = vpop.eup %5049 }
 0xe0d   :  { %v3155_v6 = vadd.f32 1.0, %v5050_v39  ;;  %v6636_v39 = vld [vmem:[#allocation13 + $0xb0] ss:$12 sps:$4 sm:$0xff]  }
 0xe0e   :  { %v5052_v45 = vpop.eup %5051 }
 0xe0f   :  { %5057 = vrcp.f32 %v3155_v6  ;;  %v3156_v11 = vadd.f32 1.0, %v5052_v45  ;;  %v5054_v54 = vpop.eup %5053 }
 0xe10   :  { %v5056_v50 = vpop.eup %5055  ;;  %v3169_v16 = vadd.f32 1.0, %v5054_v54 }
 0xe11   :  { %5059 = vrcp.f32 %v3156_v11  ;;  %v3170_v9 = vadd.f32 1.0, %v5056_v50 }
 0xe12   :  { %5061 = vrcp.f32 %v3169_v16 }
 0xe13   :  { %5063 = vrcp.f32 %v3170_v9 }
 0xe19   :  { %v5058_v48 = vpop.eup %5057 }
 0xe1a   :  { %v3177_v13 = vmul.f32 %v5058_v48, %v3175_v43 }
 0xe1b   :  { %v5060_v22 = vpop.eup %5059 }
 0xe1c   :  { %v3179_v12 = vadd.f32 %v3177_v13, %v2301_v30  ;;  %v3178_v28 = vmul.f32 %v5060_v22, %v3176_v34  ;;  %v5062_v20 = vpop.eup %5061 }
 0xe1d   :  { %v5064_v18 = vpop.eup %5063  ;;  %v3183_v41 = vsub.f32 1.0, %v5062_v20  ;;  %v3187_v55 = vmul.f32 %v5062_v20, %v6499_v8  ;;  %v6586_v8 = vld [vmem:[#allocation13 + $0x1c] ss:$12 sps:$4 sm:$0xff]  }
 0xe1e   :  { %5065 = vtanh.f32 %v3179_v12  ;;  %v3180_v25 = vadd.f32 %v3178_v28, %v2304_v5  ;;  %v3184_v35 = vsub.f32 1.0, %v5064_v18  ;;  %v3188_v37 = vmul.f32 %v5064_v18, %v6501_v29  ;;  %v6594_v29 = vld [vmem:[#allocation13 + $0x20] ss:$12 sps:$4 sm:$0xff]  }
 0xe20   :  { %5067 = vtanh.f32 %v3180_v25 }
 0xe28   :  { %v5066_v21 = vpop.eup %5065 }
 0xe29   :  { %v3185_v44 = vmul.f32 %v5066_v21, %v3183_v41 }
 0xe2a   :  { %v5068_v56 = vpop.eup %5067 }
 0xe2b   :  { %v3186_v47 = vmul.f32 %v5068_v56, %v3184_v35  ;;  %v6576_v4 = vadd.f32 %v3187_v55, %v3185_v44 }
 0xe2d   :  { %v6578_v49 = vadd.f32 %v3188_v37, %v3186_v47  ;;  %v2309_v47 = vadd.f32 %v6254_v2, %v6332_v15 }
 0xe2f   :  { %v3197_v57 = vpack.c.bf16 %v6578_v49, %v6576_v4 }
 0xe31   :  { %3231 = vmatmul.mubr.bf16.vlgmr.msra.gmra.mrb[68].mxu1 %v3197_v57  ;;  %4457 = vmatmul.mubr.bf16.vlgmr.msra.gmra.mrb[68].mxu0 %v3197_v57 }
 0xe32   :  { %3334 = vmatpush1.bf16.msra.mxu1 %v6505_v27  ;;  %4461 = vmatpush3.bf16.msra.mxu0 %v6583_v51 }
 0xe33   :  { %3335 = vmatprep.subr.bf16.mxu1 %v6586_v8  ;;  %4462 = vmatprep.subr.bf16.mxu0 %v6777_v0 }
 0xe34   :  { %3365 = vmatprep.mubr.bf16.mxu1 %v6778_v58  ;;  %4476 = vmatprep.mubr.msk.bf16.mxu0 %vm5363_vm0, %v6777_v0 }
 0xe36   :  { %3336 = vmatpush1.bf16.msra.mxu1 %v6514_v7  ;;  %4463 = vmatpush3.bf16.msra.mxu0 %v6594_v29 }
 0xe37   :  { %3337 = vmatprep.subr.bf16.mxu1 %v6597_v26  ;;  %4464 = vmatprep.subr.bf16.mxu0 %v6777_v0 }
 0xe3a   :  { %3338 = vmatpush1.bf16.msra.mxu1 %v6520_v19  ;;  %4465 = vmatpush3.bf16.msra.mxu0 %v6602_v24 }
 0xe3b   :  { %3339 = vmatprep.subr.bf16.mxu1 %v6524_v63  ;;  %4466 = vmatprep.subr.bf16.mxu0 %v6777_v0 }
 0xe3e   :  { %3340 = vmatpush1.bf16.msra.mxu1 %v6528_v1  ;;  %4467 = vmatpush3.bf16.msra.mxu0 %v6608_v31 }
 0xe3f   :  { %3341 = vmatprep.subr.bf16.mxu1 %v6532_v14  ;;  %4468 = vmatprep.subr.bf16.mxu0 %v6777_v0 }
 0xe42   :  { %3342 = vmatpush1.bf16.msra.mxu1 %v6536_v3  ;;  %4469 = vmatpush3.bf16.msra.mxu0 %v6614_v38 }
 0xe43   :  { %3343 = vmatprep.subr.bf16.mxu1 %v6540_v60  ;;  %4470 = vmatprep.subr.bf16.mxu0 %v6777_v0 }
 0xe46   :  { %3344 = vmatpush1.bf16.msra.mxu1 %v6544_v36  ;;  %4471 = vmatpush3.bf16.msra.mxu0 %v6620_v52 }
 0xe47   :  { %3345 = vmatprep.subr.bf16.mxu1 %v6548_v42  ;;  %4472 = vmatprep.subr.bf16.mxu0 %v6777_v0 }
 0xe4a   :  { %3346 = vmatpush1.bf16.msra.mxu1 %v6552_v62  ;;  %4473 = vmatpush3.bf16.msra.mxu0 %v6626_v40 }
 0xe4b   :  { %3347 = vmatprep.subr.bf16.mxu1 %v6629_v17  ;;  %4474 = vmatprep.subr.bf16.mxu0 %v6777_v0 }
 0xe4e   :  { %3348 = vmatpush1.bf16.msra.mxu1 %v6633_v32  ;;  %4475 = vmatpush3.bf16.msra.mxu0 %v6636_v39 }
 0xe4f   :  { %3468 = vmatprep.subr.bf16.mxu1 %v6560_v33  ;;  %4480 = vmatprep.subr.bf16.mxu0 %v6777_v0 }
 0xf04   :  { %v3232_v6 = vpop.f32.mrb[68].mxu1  ;;  %v3275_v45 = vpop.f32.mrb[68].mxu0 }
 0xf05   :  { %v4572_v11 = vadd.f32 %v3232_v6, %v6315_v61  ;;  %v3234_v54 = vpop.f32.mrb[69].mxu1  ;;  %v4458_v50 = vpop.f32.mrb[69].mxu0  ;;  %v3310_v44 = vadd.f32 %v6328_v23, %v3275_v45 }
 0xf06   :  { %v3236_v16 = vpop.f32.mrb[70].mxu1  ;;  %v3278_v43 = vpop.f32.mrb[70].mxu0  ;;  %v4573_v34 = vadd.f32 %v3234_v54, %v6319_v53 }
 0xf07   :  { %v3908_v9 = vmul.f32 -1.442695, %v4572_v11  ;;  %v4574_v48 = vadd.f32 %v3236_v16, %v6315_v61  ;;  %v3238_v30 = vpop.f32.mrb[71].mxu1  ;;  %v4459_v13 = vpop.f32.mrb[71].mxu0  ;;  %v3311_v57 = vadd.f32 %v6328_v23, %v3278_v43  ;;  %v2312_v11 = vadd.f32 %v6258_v59, %v6332_v15 }
 0xf08   :  { %v4575_v33 = vadd.f32 %v3238_v30, %v6319_v53  ;;  %v3910_v5 = vmul.f32 -1.442695, %v4573_v34 }
 0xf09   :  { %5069 = vpow2.f32 %v3908_v9  ;;  %v3909_v22 = vmul.f32 -1.442695, %v4574_v48 }
 0xf0a   :  { %v3911_v12 = vmul.f32 -1.442695, %v4575_v33 }
 0xf0b   :  { %5071 = vpow2.f32 %v3909_v22 }
 0xf0c   :  { %5073 = vpow2.f32 %v3910_v5 }
 0xf0d   :  { %5075 = vpow2.f32 %v3911_v12 }
 0xf13   :  { %v5070_v28 = vpop.eup %5069 }
 0xf14   :  { %v3290_v25 = vadd.f32 1.0, %v5070_v28  ;;  %v2317_v28 = vadd.f32 %v6304_v10, %v6332_v15 }
 0xf15   :  { %v5072_v20 = vpop.eup %5071 }
 0xf16   :  { %5077 = vrcp.f32 %v3290_v25  ;;  %v3291_v18 = vadd.f32 1.0, %v5072_v20  ;;  %v5074_v41 = vpop.eup %5073 }
 0xf17   :  { %v5076_v21 = vpop.eup %5075  ;;  %v3304_v35 = vadd.f32 1.0, %v5074_v41  ;;  %v2320_v41 = vadd.f32 %v6308_v46, %v6332_v15 }
 0xf18   :  { %5079 = vrcp.f32 %v3291_v18  ;;  %v3305_v55 = vadd.f32 1.0, %v5076_v21 }
 0xf19   :  { %5081 = vrcp.f32 %v3304_v35 }
 0xf1a   :  { %5083 = vrcp.f32 %v3305_v55 }
 0xf20   :  { %v5078_v56 = vpop.eup %5077 }
 0xf21   :  { %v3312_v37 = vmul.f32 %v5078_v56, %v3310_v44 }
 0xf22   :  { %v5080_v6 = vpop.eup %5079 }
 0xf23   :  { %v3314_v54 = vadd.f32 %v3312_v37, %v2309_v47  ;;  %v3313_v50 = vmul.f32 %v5080_v6, %v3311_v57  ;;  %v5082_v45 = vpop.eup %5081 }
 0xf24   :  { %v5084_v9 = vpop.eup %5083  ;;  %v3318_v48 = vsub.f32 1.0, %v5082_v45  ;;  %v3322_v34 = vmul.f32 %v5082_v45, %v6576_v4 }
 0xf25   :  { %5085 = vtanh.f32 %v3314_v54  ;;  %v3315_v16 = vadd.f32 %v3313_v50, %v2312_v11  ;;  %v3319_v13 = vsub.f32 1.0, %v5084_v9  ;;  %v3323_v43 = vmul.f32 %v5084_v9, %v6578_v49  ;;  %v4801_v9 = vld [vmem:[#allocation14] sm:$0xff]  }
 0xf27   :  { %5087 = vtanh.f32 %v3315_v16 }
 0xf2f   :  { %v5086_v30 = vpop.eup %5085 }
 0xf30   :  { %v3320_v2 = vmul.f32 %v5086_v30, %v3318_v48  ;;  %v4802_v48 = vld [vmem:[#allocation14 + $0x8] sm:$0xff]   ;;  %v4803_v30 = vld [vmem:[#allocation14 + $0x10] sm:$0xff]  }
 0xf31   :  { %v5088_v22 = vpop.eup %5087 }
 0xf32   :  { %v3321_v23 = vmul.f32 %v5088_v22, %v3319_v13  ;;  %v6653_v33 = vadd.f32 %v3322_v34, %v3320_v2  ;;  %v4804_v13 = vld [vmem:[#allocation14 + $0x18] sm:$0xff]   ;;  %v4805_v2 = vld [vmem:[#allocation14 + $0x20] sm:$0xff]   ;;  %v4806_v34 = vld [vmem:[#allocation14 + $0x28] sm:$0xff]  }
 0xf33   :  { %v4807_v22 = vld [vmem:[#allocation14 + $0x30] sm:$0xff]  }
 0xf34   :  { %v6655_v59 = vadd.f32 %v3323_v43, %v3321_v23  ;;  %v4808_v23 = vld [vmem:[#allocation14 + $0x38] sm:$0xff]  }
 0xf36   :  { %v3332_v5 = vpack.c.bf16 %v6655_v59, %v6653_v33 }
 0xf38   :  { %3366 = vmatmul.mubr.bf16.vlgmr.msra.gmra.mrb[72].mxu1 %v3332_v5  ;;  %4477 = vmatmul.mubr.bf16.vlgmr.msra.gmra.mrb[72].mxu0 %v3332_v5 }
 0xf39   :  { %3469 = vmatpush1.bf16.msra.mxu1 %v6505_v27  ;;  %4481 = vmatpush3.bf16.msra.mxu0 %v6583_v51 }
 0xf3a   :  { %3470 = vmatprep.subr.bf16.mxu1 %v6586_v8  ;;  %4482 = vmatprep.subr.bf16.mxu0 %v6777_v0 }
 0xf3b   :  { %3500 = vmatprep.mubr.bf16.mxu1 %v6778_v58  ;;  %4496 = vmatprep.mubr.msk.bf16.mxu0 %vm5363_vm0, %v6777_v0 }
 0xf3d   :  { %3471 = vmatpush1.bf16.msra.mxu1 %v6514_v7  ;;  %4483 = vmatpush3.bf16.msra.mxu0 %v6594_v29 }
 0xf3e   :  { %3472 = vmatprep.subr.bf16.mxu1 %v6597_v26  ;;  %4484 = vmatprep.subr.bf16.mxu0 %v6777_v0 }
 0xf41   :  { %3473 = vmatpush1.bf16.msra.mxu1 %v6520_v19  ;;  %4485 = vmatpush3.bf16.msra.mxu0 %v6602_v24 }
 0xf42   :  { %3474 = vmatprep.subr.bf16.mxu1 %v6524_v63  ;;  %4486 = vmatprep.subr.bf16.mxu0 %v6777_v0 }
 0xf45   :  { %3475 = vmatpush1.bf16.msra.mxu1 %v6528_v1  ;;  %4487 = vmatpush3.bf16.msra.mxu0 %v6608_v31 }
 0xf46   :  { %3476 = vmatprep.subr.bf16.mxu1 %v6532_v14  ;;  %4488 = vmatprep.subr.bf16.mxu0 %v6777_v0 }
 0xf49   :  { %3477 = vmatpush1.bf16.msra.mxu1 %v6536_v3  ;;  %4489 = vmatpush3.bf16.msra.mxu0 %v6614_v38 }
 0xf4a   :  { %3478 = vmatprep.subr.bf16.mxu1 %v6540_v60  ;;  %4490 = vmatprep.subr.bf16.mxu0 %v6777_v0 }
 0xf4d   :  { %3479 = vmatpush1.bf16.msra.mxu1 %v6544_v36  ;;  %4491 = vmatpush3.bf16.msra.mxu0 %v6620_v52 }
 0xf4e   :  { %3480 = vmatprep.subr.bf16.mxu1 %v6548_v42  ;;  %4492 = vmatprep.subr.bf16.mxu0 %v6777_v0 }
 0xf51   :  { %3481 = vmatpush1.bf16.msra.mxu1 %v6552_v62  ;;  %4493 = vmatpush3.bf16.msra.mxu0 %v6626_v40 }
 0xf52   :  { %3482 = vmatprep.subr.bf16.mxu1 %v6629_v17  ;;  %4494 = vmatprep.subr.bf16.mxu0 %v6777_v0  ;;  %v6700_v17 = vld [vmem:[%s6760_s8] ss:$0 sm:$0xff] }
 0xf55   :  { %3483 = vmatpush1.bf16.msra.mxu1 %v6633_v32  ;;  %4495 = vmatpush3.bf16.msra.mxu0 %v6636_v39 }
 0xf56   :  { %4500 = vmatprep.subr.bf16.mxu0 %v6777_v0 }
0x100b   :  { %v3367_v58 = vpop.f32.mrb[72].mxu1  ;;  %v3410_v27 = vpop.f32.mrb[72].mxu0 }
0x100c   :  { %v4576_v7 = vadd.f32 %v3367_v58, %v6315_v61  ;;  %v3369_v19 = vpop.f32.mrb[73].mxu1  ;;  %v4478_v63 = vpop.f32.mrb[73].mxu0  ;;  %v3445_v32 = vadd.f32 %v6700_v17, %v3410_v27 }
0x100d   :  { %v3371_v1 = vpop.f32.mrb[74].mxu1  ;;  %v3413_v14 = vpop.f32.mrb[74].mxu0  ;;  %v4577_v62 = vadd.f32 %v3369_v19, %v6319_v53 }
0x100e   :  { %v3912_v3 = vmul.f32 -1.442695, %v4576_v7  ;;  %v4578_v60 = vadd.f32 %v3371_v1, %v6315_v61  ;;  %v3373_v36 = vpop.f32.mrb[75].mxu1  ;;  %v4479_v42 = vpop.f32.mrb[75].mxu0  ;;  %v3446_v20 = vadd.f32 %v6700_v17, %v3413_v14 }
0x100f   :  { %v4579_v49 = vadd.f32 %v3373_v36, %v6319_v53  ;;  %v3914_v51 = vmul.f32 -1.442695, %v4577_v62 }
0x1010   :  { %5089 = vpow2.f32 %v3912_v3  ;;  %v3913_v4 = vmul.f32 -1.442695, %v4578_v60 }
0x1011   :  { %v3915_v8 = vmul.f32 -1.442695, %v4579_v49 }
0x1012   :  { %5091 = vpow2.f32 %v3913_v4 }
0x1013   :  { %5093 = vpow2.f32 %v3914_v51 }
0x1014   :  { %5095 = vpow2.f32 %v3915_v8 }
0x101a   :  { %v5090_v29 = vpop.eup %5089 }
0x101b   :  { %v3425_v26 = vadd.f32 1.0, %v5090_v29 }
0x101c   :  { %v5092_v24 = vpop.eup %5091 }
0x101d   :  { %5097 = vrcp.f32 %v3425_v26  ;;  %v3426_v31 = vadd.f32 1.0, %v5092_v24  ;;  %v5094_v38 = vpop.eup %5093 }
0x101e   :  { %v5096_v52 = vpop.eup %5095  ;;  %v3439_v40 = vadd.f32 1.0, %v5094_v38 }
0x101f   :  { %5099 = vrcp.f32 %v3426_v31  ;;  %v3440_v39 = vadd.f32 1.0, %v5096_v52 }
0x1020   :  { %5101 = vrcp.f32 %v3439_v40 }
0x1021   :  { %5103 = vrcp.f32 %v3440_v39  ;;  %v6788_v39 = vld [vmem:[#allocation24_spill] sm:$0xff] }
0x1027   :  { %v5098_v12 = vpop.eup %5097 }
0x1028   :  { %v3447_v25 = vmul.f32 %v5098_v12, %v3445_v32  ;;  %v2328_v12 = vadd.f32 %v6788_v39, %v6332_v15 }
0x1029   :  { %v5100_v18 = vpop.eup %5099 }
0x102a   :  { %v3449_v21 = vadd.f32 %v3447_v25, %v2317_v28  ;;  %v3448_v35 = vmul.f32 %v5100_v18, %v3446_v20  ;;  %v5102_v55 = vpop.eup %5101 }
0x102b   :  { %v5104_v56 = vpop.eup %5103  ;;  %v3453_v47 = vsub.f32 1.0, %v5102_v55  ;;  %v3457_v6 = vmul.f32 %v5102_v55, %v6653_v33 }
0x102c   :  { %5105 = vtanh.f32 %v3449_v21  ;;  %v3450_v44 = vadd.f32 %v3448_v35, %v2320_v41  ;;  %v3454_v57 = vsub.f32 1.0, %v5104_v56  ;;  %v3458_v50 = vmul.f32 %v5104_v56, %v6655_v59 }
0x102e   :  { %5107 = vtanh.f32 %v3450_v44 }
0x1036   :  { %v5106_v37 = vpop.eup %5105 }
0x1037   :  { %v3455_v10 = vmul.f32 %v5106_v37, %v3453_v47 }
0x1038   :  { %v5108_v11 = vpop.eup %5107 }
0x1039   :  { %v3456_v54 = vmul.f32 %v5108_v11, %v3454_v57  ;;  %v6710_v16 = vadd.f32 %v3457_v6, %v3455_v10  ;;  %v3920_v6 = vld [vmem:[%s6762_s10] ss:$0 sm:$0xff]  ;;  %s5319_s10 = scalar_lea.vmem %s3736_s2, 256 }
0x103a   :  { %p5320_p6 = scmp.ne.s32.totalorder %s3736_s2, %s5319_s10  ;;  %p5325_p8 = scmp.lt.s32.totalorder %s5319_s10, %s5319_s10 }
0x103b   :  { %v6712_v46 = vadd.f32 %v3458_v50, %v3456_v54 }
0x103c   :  { %p5326_p9 = por %p5325_p8, %p5324_p7 }
0x103d   :  { %v3467_v45 = vpack.c.bf16 %v6712_v46, %v6710_v16 }
0x103e   :  { %p5327_p10 = pnand %p5326_p9, %p5320_p6 }
0x103f   :  { %3501 = vmatmul.mubr.bf16.vlgmr.msra.gmra.mrb[76].mxu1 %v3467_v45  ;;  %4497 = vmatmul.mubr.bf16.vlgmr.msra.gmra.mrb[76].mxu0 %v3467_v45 }
0x1040   :  { %4516 = vmatprep.mubr.msk.bf16.mxu0 %vm5363_vm0, %v6777_v0  ;;  %4501 = vmatpush3.bf16.msra.mxu0 %v4801_v9 }
0x1041   :  { %4502 = vmatprep.subr.bf16.mxu0 %v6777_v0 }
0x1044   :  { %4503 = vmatpush3.bf16.msra.mxu0 %v4802_v48 }
0x1045   :  { %4504 = vmatprep.subr.bf16.mxu0 %v6777_v0 }
0x1048   :  { %4505 = vmatpush3.bf16.msra.mxu0 %v4803_v30 }
0x1049   :  { %4506 = vmatprep.subr.bf16.mxu0 %v6777_v0 }
0x104c   :  { %4507 = vmatpush3.bf16.msra.mxu0 %v4804_v13 }
0x104d   :  { %4508 = vmatprep.subr.bf16.mxu0 %v6777_v0 }
0x1050   :  { %4509 = vmatpush3.bf16.msra.mxu0 %v4805_v2 }
0x1051   :  { %4510 = vmatprep.subr.bf16.mxu0 %v6777_v0 }
0x1054   :  { %4511 = vmatpush3.bf16.msra.mxu0 %v4806_v34 }
0x1055   :  { %4512 = vmatprep.subr.bf16.mxu0 %v6777_v0 }
0x1058   :  { %4513 = vmatpush3.bf16.msra.mxu0 %v4807_v22 }
0x1059   :  { %4514 = vmatprep.subr.bf16.mxu0 %v6777_v0 }
0x105c   :  { %4515 = vmatpush3.bf16.msra.mxu0 %v4808_v23 }
0x1112   :  { %v3502_v43 = vpop.f32.mrb[76].mxu1  ;;  %v3545_v33 = vpop.f32.mrb[76].mxu0 }
0x1113   :  { %v4580_v59 = vadd.f32 %v3502_v43, %v6315_v61  ;;  %v3504_v5 = vpop.f32.mrb[77].mxu1  ;;  %v4498_v58 = vpop.f32.mrb[77].mxu0  ;;  %v3580_v26 = vadd.f32 %v6700_v17, %v3545_v33 }
0x1114   :  { %v3506_v27 = vpop.f32.mrb[78].mxu1  ;;  %v3548_v7 = vpop.f32.mrb[78].mxu0  ;;  %v4581_v3 = vadd.f32 %v3504_v5, %v6319_v53 }
0x1115   :  { %v3916_v19 = vmul.f32 -1.442695, %v4580_v59  ;;  %v4582_v63 = vadd.f32 %v3506_v27, %v6315_v61  ;;  %v3508_v1 = vpop.f32.mrb[79].mxu1  ;;  %v4499_v14 = vpop.f32.mrb[79].mxu0  ;;  %v3581_v40 = vadd.f32 %v6700_v17, %v3548_v7 }
0x1116   :  { %v4583_v0 = vadd.f32 %v3508_v1, %v6319_v53  ;;  %v3918_v36 = vmul.f32 -1.442695, %v4581_v3  ;;  %v6787_v53 = vld [vmem:[#allocation23_spill] sm:$0xff] }
0x1117   :  { %5109 = vpow2.f32 %v3916_v19  ;;  %v3917_v60 = vmul.f32 -1.442695, %v4582_v63  ;;  %v2325_v38 = vadd.f32 %v6787_v53, %v6332_v15 }
0x1118   :  { %v3919_v42 = vmul.f32 -1.442695, %v4583_v0 }
0x1119   :  { %5111 = vpow2.f32 %v3917_v60 }
0x111a   :  { %5113 = vpow2.f32 %v3918_v36 }
0x111b   :  { %5115 = vpow2.f32 %v3919_v42 }
0x1121   :  { %v5110_v62 = vpop.eup %5109 }
0x1122   :  { %v3560_v4 = vadd.f32 1.0, %v5110_v62 }
0x1123   :  { %v5112_v49 = vpop.eup %5111 }
0x1124   :  { %5117 = vrcp.f32 %v3560_v4  ;;  %v3561_v51 = vadd.f32 1.0, %v5112_v49  ;;  %v5114_v61 = vpop.eup %5113 }
0x1125   :  { %v5116_v8 = vpop.eup %5115  ;;  %v3574_v29 = vadd.f32 1.0, %v5114_v61 }
0x1126   :  { %5119 = vrcp.f32 %v3561_v51  ;;  %v3575_v24 = vadd.f32 1.0, %v5116_v8 }
0x1127   :  { %5121 = vrcp.f32 %v3574_v29 }
0x1128   :  { %5123 = vrcp.f32 %v3575_v24 }
0x112e   :  { %v5118_v31 = vpop.eup %5117 }
0x112f   :  { %v3582_v52 = vmul.f32 %v5118_v31, %v3580_v26 }
0x1130   :  { %v5120_v32 = vpop.eup %5119 }
0x1131   :  { %v3584_v28 = vadd.f32 %v3582_v52, %v2325_v38  ;;  %v3583_v25 = vmul.f32 %v5120_v32, %v3581_v40  ;;  %v5122_v18 = vpop.eup %5121 }
0x1132   :  { %v5124_v41 = vpop.eup %5123  ;;  %v3588_v21 = vsub.f32 1.0, %v5122_v18  ;;  %v3592_v56 = vmul.f32 %v5122_v18, %v6710_v16 }
0x1133   :  { %5125 = vtanh.f32 %v3584_v28  ;;  %v3585_v20 = vadd.f32 %v3583_v25, %v2328_v12  ;;  %v3589_v44 = vsub.f32 1.0, %v5124_v41  ;;  %v3593_v37 = vmul.f32 %v5124_v41, %v6712_v46 }
0x1135   :  { %5127 = vtanh.f32 %v3585_v20 }
0x113d   :  { %v5126_v35 = vpop.eup %5125 }
0x113e   :  { %v3590_v55 = vmul.f32 %v5126_v35, %v3588_v21 }
0x113f   :  { %v5128_v47 = vpop.eup %5127 }
0x1140   :  { %v3591_v17 = vmul.f32 %v5128_v47, %v3589_v44  ;;  %v3594_v57 = vadd.f32 %v3592_v56, %v3590_v55 }
0x1142   :  { %v3595_v15 = vadd.f32 %v3593_v37, %v3591_v17 }
0x1144   :  { %v3603_v10 = vpack.c.bf16 %v3595_v15, %v3594_v57 }
0x1146   :  { %4517 = vmatmul.mubr.bf16.vlgmr.msra.gmra.mrb[80].mxu0 %v3603_v10 }
0x1219   :  { %v3709_v11 = vpop.f32.mrb[80].mxu0 }
0x121a   :  { %v3710_v54 = vadd.f32 %v3920_v6, %v3709_v11  ;;  %v4518_v50 = vpop.f32.mrb[81].mxu0 }
0x121b   :  { %v3712_v45 = vpop.f32.mrb[82].mxu0 }
0x121c   :  { %v3929_v9 = vmul.f32 -1.442695, %v3710_v54  ;;  %v3713_v48 = vadd.f32 %v3920_v6, %v3712_v45  ;;  %v4519_v30 = vpop.f32.mrb[83].mxu0 }
0x121e   :  { %5129 = vpow2.f32 %v3929_v9  ;;  %v3930_v16 = vmul.f32 -1.442695, %v3713_v48 }
0x1220   :  { %5131 = vpow2.f32 %v3930_v16 }
0x1228   :  { %v5130_v13 = vpop.eup %5129 }
0x1229   :  { %v3722_v46 = vadd.f32 1.0, %v5130_v13 }
0x122a   :  { %v5132_v2 = vpop.eup %5131 }
0x122b   :  { %5133 = vrcp.f32 %v3722_v46  ;;  %v3723_v34 = vadd.f32 1.0, %v5132_v2 }
0x122d   :  { %5135 = vrcp.f32 %v3723_v34 }
0x1235   :  { %v5134_v22 = vpop.eup %5133 }
0x1236   :  { %3728 = vst [vmem:[#allocation16] sm:$0xff] %v5134_v22 }
0x1237   :  { %v5136_v23 = vpop.eup %5135 }
0x1238   :  { %3729 = vst [vmem:[#allocation16 + $0x8] sm:$0xff] %v5136_v23 }
0x1239   :  { %5330 = shalt.err (!%p5327_p10)
}
0x123a   :  { %s5331_s26 = scalar_lea.hbm %s6763_s11, 256 }
0x123b   :  { %p5332_p11 = scmp.ne.s32.totalorder %s6763_s11, %s5331_s26  ;;  %p5335_p12 = scmp.lt.u32.totalorder %s5331_s26, %s6763_s11 }
0x123d   :  { %p5337_p13 = pnand %p5335_p12, %p5332_p11 }
0x123f   :  { %5340 = shalt.err (!%p5337_p13)
}
0x1240   :  { %s5366_s15 = smov 128   ;;  %s5367_s14 = smov 8  }
0x1241   :  { %3741 = dma.vmem_to_hbm [thread:$0]  %s3736_s2, 256, %s6763_s11, [#allocation7], %s5366_s15, %s5366_s15, %s5367_s14  }
0x1242   :  { %5349 = dma.done.wait [#allocation7], 256  }
0x1243   :  { %5350 = vsyncadd [#allocation7], 4294967040 }
0x1244   :  { %3745 = vsyncpa [#allocation6], 1 }
0x1245   :  { %3746 = vsyncpa [#allocation9], 1 }
0x1246   :  { %3747 = vsyncpa [#allocation12], 1 }
0x1247   :  { %3748 = vsyncpa [#allocation15], 1 }
0x1248   :  { %3749 = vsyncpa [#allocation7], 1 }

</bundles_post_ra>
